<compile_context>
chip_gen: v7x
topology: tpu7x:2x2x1
jax: 0.10.0
libtpu: 0.0.40
codegen_flags: <defaults>
</compile_context>

<pallas_src>
import math

import jax
import jax.numpy as jnp
from jax.experimental import pallas as pl
from jax.experimental.pallas import tpu as pltpu


# ----------------------------------------------------------------------------- helpers / config
WDTYPE = jnp.bfloat16


def _round_up(x, m):
    return ((x + m - 1) // m) * m


def _row_tile(rows):
    for cand in (2048, 1024, 512, 256):
        if rows > cand and rows % cand == 0:
            return cand
    return rows


def _tpu_config():
    """Generation-aware tile sizes / VMEM budget (v5e vs v6e vs v7x)."""
    try:
        kind = jax.devices()[0].device_kind.lower()
    except Exception:  # pragma: no cover - fallback for exotic backends
        kind = ""
    is_v7 = "v7" in kind
    is_v6 = "v6" in kind
    return dict(
        m_tile=512 if is_v6 else 256,
        n_tile=256 if (is_v6 or is_v7) else 128,       # v5e MXU is 128-wide
        k_tile=1024 if is_v6 else 512,                 # multiples of 256 on v6e/v7x
        k_split=2048,
        vmem_limit=(48 << 20) if is_v7 else (64 << 20),  # v7x has 64 MiB physical VMEM
    )


_CFG = _tpu_config()


# ----------------------------------------------------------------------------- fused matmul kernel
# (M,K)@(K,N) on the MXU with BN bias (+ optional residual) + ReLU fused into the K-epilogue.
def _make_mm_kernel(relu, has_res):
    if has_res:
        def kernel(a_ref, b_ref, bias_ref, res_ref, o_ref, acc_ref):
            @pl.when(pl.program_id(2) == 0)
            def _():
                acc_ref[...] = jnp.zeros_like(acc_ref)

            acc_ref[...] += jnp.dot(a_ref[...], b_ref[...],
                                    preferred_element_type=jnp.float32)

            @pl.when(pl.program_id(2) == pl.num_programs(2) - 1)
            def _():
                y = acc_ref[...] + bias_ref[...] + res_ref[...].astype(jnp.float32)
                if relu:
                    y = jnp.maximum(y, 0.0)
                o_ref[...] = y.astype(o_ref.dtype)
    else:
        def kernel(a_ref, b_ref, bias_ref, o_ref, acc_ref):
            @pl.when(pl.program_id(2) == 0)
            def _():
                acc_ref[...] = jnp.zeros_like(acc_ref)

            acc_ref[...] += jnp.dot(a_ref[...], b_ref[...],
                                    preferred_element_type=jnp.float32)

            @pl.when(pl.program_id(2) == pl.num_programs(2) - 1)
            def _():
                y = acc_ref[...] + bias_ref[...]
                if relu:
                    y = jnp.maximum(y, 0.0)
                o_ref[...] = y.astype(o_ref.dtype)
    return kernel


def matmul_bias(a, b, bias, residual=None, relu=False, out_dtype=WDTYPE):
    """y = act(a @ b + bias [+ residual]); bf16 MXU inputs, f32 accumulation, lane-dense output."""
    M, K = a.shape
    K2, N = b.shape
    assert K == K2
    a = a.astype(jnp.bfloat16)
    b = b.astype(jnp.bfloat16)
    bias = bias.reshape(1, N).astype(jnp.float32)

    # M: >= 2 "parallel" blocks whenever feasible so both v7x TensorCores get work.
    if M >= 16:
        tm = min(_CFG['m_tile'], _round_up((M + 1) // 2, 8))
        Mp = _round_up(M, tm)
    else:
        tm, Mp = M, M

    # N: always pad to a multiple of 128 (no MXU cost; masked vst.msk -> dense vst).
    Np = _round_up(N, 128)
    if Np > 2 * _CFG['n_tile']:
        tn = _CFG['n_tile']
        Np = _round_up(Np, tn)
    else:
        tn = Np

    if K > _CFG['k_split']:
        tk = _CFG['k_tile']
        Kp = _round_up(K, tk)
    else:
        tk, Kp = K, K

    if Mp != M or Kp != K:
        a = jnp.pad(a, ((0, Mp - M), (0, Kp - K)))
    if Kp != K or Np != N:
        b = jnp.pad(b, ((0, Kp - K), (0, Np - N)))
    if Np != N:
        bias = jnp.pad(bias, ((0, 0), (0, Np - N)))

    has_res = residual is not None
    in_specs = [pl.BlockSpec((tm, tk), lambda i, j, k: (i, k)),
                pl.BlockSpec((tk, tn), lambda i, j, k: (k, j)),
                pl.BlockSpec((1, tn), lambda i, j, k: (0, j))]
    operands = [a, b, bias]
    if has_res:
        res = residual.astype(jnp.bfloat16)
        if Mp != M or Np != N:
            res = jnp.pad(res, ((0, Mp - M), (0, Np - N)))
        in_specs.append(pl.BlockSpec((tm, tn), lambda i, j, k: (i, j)))
        operands.append(res)

    out_bytes = Mp * Np * jnp.dtype(out_dtype).itemsize
    bytes_accessed = (Mp * Kp * 2 + Kp * Np * 2 + Np * 4 + out_bytes
                      + (Mp * Np * 2 if has_res else 0))

    out = pl.pallas_call(
        _make_mm_kernel(relu=relu, has_res=has_res),
        out_shape=jax.ShapeDtypeStruct((Mp, Np), out_dtype),
        grid_spec=pltpu.PrefetchScalarGridSpec(
            num_scalar_prefetch=0,
            grid=(Mp // tm, Np // tn, Kp // tk),
            in_specs=in_specs,
            out_specs=pl.BlockSpec((tm, tn), lambda i, j, k: (i, j)),
            scratch_shapes=[pltpu.VMEM((tm, tn), jnp.float32)]),
        compiler_params=pltpu.CompilerParams(
            dimension_semantics=("parallel", "parallel", "arbitrary"),
            vmem_limit_bytes=_CFG['vmem_limit']),
        cost_estimate=pl.CostEstimate(
            flops=2 * Mp * Np * Kp, transcendentals=0,
            bytes_accessed=bytes_accessed),
    )(*operands)
    if Mp != M or Np != N:
        out = out[:M, :N]
    return out


# ----------------------------------------------------------------------------- conv (fused BN/relu)
def conv2d_bn(x, w, bias, stride=1, padding=0, relu=False, residual=None, out_dtype=WDTYPE):
    """NHWC conv with BN scale pre-folded into w; bias/residual/relu fused in the MXU epilogue."""
    N, H, W, Cin = x.shape
    KH, KW, _, Cout = w.shape
    Ho = (H + 2 * padding - KH) // stride + 1
    Wo = (W + 2 * padding - KW) // stride + 1
    if KH == 1 and KW == 1 and padding == 0:
        xs = x if stride == 1 else x[:, ::stride, ::stride, :]
        a = xs.reshape(N * Ho * Wo, Cin)
    else:
        # TODO(synk): KxK convs still materialize bf16 im2col patches via XLA glue; streaming
        #             the KH*KW taps through the K grid axis is future work.
        xp = jnp.pad(x, ((0, 0), (padding, padding), (padding, padding), (0, 0)))
        cols = [xp[:, i:i + stride * Ho:stride, j:j + stride * Wo:stride, :]
                for i in range(KH) for j in range(KW)]
        a = jnp.concatenate(cols, axis=-1).reshape(N * Ho * Wo, KH * KW * Cin)
    bmat = w.reshape(KH * KW * Cin, Cout)
    res = None if residual is None else residual.reshape(N * Ho * Wo, Cout)
    out = matmul_bias(a, bmat, bias, residual=res, relu=relu, out_dtype=out_dtype)
    return out.reshape(N, Ho, Wo, Cout)


# ----------------------------------------------------------------------------- max pool (direct)
def _maxpool_kernel(x_ref, o_ref):
    _, Ho, Wo, C = o_ref.shape
    W1 = Wo + 1
    x = x_ref[...]                         # (1, Ho+1, 2*(Wo+1), 2*C)
    xe = x[:, :, :W1, :]                   # even input rows
    xo = x[:, :, W1:, :]                   # odd input rows
    ee, eo = xe[..., :C], xe[..., C:]      # even / odd input columns
    oe, oo = xo[..., :C], xo[..., C:]
    m = ee[:, :Ho, :Wo, :]
    m = jnp.maximum(m, ee[:, :Ho, 1:W1, :])
    m = jnp.maximum(m, ee[:, 1:Ho + 1, :Wo, :])
    m = jnp.maximum(m, ee[:, 1:Ho + 1, 1:W1, :])
    m = jnp.maximum(m, eo[:, :Ho, :Wo, :])
    m = jnp.maximum(m, eo[:, 1:Ho + 1, :Wo, :])
    m = jnp.maximum(m, oe[:, :Ho, :Wo, :])
    m = jnp.maximum(m, oe[:, :Ho, 1:W1, :])
    m = jnp.maximum(m, oo[:, :Ho, :Wo, :])
    o_ref[...] = m


def maxpool2d_3x3_s2(x):
    """3x3 / stride-2 / pad-1 max pool.  The padded image is passed to the kernel ONCE; a free
    contiguous reshape packs the even/odd column phase into lanes and the even/odd row phase
    into the sublane axis, so the phase extraction happens in-kernel (no strided XLA gathers)."""
    N, H, W, C = x.shape
    assert H % 2 == 0 and W % 2 == 0
    Ho, Wo = H // 2, W // 2
    pad_val = float(jnp.finfo(x.dtype).min)
    xp = jnp.pad(x, ((0, 0), (1, 1), (1, 1), (0, 0)), constant_values=pad_val)
    # (N, 2(Ho+1), 2(Wo+1), C) -> (N, Ho+1, 2(Wo+1), 2C); pure contiguous reshape:
    #   x4[n, a, q*(Wo+1)+b, p*C+c] == xp[n, 2a+q, 2b+p, c]
    x4 = xp.reshape(N, Ho + 1, 2 * (Wo + 1), 2 * C)
    return pl.pallas_call(
        _maxpool_kernel,
        out_shape=jax.ShapeDtypeStruct((N, Ho, Wo, C), x.dtype),
        grid=(N,),
        in_specs=[pl.BlockSpec((1, Ho + 1, 2 * (Wo + 1), 2 * C), lambda i: (i, 0, 0, 0))],
        out_specs=pl.BlockSpec((1, Ho, Wo, C), lambda i: (i, 0, 0, 0)),
        compiler_params=pltpu.CompilerParams(dimension_semantics=("parallel",)),
    )(x4)


# ----------------------------------------------------------------------------- late-fusion kernel
def _fuse_bn_add_kernel(r_ref, d_ref, sr_ref, br_ref, sd_ref, bd_ref, o_ref):
    y = (r_ref[...].astype(jnp.float32) * sr_ref[...] + br_ref[...]
         + d_ref[...].astype(jnp.float32) * sd_ref[...] + bd_ref[...])
    o_ref[...] = y.astype(o_ref.dtype)


def fuse_bn_add(r, d, nr, nd):
    """BN_r(r) + BN_d(d) in a single pass, lane-dense repacked when C < 128."""
    N, H, W, C = r.shape
    R = N * H * W
    sr, br = nr
    sd, bd = nd
    if C < 128 and 128 % C == 0 and (R * C) % 128 == 0:
        # lane-dense: (R, C) -> (R*C/128, 128); per-channel params tiled across the lane axis.
        rows, width = (R * C) // 128, 128
        rep = 128 // C
        r2, d2 = r.reshape(rows, width), d.reshape(rows, width)
        sr2, br2 = jnp.tile(sr, (1, rep)), jnp.tile(br, (1, rep))
        sd2, bd2 = jnp.tile(sd, (1, rep)), jnp.tile(bd, (1, rep))
    else:
        rows, width = R, C
        r2, d2 = r.reshape(R, C), d.reshape(R, C)
        sr2, br2, sd2, bd2 = sr, br, sd, bd
    tr = _row_tile(rows)
    out = pl.pallas_call(
        _fuse_bn_add_kernel,
        out_shape=jax.ShapeDtypeStruct((rows, width), r.dtype),
        grid=(rows // tr,),
        in_specs=[pl.BlockSpec((tr, width), lambda i: (i, 0)),
                  pl.BlockSpec((tr, width), lambda i: (i, 0)),
                  pl.BlockSpec((1, width), lambda i: (0, 0)),
                  pl.BlockSpec((1, width), lambda i: (0, 0)),
                  pl.BlockSpec((1, width), lambda i: (0, 0)),
                  pl.BlockSpec((1, width), lambda i: (0, 0))],
        out_specs=pl.BlockSpec((tr, width), lambda i: (i, 0)),
        compiler_params=pltpu.CompilerParams(dimension_semantics=("parallel",)),
    )(r2, d2, sr2, br2, sd2, bd2)
    return out.reshape(N, H, W, C)


# ----------------------------------------------------------------------------- CBAM kernels
def _cbam_channel_kernel(x_ref, w1_ref, b1_ref, w2_ref, b2_ref, xc_ref, smap_ref):
    # channel avg/max pool + shared MLP + sigmoid channel gate + spatial avg/max pool, fused.
    x = x_ref[0].astype(jnp.float32)                              # (L, C)
    avg = jnp.mean(x, axis=0, keepdims=True)                      # (1, C)
    mx = jnp.max(x, axis=0, keepdims=True)                        # (1, C)
    pooled = jnp.concatenate([avg, mx], axis=0).astype(jnp.bfloat16)   # (2, C)
    h = jnp.dot(pooled, w1_ref[...], preferred_element_type=jnp.float32) + b1_ref[...]
    h = jnp.maximum(h, 0.0).astype(jnp.bfloat16)
    logits = jnp.dot(h, w2_ref[...], preferred_element_type=jnp.float32) + b2_ref[...]  # (2, C)
    gate = jax.nn.sigmoid(logits[0:1, :] + logits[1:2, :])        # (1, C)
    xc = x * gate                                                 # channel-gated feature
    xc_ref[0] = xc.astype(xc_ref.dtype)
    smap_ref[0] = jnp.concatenate(
        [jnp.mean(xc, axis=1, keepdims=True), jnp.max(xc, axis=1, keepdims=True)], axis=1)


def cbam_channel(flat, p):
    N, L, C = flat.shape
    hidden = p['fc1'].shape[1]
    return pl.pallas_call(
        _cbam_channel_kernel,
        out_shape=(jax.ShapeDtypeStruct((N, L, C), flat.dtype),
                   jax.ShapeDtypeStruct((N, L, 2), jnp.float32)),
        grid=(N,),
        in_specs=[pl.BlockSpec((1, L, C), lambda i: (i, 0, 0)),
                  pl.BlockSpec((C, hidden), lambda i: (0, 0)),
                  pl.BlockSpec((1, hidden), lambda i: (0, 0)),
                  pl.BlockSpec((hidden, C), lambda i: (0, 0)),
                  pl.BlockSpec((1, C), lambda i: (0, 0))],
        out_specs=(pl.BlockSpec((1, L, C), lambda i: (i, 0, 0)),
                   pl.BlockSpec((1, L, 2), lambda i: (i, 0, 0))),
        compiler_params=pltpu.CompilerParams(dimension_semantics=("parallel",)),
    )(flat, p['fc1'], p['fc1_b'].reshape(1, -1), p['fc2'], p['fc2_b'].reshape(1, -1))


def spatial_logits(smap_nhwc, p):
    # TODO(synk): Cin=2 / Cout=1 7x7 conv left as tiny XLA glue (the matmul path would waste
    #             127/128 output lanes); a VPU shift-accumulate Pallas kernel is future work.
    w = p['spatial_w'].astype(jnp.float32)
    y = jax.lax.conv_general_dilated(
        smap_nhwc.astype(jnp.float32), w, window_strides=(1, 1),
        padding=((3, 3), (3, 3)), dimension_numbers=('NHWC', 'HWIO', 'NHWC'))
    return y + p['spatial_b'].astype(jnp.float32).reshape(1, 1, 1, 1)


def _cbam_pair_finalize_kernel(xr_ref, sr_ref, xd_ref, sd_ref,
                               scr_ref, bcr_ref, scd_ref, bcd_ref,
                               or_ref, od_ref, f_ref):
    # spatial sigmoid gate for BOTH branches + dual BatchNorm + late-fusion add, fused.
    xr = xr_ref[...].astype(jnp.float32) * jax.nn.sigmoid(sr_ref[...])
    xd = xd_ref[...].astype(jnp.float32) * jax.nn.sigmoid(sd_ref[...])
    or_ref[...] = xr.astype(or_ref.dtype)
    od_ref[...] = xd.astype(od_ref.dtype)
    f_ref[...] = (xr * scr_ref[...] + bcr_ref[...]
                  + xd * scd_ref[...] + bcd_ref[...]).astype(f_ref.dtype)


def cbam_pair_fuse(xr, xd, pr, pd, nr, nd):
    """CBAM for both encoder branches of one stage + dual-BN late fusion (3 pallas_calls)."""
    N, H, W, C = xr.shape
    L = H * W
    xcr, smr = cbam_channel(xr.reshape(N, L, C), pr)
    xcd, smd = cbam_channel(xd.reshape(N, L, C), pd)
    sr = spatial_logits(smr.reshape(N, H, W, 2), pr).reshape(N, L, 1)
    sd = spatial_logits(smd.reshape(N, H, W, 2), pd).reshape(N, L, 1)

    feat_spec = pl.BlockSpec((1, L, C), lambda i: (i, 0, 0))
    slog_spec = pl.BlockSpec((1, L, 1), lambda i: (i, 0, 0))
    norm_spec = pl.BlockSpec((1, 1, C), lambda i: (0, 0, 0))
    outr, outd, fused = pl.pallas_call(
        _cbam_pair_finalize_kernel,
        out_shape=(jax.ShapeDtypeStruct((N, L, C), xr.dtype),
                   jax.ShapeDtypeStruct((N, L, C), xd.dtype),
                   jax.ShapeDtypeStruct((N, L, C), xr.dtype)),
        grid=(N,),
        in_specs=[feat_spec, slog_spec, feat_spec, slog_spec,
                  norm_spec, norm_spec, norm_spec, norm_spec],
        out_specs=(feat_spec, feat_spec, feat_spec),
        compiler_params=pltpu.CompilerParams(dimension_semantics=("parallel",)),
    )(xcr, sr, xcd, sd,
      nr[0].reshape(1, 1, C), nr[1].reshape(1, 1, C),
      nd[0].reshape(1, 1, C), nd[1].reshape(1, 1, C))
    return (outr.reshape(N, H, W, C), outd.reshape(N, H, W, C),
            fused.reshape(N, H, W, C))


# ----------------------------------------------------------------------------- model config
STEM_CH = 8
STAGE_CH = [16, 32, 64, 128]     # scaled-down ResNet-50 stage widths
STRIDES = (1, 2, 2, 2)
DEC_CH = [32, 16, 16, 8, 8]
NUM_CLASSES = 5


# ----------------------------------------------------------------------------- parameters
def _conv_w(key, kh, kw, cin, cout):
    w = jax.random.normal(key, (kh, kw, cin, cout), jnp.float32)
    return w * (1.0 / math.sqrt(kh * kw * cin))


def _bn_sb(key, c):
    k1, k2 = jax.random.split(key)
    gamma = 1.0 + 0.1 * jax.random.normal(k1, (c,), jnp.float32)
    beta = 0.1 * jax.random.normal(k2, (c,), jnp.float32)
    scale = gamma / jnp.sqrt(1.0 + 1e-5)     # inference BN: running_mean=0, running_var=1
    return scale, beta


def _fold_conv_bn(w_raw, key_bn):
    scale, beta = _bn_sb(key_bn, w_raw.shape[-1])
    return (w_raw * scale).astype(WDTYPE), beta.astype(jnp.float32)


def make_encoder(key, conv1_raw):
    keys = iter(jax.random.split(key, 64))
    w1, b1 = _fold_conv_bn(conv1_raw, next(keys))
    p = {'conv1_w': w1, 'conv1_b': b1, 'layers': []}
    prev = STEM_CH
    for out_ch in STAGE_CH:
        mid = max(out_ch // 4, 1)
        c1w, c1b = _fold_conv_bn(_conv_w(next(keys), 1, 1, prev, mid), next(keys))
        c2w, c2b = _fold_conv_bn(_conv_w(next(keys), 3, 3, mid, mid), next(keys))
        c3w, c3b = _fold_conv_bn(_conv_w(next(keys), 1, 1, mid, out_ch), next(keys))
        dww, dwb = _fold_conv_bn(_conv_w(next(keys), 1, 1, prev, out_ch), next(keys))
        p['layers'].append(dict(c1_w=c1w, c1_b=c1b, c2_w=c2w, c2_b=c2b,
                                c3_w=c3w, c3_b=c3b, down_w=dww, down_b=dwb))
        prev = out_ch
    return p


def make_cbam(key, c, r=8):
    hidden = max(c // r, 1)
    k1, k2, k3 = jax.random.split(key, 3)
    return {'fc1': (jax.random.normal(k1, (c, hidden), jnp.float32) / math.sqrt(c)).astype(WDTYPE),
            'fc1_b': jnp.zeros((hidden,), jnp.float32),
            'fc2': (jax.random.normal(k2, (hidden, c), jnp.float32) / math.sqrt(hidden)).astype(WDTYPE),
            'fc2_b': jnp.zeros((c,), jnp.float32),
            'spatial_w': _conv_w(k3, 7, 7, 2, 1).astype(WDTYPE),
            'spatial_b': jnp.zeros((1,), jnp.float32)}


def make_norm(key, c):
    scale, beta = _bn_sb(key, c)
    return scale.reshape(1, c), beta.reshape(1, c)


def make_decoder(key):
    in_chs = [STAGE_CH[3] + STAGE_CH[2], DEC_CH[0] + STAGE_CH[1], DEC_CH[1] + STAGE_CH[0],
              DEC_CH[2], DEC_CH[3]]
    keys = jax.random.split(key, 2 * len(DEC_CH) + 1)
    blocks = []
    for i, (cin, cout) in enumerate(zip(in_chs, DEC_CH)):
        w, b = _fold_conv_bn(_conv_w(keys[2 * i], 3, 3, cin, cout), keys[2 * i + 1])
        blocks.append({'w': w, 'b': b})
    return {'blocks': blocks,
            'head_w': _conv_w(keys[-1], 3, 3, DEC_CH[-1], NUM_CLASSES).astype(WDTYPE),
            'head_b': jnp.zeros((NUM_CLASSES,), jnp.float32)}


def build_params(key):
    k_rgb, k_d, k_stem, k_att, k_norm, k_dec = jax.random.split(key, 6)
    conv1_rgb_raw = _conv_w(k_stem, 7, 7, 3, STEM_CH)
    conv1_d_raw = jnp.mean(conv1_rgb_raw, axis=2, keepdims=True)  # _adapt_input_channels(d=1)
    rgb_enc = make_encoder(k_rgb, conv1_rgb_raw)
    d_enc = make_encoder(k_d, conv1_d_raw)
    ka = jax.random.split(k_att, 4)
    rgb_att = [make_cbam(ka[0], STAGE_CH[-2]), make_cbam(ka[1], STAGE_CH[-1])]
    d_att = [make_cbam(ka[2], STAGE_CH[-2]), make_cbam(ka[3], STAGE_CH[-1])]
    kn = jax.random.split(k_norm, 8)
    rgb_norms = [make_norm(kn[i], c) for i, c in enumerate(STAGE_CH)]
    d_norms = [make_norm(kn[4 + i], c) for i, c in enumerate(STAGE_CH)]
    return dict(rgb_enc=rgb_enc, d_enc=d_enc, rgb_att=rgb_att, d_att=d_att,
                rgb_norms=rgb_norms, d_norms=d_norms, decoder=make_decoder(k_dec))


# ----------------------------------------------------------------------------- forward blocks
def upsample2x(x):
    # TODO(synk): nearest-neighbor upsample kept as XLA glue; folding it into the following
    #             decoder conv's A-side index_map is future work.
    return jnp.repeat(jnp.repeat(x, 2, axis=1), 2, axis=2)


def stem_fw(p, x):
    y = conv2d_bn(x, p['conv1_w'], p['conv1_b'], stride=2, padding=3, relu=True)
    return maxpool2d_3x3_s2(y)


def bottleneck(x, p, stride):
    identity = conv2d_bn(x, p['down_w'], p['down_b'], stride=stride, padding=0)
    y = conv2d_bn(x, p['c1_w'], p['c1_b'], stride=1, padding=0, relu=True)
    y = conv2d_bn(y, p['c2_w'], p['c2_b'], stride=stride, padding=1, relu=True)
    # conv3 + BN3 + residual add + ReLU all fused in one MXU epilogue
    return conv2d_bn(y, p['c3_w'], p['c3_b'], stride=1, padding=0, relu=True, residual=identity)


def decoder_forward(p, x, skips):
    skip_list = [skips[2], skips[1], skips[0], None, None]
    for blk, skip in zip(p['blocks'], skip_list):
        x = upsample2x(x)
        if skip is not None:
            x = jnp.concatenate([x, skip], axis=-1)
        x = conv2d_bn(x, blk['w'], blk['b'], stride=1, padding=1, relu=True)
    return conv2d_bn(x, p['head_w'], p['head_b'], stride=1, padding=1, out_dtype=jnp.float32)


def attention_late_fusion_forward(params, x_nchw):
    x = jnp.transpose(x_nchw, (0, 2, 3, 1)).astype(WDTYPE)   # NCHW -> NHWC, bf16 activations
    rgb = x[..., :3]
    d = x[..., 3:]

    rgb = stem_fw(params['rgb_enc'], rgb)
    d = stem_fw(params['d_enc'], d)

    fused = []
    for si in range(4):
        rgb = bottleneck(rgb, params['rgb_enc']['layers'][si], STRIDES[si])
        d = bottleneck(d, params['d_enc']['layers'][si], STRIDES[si])
        if si >= 2:                                           # CBAM on the last two stages
            rgb, d, f = cbam_pair_fuse(rgb, d,
                                       params['rgb_att'][si - 2], params['d_att'][si - 2],
                                       params['rgb_norms'][si], params['d_norms'][si])
        else:
            # TODO(synk): folding this dual BN into the consuming decoder conv weights (per
            #             review) is future work; kept as one lane-dense fused kernel instead.
            f = fuse_bn_add(rgb, d, params['rgb_norms'][si], params['d_norms'][si])
        fused.append(f)

    out = decoder_forward(params['decoder'], fused[-1], fused[:-1])
    return jnp.transpose(out, (0, 3, 1, 2)).astype(jnp.float32)


# ----------------------------------------------------------------------------- main
if __name__ == "__main__":
    key = jax.random.PRNGKey(0)
    kx, kp = jax.random.split(key)
    x = jax.random.normal(kx, (2, 4, 32, 32), jnp.float32)    # NCHW RGB-D input (3 RGB + 1 depth)
    params = build_params(kp)
    fwd = jax.jit(attention_late_fusion_forward)
    out = jax.block_until_ready(fwd(params, x))
    assert out.shape == (2, NUM_CLASSES, 32, 32), out.shape
    assert bool(jnp.all(jnp.isfinite(out)))
    print("KERNEL_OK")
</pallas_src>

<mosaic_0001>
module attributes {stable_mosaic.version = 11 : i64} {
  func.func @kernel(%arg0: i32, %arg1: i32, %arg2: i32, %arg3: memref<256x49xbf16, #tpu.memory_space<vmem>>, %arg4: memref<49x128xbf16, #tpu.memory_space<vmem>>, %arg5: memref<1x128xf32, #tpu.memory_space<vmem>>, %arg6: memref<256x128xbf16, #tpu.memory_space<vmem>>, %arg7: memref<256x128xf32, #tpu.memory_space<vmem>>) attributes {dimension_semantics = [#tpu.dimension_semantics<parallel>, #tpu.dimension_semantics<parallel>, #tpu.dimension_semantics<arbitrary>], iteration_bounds = array<i64: 2, 1, 1>, scalar_prefetch = 0 : i64, scratch_operands = 1 : i64, tpu.core_type = #tpu.core_type<tc>, window_params = [{transform_indices = @transform_0, window_bounds = array<i64: 256, 49>}, {transform_indices = @transform_1, window_bounds = array<i64: 49, 128>}, {transform_indices = @transform_2, window_bounds = array<i64: 1, 128>}, {transform_indices = @transform_3, window_bounds = array<i64: 256, 128>}]} {
    %c0_i32 = arith.constant 0 : i32
    %0 = arith.cmpi eq, %arg2, %c0_i32 : i32
    %1 = arith.extui %0 : i1 to i32
    %c0_i32_0 = arith.constant 0 : i32
    %2 = arith.cmpi ne, %1, %c0_i32_0 : i32
    scf.if %2 {
      %cst_10 = arith.constant 0.000000e+00 : f32
      %12 = vector.broadcast %cst_10 : f32 to vector<256x128xf32>
      %c0_11 = arith.constant 0 : index
      %c0_12 = arith.constant 0 : index
      %13 = vector.load %arg7[%c0_11, %c0_12] : memref<256x128xf32, #tpu.memory_space<vmem>>, vector<256x128xf32>
      tpu.vector_store %arg7[%c0_11, %c0_12], %12 {strides = array<i32>} : memref<256x128xf32, #tpu.memory_space<vmem>>, vector<256x128xf32>,
    } else {
    }
    %c0 = arith.constant 0 : index
    %c0_1 = arith.constant 0 : index
    %3 = vector.load %arg7[%c0, %c0_1] : memref<256x128xf32, #tpu.memory_space<vmem>>, vector<256x128xf32>
    %c0_2 = arith.constant 0 : index
    %c0_3 = arith.constant 0 : index
    %4 = vector.load %arg3[%c0_2, %c0_3] : memref<256x49xbf16, #tpu.memory_space<vmem>>, vector<256x49xbf16>
    %c0_4 = arith.constant 0 : index
    %c0_5 = arith.constant 0 : index
    %5 = vector.load %arg4[%c0_4, %c0_5] : memref<49x128xbf16, #tpu.memory_space<vmem>>, vector<49x128xbf16>
    %cst = arith.constant dense<0.000000e+00> : vector<256x128xf32>
    %6 = tpu.matmul %4, %5, %cst {dimension_numbers = #tpu.dot_dimension_numbers<[1], [0], [0], [1], [0, 0, 1, 1], [], []>} : vector<256x49xbf16>, vector<49x128xbf16>, vector<256x128xf32> -> vector<256x128xf32>
    %7 = arith.addf %3, %6 : vector<256x128xf32>
    %c0_6 = arith.constant 0 : index
    %c0_7 = arith.constant 0 : index
    %8 = vector.load %arg7[%c0_6, %c0_7] : memref<256x128xf32, #tpu.memory_space<vmem>>, vector<256x128xf32>
    tpu.vector_store %arg7[%c0_6, %c0_7], %7 {strides = array<i32>} : memref<256x128xf32, #tpu.memory_space<vmem>>, vector<256x128xf32>,
    %c0_i32_8 = arith.constant 0 : i32
    %9 = arith.cmpi eq, %arg2, %c0_i32_8 : i32
    %10 = arith.extui %9 : i1 to i32
    %c0_i32_9 = arith.constant 0 : i32
    %11 = arith.cmpi ne, %10, %c0_i32_9 : i32
    scf.if %11 {
      %c0_10 = arith.constant 0 : index
      %c0_11 = arith.constant 0 : index
      %12 = vector.load %arg7[%c0_10, %c0_11] : memref<256x128xf32, #tpu.memory_space<vmem>>, vector<256x128xf32>
      %c0_12 = arith.constant 0 : index
      %c0_13 = arith.constant 0 : index
      %13 = vector.load %arg5[%c0_12, %c0_13] : memref<1x128xf32, #tpu.memory_space<vmem>>, vector<1x128xf32>
      %14 = vector.broadcast %13 : vector<1x128xf32> to vector<256x128xf32>
      %15 = arith.addf %12, %14 : vector<256x128xf32>
      %cst_14 = arith.constant 0.000000e+00 : f32
      %16 = vector.broadcast %cst_14 : f32 to vector<256x128xf32>
      %17 = arith.maximumf %15, %16 : vector<256x128xf32>
      %18 = arith.truncf %17 : vector<256x128xf32> to vector<256x128xbf16>
      %c0_15 = arith.constant 0 : index
      %c0_16 = arith.constant 0 : index
      %19 = vector.load %arg6[%c0_15, %c0_16] : memref<256x128xbf16, #tpu.memory_space<vmem>>, vector<256x128xbf16>
      tpu.vector_store %arg6[%c0_15, %c0_16], %18 {strides = array<i32>} : memref<256x128xbf16, #tpu.memory_space<vmem>>, vector<256x128xbf16>,
    } else {
    }
    return
  }
  func.func @transform_0(%arg0: i32, %arg1: i32, %arg2: i32) -> (i32, i32) {
    %c0_i32 = arith.constant 0 : i32
    return %arg0, %arg2 : i32, i32
  }
  func.func @transform_1(%arg0: i32, %arg1: i32, %arg2: i32) -> (i32, i32) {
    %c0_i32 = arith.constant 0 : i32
    return %arg2, %arg1 : i32, i32
  }
  func.func @transform_2(%arg0: i32, %arg1: i32, %arg2: i32) -> (i32, i32) {
    %c0_i32 = arith.constant 0 : i32
    %c0_i32_0 = arith.constant 0 : i32
    return %c0_i32, %arg1 : i32, i32
  }
  func.func @transform_3(%arg0: i32, %arg1: i32, %arg2: i32) -> (i32, i32) {
    %c0_i32 = arith.constant 0 : i32
    return %arg0, %arg1 : i32, i32
  }
}

module attributes {stable_mosaic.version = 11 : i64} {
  func.func @_maxpool_kernel(%arg0: i32, %arg1: memref<1x9x18x16xbf16, #tpu.memory_space<vmem>>, %arg2: memref<1x8x8x8xbf16, #tpu.memory_space<vmem>>) attributes {dimension_semantics = [#tpu.dimension_semantics<parallel>], iteration_bounds = array<i64: 2>, scalar_prefetch = 0 : i64, scratch_operands = 0 : i64, tpu.core_type = #tpu.core_type<tc>, window_params = [{transform_indices = @transform_0, window_bounds = array<i64: 1, 9, 18, 16>}, {transform_indices = @transform_1, window_bounds = array<i64: 1, 8, 8, 8>}]} {
    %c0 = arith.constant 0 : index
    %c0_0 = arith.constant 0 : index
    %c0_1 = arith.constant 0 : index
    %c0_2 = arith.constant 0 : index
    %0 = vector.load %arg1[%c0, %c0_0, %c0_1, %c0_2] : memref<1x9x18x16xbf16, #tpu.memory_space<vmem>>, vector<1x9x18x16xbf16>
    %1 = vector.extract_strided_slice %0 {offsets = [0, 0, 0, 0], sizes = [1, 9, 9, 16], strides = [1, 1, 1, 1]} : vector<1x9x18x16xbf16> to vector<1x9x9x16xbf16>
    %2 = vector.extract_strided_slice %0 {offsets = [0, 0, 9, 0], sizes = [1, 9, 9, 16], strides = [1, 1, 1, 1]} : vector<1x9x18x16xbf16> to vector<1x9x9x16xbf16>
    %3 = vector.extract_strided_slice %1 {offsets = [0, 0, 0, 0], sizes = [1, 9, 9, 8], strides = [1, 1, 1, 1]} : vector<1x9x9x16xbf16> to vector<1x9x9x8xbf16>
    %4 = vector.extract_strided_slice %1 {offsets = [0, 0, 0, 8], sizes = [1, 9, 9, 8], strides = [1, 1, 1, 1]} : vector<1x9x9x16xbf16> to vector<1x9x9x8xbf16>
    %5 = vector.extract_strided_slice %2 {offsets = [0, 0, 0, 0], sizes = [1, 9, 9, 8], strides = [1, 1, 1, 1]} : vector<1x9x9x16xbf16> to vector<1x9x9x8xbf16>
    %6 = vector.extract_strided_slice %2 {offsets = [0, 0, 0, 8], sizes = [1, 9, 9, 8], strides = [1, 1, 1, 1]} : vector<1x9x9x16xbf16> to vector<1x9x9x8xbf16>
    %7 = vector.extract_strided_slice %3 {offsets = [0, 0, 0, 0], sizes = [1, 8, 8, 8], strides = [1, 1, 1, 1]} : vector<1x9x9x8xbf16> to vector<1x8x8x8xbf16>
    %8 = vector.extract_strided_slice %3 {offsets = [0, 0, 1, 0], sizes = [1, 8, 8, 8], strides = [1, 1, 1, 1]} : vector<1x9x9x8xbf16> to vector<1x8x8x8xbf16>
    %9 = arith.maximumf %7, %8 : vector<1x8x8x8xbf16>
    %10 = vector.extract_strided_slice %3 {offsets = [0, 1, 0, 0], sizes = [1, 8, 8, 8], strides = [1, 1, 1, 1]} : vector<1x9x9x8xbf16> to vector<1x8x8x8xbf16>
    %11 = arith.maximumf %9, %10 : vector<1x8x8x8xbf16>
    %12 = vector.extract_strided_slice %3 {offsets = [0, 1, 1, 0], sizes = [1, 8, 8, 8], strides = [1, 1, 1, 1]} : vector<1x9x9x8xbf16> to vector<1x8x8x8xbf16>
    %13 = arith.maximumf %11, %12 : vector<1x8x8x8xbf16>
    %14 = vector.extract_strided_slice %4 {offsets = [0, 0, 0, 0], sizes = [1, 8, 8, 8], strides = [1, 1, 1, 1]} : vector<1x9x9x8xbf16> to vector<1x8x8x8xbf16>
    %15 = arith.maximumf %13, %14 : vector<1x8x8x8xbf16>
    %16 = vector.extract_strided_slice %4 {offsets = [0, 1, 0, 0], sizes = [1, 8, 8, 8], strides = [1, 1, 1, 1]} : vector<1x9x9x8xbf16> to vector<1x8x8x8xbf16>
    %17 = arith.maximumf %15, %16 : vector<1x8x8x8xbf16>
    %18 = vector.extract_strided_slice %5 {offsets = [0, 0, 0, 0], sizes = [1, 8, 8, 8], strides = [1, 1, 1, 1]} : vector<1x9x9x8xbf16> to vector<1x8x8x8xbf16>
    %19 = arith.maximumf %17, %18 : vector<1x8x8x8xbf16>
    %20 = vector.extract_strided_slice %5 {offsets = [0, 0, 1, 0], sizes = [1, 8, 8, 8], strides = [1, 1, 1, 1]} : vector<1x9x9x8xbf16> to vector<1x8x8x8xbf16>
    %21 = arith.maximumf %19, %20 : vector<1x8x8x8xbf16>
    %22 = vector.extract_strided_slice %6 {offsets = [0, 0, 0, 0], sizes = [1, 8, 8, 8], strides = [1, 1, 1, 1]} : vector<1x9x9x8xbf16> to vector<1x8x8x8xbf16>
    %23 = arith.maximumf %21, %22 : vector<1x8x8x8xbf16>
    %c0_3 = arith.constant 0 : index
    %c0_4 = arith.constant 0 : index
    %c0_5 = arith.constant 0 : index
    %c0_6 = arith.constant 0 : index
    %24 = vector.load %arg2[%c0_3, %c0_4, %c0_5, %c0_6] : memref<1x8x8x8xbf16, #tpu.memory_space<vmem>>, vector<1x8x8x8xbf16>
    tpu.vector_store %arg2[%c0_3, %c0_4, %c0_5, %c0_6], %23 {strides = array<i32>} : memref<1x8x8x8xbf16, #tpu.memory_space<vmem>>, vector<1x8x8x8xbf16>,
    return
  }
  func.func @transform_0(%arg0: i32) -> (i32, i32, i32, i32) {
    %c0_i32 = arith.constant 0 : i32
    %c0_i32_0 = arith.constant 0 : i32
    %c0_i32_1 = arith.constant 0 : i32
    %c0_i32_2 = arith.constant 0 : i32
    return %arg0, %c0_i32, %c0_i32_0, %c0_i32_1 : i32, i32, i32, i32
  }
  func.func @transform_1(%arg0: i32) -> (i32, i32, i32, i32) {
    %c0_i32 = arith.constant 0 : i32
    %c0_i32_0 = arith.constant 0 : i32
    %c0_i32_1 = arith.constant 0 : i32
    %c0_i32_2 = arith.constant 0 : i32
    return %arg0, %c0_i32, %c0_i32_0, %c0_i32_1 : i32, i32, i32, i32
  }
}

module attributes {stable_mosaic.version = 11 : i64} {
  func.func @kernel(%arg0: i32, %arg1: i32, %arg2: i32, %arg3: memref<64x8xbf16, #tpu.memory_space<vmem>>, %arg4: memref<8x128xbf16, #tpu.memory_space<vmem>>, %arg5: memref<1x128xf32, #tpu.memory_space<vmem>>, %arg6: memref<64x128xbf16, #tpu.memory_space<vmem>>, %arg7: memref<64x128xf32, #tpu.memory_space<vmem>>) attributes {dimension_semantics = [#tpu.dimension_semantics<parallel>, #tpu.dimension_semantics<parallel>, #tpu.dimension_semantics<arbitrary>], iteration_bounds = array<i64: 2, 1, 1>, scalar_prefetch = 0 : i64, scratch_operands = 1 : i64, tpu.core_type = #tpu.core_type<tc>, window_params = [{transform_indices = @transform_0, window_bounds = array<i64: 64, 8>}, {transform_indices = @transform_1, window_bounds = array<i64: 8, 128>}, {transform_indices = @transform_2, window_bounds = array<i64: 1, 128>}, {transform_indices = @transform_3, window_bounds = array<i64: 64, 128>}]} {
    %c0_i32 = arith.constant 0 : i32
    %0 = arith.cmpi eq, %arg2, %c0_i32 : i32
    %1 = arith.extui %0 : i1 to i32
    %c0_i32_0 = arith.constant 0 : i32
    %2 = arith.cmpi ne, %1, %c0_i32_0 : i32
    scf.if %2 {
      %cst_10 = arith.constant 0.000000e+00 : f32
      %12 = vector.broadcast %cst_10 : f32 to vector<64x128xf32>
      %c0_11 = arith.constant 0 : index
      %c0_12 = arith.constant 0 : index
      %13 = vector.load %arg7[%c0_11, %c0_12] : memref<64x128xf32, #tpu.memory_space<vmem>>, vector<64x128xf32>
      tpu.vector_store %arg7[%c0_11, %c0_12], %12 {strides = array<i32>} : memref<64x128xf32, #tpu.memory_space<vmem>>, vector<64x128xf32>,
    } else {
    }
    %c0 = arith.constant 0 : index
    %c0_1 = arith.constant 0 : index
    %3 = vector.load %arg7[%c0, %c0_1] : memref<64x128xf32, #tpu.memory_space<vmem>>, vector<64x128xf32>
    %c0_2 = arith.constant 0 : index
    %c0_3 = arith.constant 0 : index
    %4 = vector.load %arg3[%c0_2, %c0_3] : memref<64x8xbf16, #tpu.memory_space<vmem>>, vector<64x8xbf16>
    %c0_4 = arith.constant 0 : index
    %c0_5 = arith.constant 0 : index
    %5 = vector.load %arg4[%c0_4, %c0_5] : memref<8x128xbf16, #tpu.memory_space<vmem>>, vector<8x128xbf16>
    %cst = arith.constant dense<0.000000e+00> : vector<64x128xf32>
    %6 = tpu.matmul %4, %5, %cst {dimension_numbers = #tpu.dot_dimension_numbers<[1], [0], [0], [1], [0, 0, 1, 1], [], []>} : vector<64x8xbf16>, vector<8x128xbf16>, vector<64x128xf32> -> vector<64x128xf32>
    %7 = arith.addf %3, %6 : vector<64x128xf32>
    %c0_6 = arith.constant 0 : index
    %c0_7 = arith.constant 0 : index
    %8 = vector.load %arg7[%c0_6, %c0_7] : memref<64x128xf32, #tpu.memory_space<vmem>>, vector<64x128xf32>
    tpu.vector_store %arg7[%c0_6, %c0_7], %7 {strides = array<i32>} : memref<64x128xf32, #tpu.memory_space<vmem>>, vector<64x128xf32>,
    %c0_i32_8 = arith.constant 0 : i32
    %9 = arith.cmpi eq, %arg2, %c0_i32_8 : i32
    %10 = arith.extui %9 : i1 to i32
    %c0_i32_9 = arith.constant 0 : i32
    %11 = arith.cmpi ne, %10, %c0_i32_9 : i32
    scf.if %11 {
      %c0_10 = arith.constant 0 : index
      %c0_11 = arith.constant 0 : index
      %12 = vector.load %arg7[%c0_10, %c0_11] : memref<64x128xf32, #tpu.memory_space<vmem>>, vector<64x128xf32>
      %c0_12 = arith.constant 0 : index
      %c0_13 = arith.constant 0 : index
      %13 = vector.load %arg5[%c0_12, %c0_13] : memref<1x128xf32, #tpu.memory_space<vmem>>, vector<1x128xf32>
      %14 = vector.broadcast %13 : vector<1x128xf32> to vector<64x128xf32>
      %15 = arith.addf %12, %14 : vector<64x128xf32>
      %cst_14 = arith.constant 0.000000e+00 : f32
      %16 = vector.broadcast %cst_14 : f32 to vector<64x128xf32>
      %17 = arith.maximumf %15, %16 : vector<64x128xf32>
      %18 = arith.truncf %17 : vector<64x128xf32> to vector<64x128xbf16>
      %c0_15 = arith.constant 0 : index
      %c0_16 = arith.constant 0 : index
      %19 = vector.load %arg6[%c0_15, %c0_16] : memref<64x128xbf16, #tpu.memory_space<vmem>>, vector<64x128xbf16>
      tpu.vector_store %arg6[%c0_15, %c0_16], %18 {strides = array<i32>} : memref<64x128xbf16, #tpu.memory_space<vmem>>, vector<64x128xbf16>,
    } else {
    }
    return
  }
  func.func @transform_0(%arg0: i32, %arg1: i32, %arg2: i32) -> (i32, i32) {
    %c0_i32 = arith.constant 0 : i32
    return %arg0, %arg2 : i32, i32
  }
  func.func @transform_1(%arg0: i32, %arg1: i32, %arg2: i32) -> (i32, i32) {
    %c0_i32 = arith.constant 0 : i32
    return %arg2, %arg1 : i32, i32
  }
  func.func @transform_2(%arg0: i32, %arg1: i32, %arg2: i32) -> (i32, i32) {
    %c0_i32 = arith.constant 0 : i32
    %c0_i32_0 = arith.constant 0 : i32
    return %c0_i32, %arg1 : i32, i32
  }
  func.func @transform_3(%arg0: i32, %arg1: i32, %arg2: i32) -> (i32, i32) {
    %c0_i32 = arith.constant 0 : i32
    return %arg0, %arg1 : i32, i32
  }
}

module attributes {stable_mosaic.version = 11 : i64} {
  func.func @kernel(%arg0: i32, %arg1: i32, %arg2: i32, %arg3: memref<64x36xbf16, #tpu.memory_space<vmem>>, %arg4: memref<36x128xbf16, #tpu.memory_space<vmem>>, %arg5: memref<1x128xf32, #tpu.memory_space<vmem>>, %arg6: memref<64x128xbf16, #tpu.memory_space<vmem>>, %arg7: memref<64x128xf32, #tpu.memory_space<vmem>>) attributes {dimension_semantics = [#tpu.dimension_semantics<parallel>, #tpu.dimension_semantics<parallel>, #tpu.dimension_semantics<arbitrary>], iteration_bounds = array<i64: 2, 1, 1>, scalar_prefetch = 0 : i64, scratch_operands = 1 : i64, tpu.core_type = #tpu.core_type<tc>, window_params = [{transform_indices = @transform_0, window_bounds = array<i64: 64, 36>}, {transform_indices = @transform_1, window_bounds = array<i64: 36, 128>}, {transform_indices = @transform_2, window_bounds = array<i64: 1, 128>}, {transform_indices = @transform_3, window_bounds = array<i64: 64, 128>}]} {
    %c0_i32 = arith.constant 0 : i32
    %0 = arith.cmpi eq, %arg2, %c0_i32 : i32
    %1 = arith.extui %0 : i1 to i32
    %c0_i32_0 = arith.constant 0 : i32
    %2 = arith.cmpi ne, %1, %c0_i32_0 : i32
    scf.if %2 {
      %cst_10 = arith.constant 0.000000e+00 : f32
      %12 = vector.broadcast %cst_10 : f32 to vector<64x128xf32>
      %c0_11 = arith.constant 0 : index
      %c0_12 = arith.constant 0 : index
      %13 = vector.load %arg7[%c0_11, %c0_12] : memref<64x128xf32, #tpu.memory_space<vmem>>, vector<64x128xf32>
      tpu.vector_store %arg7[%c0_11, %c0_12], %12 {strides = array<i32>} : memref<64x128xf32, #tpu.memory_space<vmem>>, vector<64x128xf32>,
    } else {
    }
    %c0 = arith.constant 0 : index
    %c0_1 = arith.constant 0 : index
    %3 = vector.load %arg7[%c0, %c0_1] : memref<64x128xf32, #tpu.memory_space<vmem>>, vector<64x128xf32>
    %c0_2 = arith.constant 0 : index
    %c0_3 = arith.constant 0 : index
    %4 = vector.load %arg3[%c0_2, %c0_3] : memref<64x36xbf16, #tpu.memory_space<vmem>>, vector<64x36xbf16>
    %c0_4 = arith.constant 0 : index
    %c0_5 = arith.constant 0 : index
    %5 = vector.load %arg4[%c0_4, %c0_5] : memref<36x128xbf16, #tpu.memory_space<vmem>>, vector<36x128xbf16>
    %cst = arith.constant dense<0.000000e+00> : vector<64x128xf32>
    %6 = tpu.matmul %4, %5, %cst {dimension_numbers = #tpu.dot_dimension_numbers<[1], [0], [0], [1], [0, 0, 1, 1], [], []>} : vector<64x36xbf16>, vector<36x128xbf16>, vector<64x128xf32> -> vector<64x128xf32>
    %7 = arith.addf %3, %6 : vector<64x128xf32>
    %c0_6 = arith.constant 0 : index
    %c0_7 = arith.constant 0 : index
    %8 = vector.load %arg7[%c0_6, %c0_7] : memref<64x128xf32, #tpu.memory_space<vmem>>, vector<64x128xf32>
    tpu.vector_store %arg7[%c0_6, %c0_7], %7 {strides = array<i32>} : memref<64x128xf32, #tpu.memory_space<vmem>>, vector<64x128xf32>,
    %c0_i32_8 = arith.constant 0 : i32
    %9 = arith.cmpi eq, %arg2, %c0_i32_8 : i32
    %10 = arith.extui %9 : i1 to i32
    %c0_i32_9 = arith.constant 0 : i32
    %11 = arith.cmpi ne, %10, %c0_i32_9 : i32
    scf.if %11 {
      %c0_10 = arith.constant 0 : index
      %c0_11 = arith.constant 0 : index
      %12 = vector.load %arg7[%c0_10, %c0_11] : memref<64x128xf32, #tpu.memory_space<vmem>>, vector<64x128xf32>
      %c0_12 = arith.constant 0 : index
      %c0_13 = arith.constant 0 : index
      %13 = vector.load %arg5[%c0_12, %c0_13] : memref<1x128xf32, #tpu.memory_space<vmem>>, vector<1x128xf32>
      %14 = vector.broadcast %13 : vector<1x128xf32> to vector<64x128xf32>
      %15 = arith.addf %12, %14 : vector<64x128xf32>
      %cst_14 = arith.constant 0.000000e+00 : f32
      %16 = vector.broadcast %cst_14 : f32 to vector<64x128xf32>
      %17 = arith.maximumf %15, %16 : vector<64x128xf32>
      %18 = arith.truncf %17 : vector<64x128xf32> to vector<64x128xbf16>
      %c0_15 = arith.constant 0 : index
      %c0_16 = arith.constant 0 : index
      %19 = vector.load %arg6[%c0_15, %c0_16] : memref<64x128xbf16, #tpu.memory_space<vmem>>, vector<64x128xbf16>
      tpu.vector_store %arg6[%c0_15, %c0_16], %18 {strides = array<i32>} : memref<64x128xbf16, #tpu.memory_space<vmem>>, vector<64x128xbf16>,
    } else {
    }
    return
  }
  func.func @transform_0(%arg0: i32, %arg1: i32, %arg2: i32) -> (i32, i32) {
    %c0_i32 = arith.constant 0 : i32
    return %arg0, %arg2 : i32, i32
  }
  func.func @transform_1(%arg0: i32, %arg1: i32, %arg2: i32) -> (i32, i32) {
    %c0_i32 = arith.constant 0 : i32
    return %arg2, %arg1 : i32, i32
  }
  func.func @transform_2(%arg0: i32, %arg1: i32, %arg2: i32) -> (i32, i32) {
    %c0_i32 = arith.constant 0 : i32
    %c0_i32_0 = arith.constant 0 : i32
    return %c0_i32, %arg1 : i32, i32
  }
  func.func @transform_3(%arg0: i32, %arg1: i32, %arg2: i32) -> (i32, i32) {
    %c0_i32 = arith.constant 0 : i32
    return %arg0, %arg1 : i32, i32
  }
}

module attributes {stable_mosaic.version = 11 : i64} {
  func.func @kernel(%arg0: i32, %arg1: i32, %arg2: i32, %arg3: memref<64x8xbf16, #tpu.memory_space<vmem>>, %arg4: memref<8x128xbf16, #tpu.memory_space<vmem>>, %arg5: memref<1x128xf32, #tpu.memory_space<vmem>>, %arg6: memref<64x128xbf16, #tpu.memory_space<vmem>>, %arg7: memref<64x128xf32, #tpu.memory_space<vmem>>) attributes {dimension_semantics = [#tpu.dimension_semantics<parallel>, #tpu.dimension_semantics<parallel>, #tpu.dimension_semantics<arbitrary>], iteration_bounds = array<i64: 2, 1, 1>, scalar_prefetch = 0 : i64, scratch_operands = 1 : i64, tpu.core_type = #tpu.core_type<tc>, window_params = [{transform_indices = @transform_0, window_bounds = array<i64: 64, 8>}, {transform_indices = @transform_1, window_bounds = array<i64: 8, 128>}, {transform_indices = @transform_2, window_bounds = array<i64: 1, 128>}, {transform_indices = @transform_3, window_bounds = array<i64: 64, 128>}]} {
    %c0_i32 = arith.constant 0 : i32
    %0 = arith.cmpi eq, %arg2, %c0_i32 : i32
    %1 = arith.extui %0 : i1 to i32
    %c0_i32_0 = arith.constant 0 : i32
    %2 = arith.cmpi ne, %1, %c0_i32_0 : i32
    scf.if %2 {
      %cst_10 = arith.constant 0.000000e+00 : f32
      %12 = vector.broadcast %cst_10 : f32 to vector<64x128xf32>
      %c0_11 = arith.constant 0 : index
      %c0_12 = arith.constant 0 : index
      %13 = vector.load %arg7[%c0_11, %c0_12] : memref<64x128xf32, #tpu.memory_space<vmem>>, vector<64x128xf32>
      tpu.vector_store %arg7[%c0_11, %c0_12], %12 {strides = array<i32>} : memref<64x128xf32, #tpu.memory_space<vmem>>, vector<64x128xf32>,
    } else {
    }
    %c0 = arith.constant 0 : index
    %c0_1 = arith.constant 0 : index
    %3 = vector.load %arg7[%c0, %c0_1] : memref<64x128xf32, #tpu.memory_space<vmem>>, vector<64x128xf32>
    %c0_2 = arith.constant 0 : index
    %c0_3 = arith.constant 0 : index
    %4 = vector.load %arg3[%c0_2, %c0_3] : memref<64x8xbf16, #tpu.memory_space<vmem>>, vector<64x8xbf16>
    %c0_4 = arith.constant 0 : index
    %c0_5 = arith.constant 0 : index
    %5 = vector.load %arg4[%c0_4, %c0_5] : memref<8x128xbf16, #tpu.memory_space<vmem>>, vector<8x128xbf16>
    %cst = arith.constant dense<0.000000e+00> : vector<64x128xf32>
    %6 = tpu.matmul %4, %5, %cst {dimension_numbers = #tpu.dot_dimension_numbers<[1], [0], [0], [1], [0, 0, 1, 1], [], []>} : vector<64x8xbf16>, vector<8x128xbf16>, vector<64x128xf32> -> vector<64x128xf32>
    %7 = arith.addf %3, %6 : vector<64x128xf32>
    %c0_6 = arith.constant 0 : index
    %c0_7 = arith.constant 0 : index
    %8 = vector.load %arg7[%c0_6, %c0_7] : memref<64x128xf32, #tpu.memory_space<vmem>>, vector<64x128xf32>
    tpu.vector_store %arg7[%c0_6, %c0_7], %7 {strides = array<i32>} : memref<64x128xf32, #tpu.memory_space<vmem>>, vector<64x128xf32>,
    %c0_i32_8 = arith.constant 0 : i32
    %9 = arith.cmpi eq, %arg2, %c0_i32_8 : i32
    %10 = arith.extui %9 : i1 to i32
    %c0_i32_9 = arith.constant 0 : i32
    %11 = arith.cmpi ne, %10, %c0_i32_9 : i32
    scf.if %11 {
      %c0_10 = arith.constant 0 : index
      %c0_11 = arith.constant 0 : index
      %12 = vector.load %arg7[%c0_10, %c0_11] : memref<64x128xf32, #tpu.memory_space<vmem>>, vector<64x128xf32>
      %c0_12 = arith.constant 0 : index
      %c0_13 = arith.constant 0 : index
      %13 = vector.load %arg5[%c0_12, %c0_13] : memref<1x128xf32, #tpu.memory_space<vmem>>, vector<1x128xf32>
      %14 = vector.broadcast %13 : vector<1x128xf32> to vector<64x128xf32>
      %15 = arith.addf %12, %14 : vector<64x128xf32>
      %16 = arith.truncf %15 : vector<64x128xf32> to vector<64x128xbf16>
      %c0_14 = arith.constant 0 : index
      %c0_15 = arith.constant 0 : index
      %17 = vector.load %arg6[%c0_14, %c0_15] : memref<64x128xbf16, #tpu.memory_space<vmem>>, vector<64x128xbf16>
      tpu.vector_store %arg6[%c0_14, %c0_15], %16 {strides = array<i32>} : memref<64x128xbf16, #tpu.memory_space<vmem>>, vector<64x128xbf16>,
    } else {
    }
    return
  }
  func.func @transform_0(%arg0: i32, %arg1: i32, %arg2: i32) -> (i32, i32) {
    %c0_i32 = arith.constant 0 : i32
    return %arg0, %arg2 : i32, i32
  }
  func.func @transform_1(%arg0: i32, %arg1: i32, %arg2: i32) -> (i32, i32) {
    %c0_i32 = arith.constant 0 : i32
    return %arg2, %arg1 : i32, i32
  }
  func.func @transform_2(%arg0: i32, %arg1: i32, %arg2: i32) -> (i32, i32) {
    %c0_i32 = arith.constant 0 : i32
    %c0_i32_0 = arith.constant 0 : i32
    return %c0_i32, %arg1 : i32, i32
  }
  func.func @transform_3(%arg0: i32, %arg1: i32, %arg2: i32) -> (i32, i32) {
    %c0_i32 = arith.constant 0 : i32
    return %arg0, %arg1 : i32, i32
  }
}

module attributes {stable_mosaic.version = 11 : i64} {
  func.func @kernel(%arg0: i32, %arg1: i32, %arg2: i32, %arg3: memref<256x147xbf16, #tpu.memory_space<vmem>>, %arg4: memref<147x128xbf16, #tpu.memory_space<vmem>>, %arg5: memref<1x128xf32, #tpu.memory_space<vmem>>, %arg6: memref<256x128xbf16, #tpu.memory_space<vmem>>, %arg7: memref<256x128xf32, #tpu.memory_space<vmem>>) attributes {dimension_semantics = [#tpu.dimension_semantics<parallel>, #tpu.dimension_semantics<parallel>, #tpu.dimension_semantics<arbitrary>], iteration_bounds = array<i64: 2, 1, 1>, scalar_prefetch = 0 : i64, scratch_operands = 1 : i64, tpu.core_type = #tpu.core_type<tc>, window_params = [{transform_indices = @transform_0, window_bounds = array<i64: 256, 147>}, {transform_indices = @transform_1, window_bounds = array<i64: 147, 128>}, {transform_indices = @transform_2, window_bounds = array<i64: 1, 128>}, {transform_indices = @transform_3, window_bounds = array<i64: 256, 128>}]} {
    %c0_i32 = arith.constant 0 : i32
    %0 = arith.cmpi eq, %arg2, %c0_i32 : i32
    %1 = arith.extui %0 : i1 to i32
    %c0_i32_0 = arith.constant 0 : i32
    %2 = arith.cmpi ne, %1, %c0_i32_0 : i32
    scf.if %2 {
      %cst_10 = arith.constant 0.000000e+00 : f32
      %12 = vector.broadcast %cst_10 : f32 to vector<256x128xf32>
      %c0_11 = arith.constant 0 : index
      %c0_12 = arith.constant 0 : index
      %13 = vector.load %arg7[%c0_11, %c0_12] : memref<256x128xf32, #tpu.memory_space<vmem>>, vector<256x128xf32>
      tpu.vector_store %arg7[%c0_11, %c0_12], %12 {strides = array<i32>} : memref<256x128xf32, #tpu.memory_space<vmem>>, vector<256x128xf32>,
    } else {
    }
    %c0 = arith.constant 0 : index
    %c0_1 = arith.constant 0 : index
    %3 = vector.load %arg7[%c0, %c0_1] : memref<256x128xf32, #tpu.memory_space<vmem>>, vector<256x128xf32>
    %c0_2 = arith.constant 0 : index
    %c0_3 = arith.constant 0 : index
    %4 = vector.load %arg3[%c0_2, %c0_3] : memref<256x147xbf16, #tpu.memory_space<vmem>>, vector<256x147xbf16>
    %c0_4 = arith.constant 0 : index
    %c0_5 = arith.constant 0 : index
    %5 = vector.load %arg4[%c0_4, %c0_5] : memref<147x128xbf16, #tpu.memory_space<vmem>>, vector<147x128xbf16>
    %cst = arith.constant dense<0.000000e+00> : vector<256x128xf32>
    %6 = tpu.matmul %4, %5, %cst {dimension_numbers = #tpu.dot_dimension_numbers<[1], [0], [0], [1], [0, 0, 1, 1], [], []>} : vector<256x147xbf16>, vector<147x128xbf16>, vector<256x128xf32> -> vector<256x128xf32>
    %7 = arith.addf %3, %6 : vector<256x128xf32>
    %c0_6 = arith.constant 0 : index
    %c0_7 = arith.constant 0 : index
    %8 = vector.load %arg7[%c0_6, %c0_7] : memref<256x128xf32, #tpu.memory_space<vmem>>, vector<256x128xf32>
    tpu.vector_store %arg7[%c0_6, %c0_7], %7 {strides = array<i32>} : memref<256x128xf32, #tpu.memory_space<vmem>>, vector<256x128xf32>,
    %c0_i32_8 = arith.constant 0 : i32
    %9 = arith.cmpi eq, %arg2, %c0_i32_8 : i32
    %10 = arith.extui %9 : i1 to i32
    %c0_i32_9 = arith.constant 0 : i32
    %11 = arith.cmpi ne, %10, %c0_i32_9 : i32
    scf.if %11 {
      %c0_10 = arith.constant 0 : index
      %c0_11 = arith.constant 0 : index
      %12 = vector.load %arg7[%c0_10, %c0_11] : memref<256x128xf32, #tpu.memory_space<vmem>>, vector<256x128xf32>
      %c0_12 = arith.constant 0 : index
      %c0_13 = arith.constant 0 : index
      %13 = vector.load %arg5[%c0_12, %c0_13] : memref<1x128xf32, #tpu.memory_space<vmem>>, vector<1x128xf32>
      %14 = vector.broadcast %13 : vector<1x128xf32> to vector<256x128xf32>
      %15 = arith.addf %12, %14 : vector<256x128xf32>
      %cst_14 = arith.constant 0.000000e+00 : f32
      %16 = vector.broadcast %cst_14 : f32 to vector<256x128xf32>
      %17 = arith.maximumf %15, %16 : vector<256x128xf32>
      %18 = arith.truncf %17 : vector<256x128xf32> to vector<256x128xbf16>
      %c0_15 = arith.constant 0 : index
      %c0_16 = arith.constant 0 : index
      %19 = vector.load %arg6[%c0_15, %c0_16] : memref<256x128xbf16, #tpu.memory_space<vmem>>, vector<256x128xbf16>
      tpu.vector_store %arg6[%c0_15, %c0_16], %18 {strides = array<i32>} : memref<256x128xbf16, #tpu.memory_space<vmem>>, vector<256x128xbf16>,
    } else {
    }
    return
  }
  func.func @transform_0(%arg0: i32, %arg1: i32, %arg2: i32) -> (i32, i32) {
    %c0_i32 = arith.constant 0 : i32
    return %arg0, %arg2 : i32, i32
  }
  func.func @transform_1(%arg0: i32, %arg1: i32, %arg2: i32) -> (i32, i32) {
    %c0_i32 = arith.constant 0 : i32
    return %arg2, %arg1 : i32, i32
  }
  func.func @transform_2(%arg0: i32, %arg1: i32, %arg2: i32) -> (i32, i32) {
    %c0_i32 = arith.constant 0 : i32
    %c0_i32_0 = arith.constant 0 : i32
    return %c0_i32, %arg1 : i32, i32
  }
  func.func @transform_3(%arg0: i32, %arg1: i32, %arg2: i32) -> (i32, i32) {
    %c0_i32 = arith.constant 0 : i32
    return %arg0, %arg1 : i32, i32
  }
}

module attributes {stable_mosaic.version = 11 : i64} {
  func.func @kernel(%arg0: i32, %arg1: i32, %arg2: i32, %arg3: memref<64x4xbf16, #tpu.memory_space<vmem>>, %arg4: memref<4x128xbf16, #tpu.memory_space<vmem>>, %arg5: memref<1x128xf32, #tpu.memory_space<vmem>>, %arg6: memref<64x128xbf16, #tpu.memory_space<vmem>>, %arg7: memref<64x128xbf16, #tpu.memory_space<vmem>>, %arg8: memref<64x128xf32, #tpu.memory_space<vmem>>) attributes {dimension_semantics = [#tpu.dimension_semantics<parallel>, #tpu.dimension_semantics<parallel>, #tpu.dimension_semantics<arbitrary>], iteration_bounds = array<i64: 2, 1, 1>, scalar_prefetch = 0 : i64, scratch_operands = 1 : i64, tpu.core_type = #tpu.core_type<tc>, window_params = [{transform_indices = @transform_0, window_bounds = array<i64: 64, 4>}, {transform_indices = @transform_1, window_bounds = array<i64: 4, 128>}, {transform_indices = @transform_2, window_bounds = array<i64: 1, 128>}, {transform_indices = @transform_3, window_bounds = array<i64: 64, 128>}, {transform_indices = @transform_4, window_bounds = array<i64: 64, 128>}]} {
    %c0_i32 = arith.constant 0 : i32
    %0 = arith.cmpi eq, %arg2, %c0_i32 : i32
    %1 = arith.extui %0 : i1 to i32
    %c0_i32_0 = arith.constant 0 : i32
    %2 = arith.cmpi ne, %1, %c0_i32_0 : i32
    scf.if %2 {
      %cst_10 = arith.constant 0.000000e+00 : f32
      %12 = vector.broadcast %cst_10 : f32 to vector<64x128xf32>
      %c0_11 = arith.constant 0 : index
      %c0_12 = arith.constant 0 : index
      %13 = vector.load %arg8[%c0_11, %c0_12] : memref<64x128xf32, #tpu.memory_space<vmem>>, vector<64x128xf32>
      tpu.vector_store %arg8[%c0_11, %c0_12], %12 {strides = array<i32>} : memref<64x128xf32, #tpu.memory_space<vmem>>, vector<64x128xf32>,
    } else {
    }
    %c0 = arith.constant 0 : index
    %c0_1 = arith.constant 0 : index
    %3 = vector.load %arg8[%c0, %c0_1] : memref<64x128xf32, #tpu.memory_space<vmem>>, vector<64x128xf32>
    %c0_2 = arith.constant 0 : index
    %c0_3 = arith.constant 0 : index
    %4 = vector.load %arg3[%c0_2, %c0_3] : memref<64x4xbf16, #tpu.memory_space<vmem>>, vector<64x4xbf16>
    %c0_4 = arith.constant 0 : index
    %c0_5 = arith.constant 0 : index
    %5 = vector.load %arg4[%c0_4, %c0_5] : memref<4x128xbf16, #tpu.memory_space<vmem>>, vector<4x128xbf16>
    %cst = arith.constant dense<0.000000e+00> : vector<64x128xf32>
    %6 = tpu.matmul %4, %5, %cst {dimension_numbers = #tpu.dot_dimension_numbers<[1], [0], [0], [1], [0, 0, 1, 1], [], []>} : vector<64x4xbf16>, vector<4x128xbf16>, vector<64x128xf32> -> vector<64x128xf32>
    %7 = arith.addf %3, %6 : vector<64x128xf32>
    %c0_6 = arith.constant 0 : index
    %c0_7 = arith.constant 0 : index
    %8 = vector.load %arg8[%c0_6, %c0_7] : memref<64x128xf32, #tpu.memory_space<vmem>>, vector<64x128xf32>
    tpu.vector_store %arg8[%c0_6, %c0_7], %7 {strides = array<i32>} : memref<64x128xf32, #tpu.memory_space<vmem>>, vector<64x128xf32>,
    %c0_i32_8 = arith.constant 0 : i32
    %9 = arith.cmpi eq, %arg2, %c0_i32_8 : i32
    %10 = arith.extui %9 : i1 to i32
    %c0_i32_9 = arith.constant 0 : i32
    %11 = arith.cmpi ne, %10, %c0_i32_9 : i32
    scf.if %11 {
      %c0_10 = arith.constant 0 : index
      %c0_11 = arith.constant 0 : index
      %12 = vector.load %arg8[%c0_10, %c0_11] : memref<64x128xf32, #tpu.memory_space<vmem>>, vector<64x128xf32>
      %c0_12 = arith.constant 0 : index
      %c0_13 = arith.constant 0 : index
      %13 = vector.load %arg5[%c0_12, %c0_13] : memref<1x128xf32, #tpu.memory_space<vmem>>, vector<1x128xf32>
      %14 = vector.broadcast %13 : vector<1x128xf32> to vector<64x128xf32>
      %15 = arith.addf %12, %14 : vector<64x128xf32>
      %c0_14 = arith.constant 0 : index
      %c0_15 = arith.constant 0 : index
      %16 = vector.load %arg6[%c0_14, %c0_15] : memref<64x128xbf16, #tpu.memory_space<vmem>>, vector<64x128xbf16>
      %17 = arith.extf %16 : vector<64x128xbf16> to vector<64x128xf32>
      %18 = arith.addf %15, %17 : vector<64x128xf32>
      %cst_16 = arith.constant 0.000000e+00 : f32
      %19 = vector.broadcast %cst_16 : f32 to vector<64x128xf32>
      %20 = arith.maximumf %18, %19 : vector<64x128xf32>
      %21 = arith.truncf %20 : vector<64x128xf32> to vector<64x128xbf16>
      %c0_17 = arith.constant 0 : index
      %c0_18 = arith.constant 0 : index
      %22 = vector.load %arg7[%c0_17, %c0_18] : memref<64x128xbf16, #tpu.memory_space<vmem>>, vector<64x128xbf16>
      tpu.vector_store %arg7[%c0_17, %c0_18], %21 {strides = array<i32>} : memref<64x128xbf16, #tpu.memory_space<vmem>>, vector<64x128xbf16>,
    } else {
    }
    return
  }
  func.func @transform_0(%arg0: i32, %arg1: i32, %arg2: i32) -> (i32, i32) {
    %c0_i32 = arith.constant 0 : i32
    return %arg0, %arg2 : i32, i32
  }
  func.func @transform_1(%arg0: i32, %arg1: i32, %arg2: i32) -> (i32, i32) {
    %c0_i32 = arith.constant 0 : i32
    return %arg2, %arg1 : i32, i32
  }
  func.func @transform_2(%arg0: i32, %arg1: i32, %arg2: i32) -> (i32, i32) {
    %c0_i32 = arith.constant 0 : i32
    %c0_i32_0 = arith.constant 0 : i32
    return %c0_i32, %arg1 : i32, i32
  }
  func.func @transform_3(%arg0: i32, %arg1: i32, %arg2: i32) -> (i32, i32) {
    %c0_i32 = arith.constant 0 : i32
    return %arg0, %arg1 : i32, i32
  }
  func.func @transform_4(%arg0: i32, %arg1: i32, %arg2: i32) -> (i32, i32) {
    %c0_i32 = arith.constant 0 : i32
    return %arg0, %arg1 : i32, i32
  }
}

module attributes {stable_mosaic.version = 11 : i64} {
  func.func @kernel(%arg0: i32, %arg1: i32, %arg2: i32, %arg3: memref<64x16xbf16, #tpu.memory_space<vmem>>, %arg4: memref<16x128xbf16, #tpu.memory_space<vmem>>, %arg5: memref<1x128xf32, #tpu.memory_space<vmem>>, %arg6: memref<64x128xbf16, #tpu.memory_space<vmem>>, %arg7: memref<64x128xf32, #tpu.memory_space<vmem>>) attributes {dimension_semantics = [#tpu.dimension_semantics<parallel>, #tpu.dimension_semantics<parallel>, #tpu.dimension_semantics<arbitrary>], iteration_bounds = array<i64: 2, 1, 1>, scalar_prefetch = 0 : i64, scratch_operands = 1 : i64, tpu.core_type = #tpu.core_type<tc>, window_params = [{transform_indices = @transform_0, window_bounds = array<i64: 64, 16>}, {transform_indices = @transform_1, window_bounds = array<i64: 16, 128>}, {transform_indices = @transform_2, window_bounds = array<i64: 1, 128>}, {transform_indices = @transform_3, window_bounds = array<i64: 64, 128>}]} {
    %c0_i32 = arith.constant 0 : i32
    %0 = arith.cmpi eq, %arg2, %c0_i32 : i32
    %1 = arith.extui %0 : i1 to i32
    %c0_i32_0 = arith.constant 0 : i32
    %2 = arith.cmpi ne, %1, %c0_i32_0 : i32
    scf.if %2 {
      %cst_10 = arith.constant 0.000000e+00 : f32
      %12 = vector.broadcast %cst_10 : f32 to vector<64x128xf32>
      %c0_11 = arith.constant 0 : index
      %c0_12 = arith.constant 0 : index
      %13 = vector.load %arg7[%c0_11, %c0_12] : memref<64x128xf32, #tpu.memory_space<vmem>>, vector<64x128xf32>
      tpu.vector_store %arg7[%c0_11, %c0_12], %12 {strides = array<i32>} : memref<64x128xf32, #tpu.memory_space<vmem>>, vector<64x128xf32>,
    } else {
    }
    %c0 = arith.constant 0 : index
    %c0_1 = arith.constant 0 : index
    %3 = vector.load %arg7[%c0, %c0_1] : memref<64x128xf32, #tpu.memory_space<vmem>>, vector<64x128xf32>
    %c0_2 = arith.constant 0 : index
    %c0_3 = arith.constant 0 : index
    %4 = vector.load %arg3[%c0_2, %c0_3] : memref<64x16xbf16, #tpu.memory_space<vmem>>, vector<64x16xbf16>
    %c0_4 = arith.constant 0 : index
    %c0_5 = arith.constant 0 : index
    %5 = vector.load %arg4[%c0_4, %c0_5] : memref<16x128xbf16, #tpu.memory_space<vmem>>, vector<16x128xbf16>
    %cst = arith.constant dense<0.000000e+00> : vector<64x128xf32>
    %6 = tpu.matmul %4, %5, %cst {dimension_numbers = #tpu.dot_dimension_numbers<[1], [0], [0], [1], [0, 0, 1, 1], [], []>} : vector<64x16xbf16>, vector<16x128xbf16>, vector<64x128xf32> -> vector<64x128xf32>
    %7 = arith.addf %3, %6 : vector<64x128xf32>
    %c0_6 = arith.constant 0 : index
    %c0_7 = arith.constant 0 : index
    %8 = vector.load %arg7[%c0_6, %c0_7] : memref<64x128xf32, #tpu.memory_space<vmem>>, vector<64x128xf32>
    tpu.vector_store %arg7[%c0_6, %c0_7], %7 {strides = array<i32>} : memref<64x128xf32, #tpu.memory_space<vmem>>, vector<64x128xf32>,
    %c0_i32_8 = arith.constant 0 : i32
    %9 = arith.cmpi eq, %arg2, %c0_i32_8 : i32
    %10 = arith.extui %9 : i1 to i32
    %c0_i32_9 = arith.constant 0 : i32
    %11 = arith.cmpi ne, %10, %c0_i32_9 : i32
    scf.if %11 {
      %c0_10 = arith.constant 0 : index
      %c0_11 = arith.constant 0 : index
      %12 = vector.load %arg7[%c0_10, %c0_11] : memref<64x128xf32, #tpu.memory_space<vmem>>, vector<64x128xf32>
      %c0_12 = arith.constant 0 : index
      %c0_13 = arith.constant 0 : index
      %13 = vector.load %arg5[%c0_12, %c0_13] : memref<1x128xf32, #tpu.memory_space<vmem>>, vector<1x128xf32>
      %14 = vector.broadcast %13 : vector<1x128xf32> to vector<64x128xf32>
      %15 = arith.addf %12, %14 : vector<64x128xf32>
      %cst_14 = arith.constant 0.000000e+00 : f32
      %16 = vector.broadcast %cst_14 : f32 to vector<64x128xf32>
      %17 = arith.maximumf %15, %16 : vector<64x128xf32>
      %18 = arith.truncf %17 : vector<64x128xf32> to vector<64x128xbf16>
      %c0_15 = arith.constant 0 : index
      %c0_16 = arith.constant 0 : index
      %19 = vector.load %arg6[%c0_15, %c0_16] : memref<64x128xbf16, #tpu.memory_space<vmem>>, vector<64x128xbf16>
      tpu.vector_store %arg6[%c0_15, %c0_16], %18 {strides = array<i32>} : memref<64x128xbf16, #tpu.memory_space<vmem>>, vector<64x128xbf16>,
    } else {
    }
    return
  }
  func.func @transform_0(%arg0: i32, %arg1: i32, %arg2: i32) -> (i32, i32) {
    %c0_i32 = arith.constant 0 : i32
    return %arg0, %arg2 : i32, i32
  }
  func.func @transform_1(%arg0: i32, %arg1: i32, %arg2: i32) -> (i32, i32) {
    %c0_i32 = arith.constant 0 : i32
    return %arg2, %arg1 : i32, i32
  }
  func.func @transform_2(%arg0: i32, %arg1: i32, %arg2: i32) -> (i32, i32) {
    %c0_i32 = arith.constant 0 : i32
    %c0_i32_0 = arith.constant 0 : i32
    return %c0_i32, %arg1 : i32, i32
  }
  func.func @transform_3(%arg0: i32, %arg1: i32, %arg2: i32) -> (i32, i32) {
    %c0_i32 = arith.constant 0 : i32
    return %arg0, %arg1 : i32, i32
  }
}

module attributes {stable_mosaic.version = 11 : i64} {
  func.func @kernel(%arg0: i32, %arg1: i32, %arg2: i32, %arg3: memref<16x72xbf16, #tpu.memory_space<vmem>>, %arg4: memref<72x128xbf16, #tpu.memory_space<vmem>>, %arg5: memref<1x128xf32, #tpu.memory_space<vmem>>, %arg6: memref<16x128xbf16, #tpu.memory_space<vmem>>, %arg7: memref<16x128xf32, #tpu.memory_space<vmem>>) attributes {dimension_semantics = [#tpu.dimension_semantics<parallel>, #tpu.dimension_semantics<parallel>, #tpu.dimension_semantics<arbitrary>], iteration_bounds = array<i64: 2, 1, 1>, scalar_prefetch = 0 : i64, scratch_operands = 1 : i64, tpu.core_type = #tpu.core_type<tc>, window_params = [{transform_indices = @transform_0, window_bounds = array<i64: 16, 72>}, {transform_indices = @transform_1, window_bounds = array<i64: 72, 128>}, {transform_indices = @transform_2, window_bounds = array<i64: 1, 128>}, {transform_indices = @transform_3, window_bounds = array<i64: 16, 128>}]} {
    %c0_i32 = arith.constant 0 : i32
    %0 = arith.cmpi eq, %arg2, %c0_i32 : i32
    %1 = arith.extui %0 : i1 to i32
    %c0_i32_0 = arith.constant 0 : i32
    %2 = arith.cmpi ne, %1, %c0_i32_0 : i32
    scf.if %2 {
      %cst_10 = arith.constant 0.000000e+00 : f32
      %12 = vector.broadcast %cst_10 : f32 to vector<16x128xf32>
      %c0_11 = arith.constant 0 : index
      %c0_12 = arith.constant 0 : index
      %13 = vector.load %arg7[%c0_11, %c0_12] : memref<16x128xf32, #tpu.memory_space<vmem>>, vector<16x128xf32>
      tpu.vector_store %arg7[%c0_11, %c0_12], %12 {strides = array<i32>} : memref<16x128xf32, #tpu.memory_space<vmem>>, vector<16x128xf32>,
    } else {
    }
    %c0 = arith.constant 0 : index
    %c0_1 = arith.constant 0 : index
    %3 = vector.load %arg7[%c0, %c0_1] : memref<16x128xf32, #tpu.memory_space<vmem>>, vector<16x128xf32>
    %c0_2 = arith.constant 0 : index
    %c0_3 = arith.constant 0 : index
    %4 = vector.load %arg3[%c0_2, %c0_3] : memref<16x72xbf16, #tpu.memory_space<vmem>>, vector<16x72xbf16>
    %c0_4 = arith.constant 0 : index
    %c0_5 = arith.constant 0 : index
    %5 = vector.load %arg4[%c0_4, %c0_5] : memref<72x128xbf16, #tpu.memory_space<vmem>>, vector<72x128xbf16>
    %cst = arith.constant dense<0.000000e+00> : vector<16x128xf32>
    %6 = tpu.matmul %4, %5, %cst {dimension_numbers = #tpu.dot_dimension_numbers<[1], [0], [0], [1], [0, 0, 1, 1], [], []>} : vector<16x72xbf16>, vector<72x128xbf16>, vector<16x128xf32> -> vector<16x128xf32>
    %7 = arith.addf %3, %6 : vector<16x128xf32>
    %c0_6 = arith.constant 0 : index
    %c0_7 = arith.constant 0 : index
    %8 = vector.load %arg7[%c0_6, %c0_7] : memref<16x128xf32, #tpu.memory_space<vmem>>, vector<16x128xf32>
    tpu.vector_store %arg7[%c0_6, %c0_7], %7 {strides = array<i32>} : memref<16x128xf32, #tpu.memory_space<vmem>>, vector<16x128xf32>,
    %c0_i32_8 = arith.constant 0 : i32
    %9 = arith.cmpi eq, %arg2, %c0_i32_8 : i32
    %10 = arith.extui %9 : i1 to i32
    %c0_i32_9 = arith.constant 0 : i32
    %11 = arith.cmpi ne, %10, %c0_i32_9 : i32
    scf.if %11 {
      %c0_10 = arith.constant 0 : index
      %c0_11 = arith.constant 0 : index
      %12 = vector.load %arg7[%c0_10, %c0_11] : memref<16x128xf32, #tpu.memory_space<vmem>>, vector<16x128xf32>
      %c0_12 = arith.constant 0 : index
      %c0_13 = arith.constant 0 : index
      %13 = vector.load %arg5[%c0_12, %c0_13] : memref<1x128xf32, #tpu.memory_space<vmem>>, vector<1x128xf32>
      %14 = vector.broadcast %13 : vector<1x128xf32> to vector<16x128xf32>
      %15 = arith.addf %12, %14 : vector<16x128xf32>
      %cst_14 = arith.constant 0.000000e+00 : f32
      %16 = vector.broadcast %cst_14 : f32 to vector<16x128xf32>
      %17 = arith.maximumf %15, %16 : vector<16x128xf32>
      %18 = arith.truncf %17 : vector<16x128xf32> to vector<16x128xbf16>
      %c0_15 = arith.constant 0 : index
      %c0_16 = arith.constant 0 : index
      %19 = vector.load %arg6[%c0_15, %c0_16] : memref<16x128xbf16, #tpu.memory_space<vmem>>, vector<16x128xbf16>
      tpu.vector_store %arg6[%c0_15, %c0_16], %18 {strides = array<i32>} : memref<16x128xbf16, #tpu.memory_space<vmem>>, vector<16x128xbf16>,
    } else {
    }
    return
  }
  func.func @transform_0(%arg0: i32, %arg1: i32, %arg2: i32) -> (i32, i32) {
    %c0_i32 = arith.constant 0 : i32
    return %arg0, %arg2 : i32, i32
  }
  func.func @transform_1(%arg0: i32, %arg1: i32, %arg2: i32) -> (i32, i32) {
    %c0_i32 = arith.constant 0 : i32
    return %arg2, %arg1 : i32, i32
  }
  func.func @transform_2(%arg0: i32, %arg1: i32, %arg2: i32) -> (i32, i32) {
    %c0_i32 = arith.constant 0 : i32
    %c0_i32_0 = arith.constant 0 : i32
    return %c0_i32, %arg1 : i32, i32
  }
  func.func @transform_3(%arg0: i32, %arg1: i32, %arg2: i32) -> (i32, i32) {
    %c0_i32 = arith.constant 0 : i32
    return %arg0, %arg1 : i32, i32
  }
}

module attributes {stable_mosaic.version = 11 : i64} {
  func.func @kernel(%arg0: i32, %arg1: i32, %arg2: i32, %arg3: memref<16x16xbf16, #tpu.memory_space<vmem>>, %arg4: memref<16x128xbf16, #tpu.memory_space<vmem>>, %arg5: memref<1x128xf32, #tpu.memory_space<vmem>>, %arg6: memref<16x128xbf16, #tpu.memory_space<vmem>>, %arg7: memref<16x128xf32, #tpu.memory_space<vmem>>) attributes {dimension_semantics = [#tpu.dimension_semantics<parallel>, #tpu.dimension_semantics<parallel>, #tpu.dimension_semantics<arbitrary>], iteration_bounds = array<i64: 2, 1, 1>, scalar_prefetch = 0 : i64, scratch_operands = 1 : i64, tpu.core_type = #tpu.core_type<tc>, window_params = [{transform_indices = @transform_0, window_bounds = array<i64: 16, 16>}, {transform_indices = @transform_1, window_bounds = array<i64: 16, 128>}, {transform_indices = @transform_2, window_bounds = array<i64: 1, 128>}, {transform_indices = @transform_3, window_bounds = array<i64: 16, 128>}]} {
    %c0_i32 = arith.constant 0 : i32
    %0 = arith.cmpi eq, %arg2, %c0_i32 : i32
    %1 = arith.extui %0 : i1 to i32
    %c0_i32_0 = arith.constant 0 : i32
    %2 = arith.cmpi ne, %1, %c0_i32_0 : i32
    scf.if %2 {
      %cst_10 = arith.constant 0.000000e+00 : f32
      %12 = vector.broadcast %cst_10 : f32 to vector<16x128xf32>
      %c0_11 = arith.constant 0 : index
      %c0_12 = arith.constant 0 : index
      %13 = vector.load %arg7[%c0_11, %c0_12] : memref<16x128xf32, #tpu.memory_space<vmem>>, vector<16x128xf32>
      tpu.vector_store %arg7[%c0_11, %c0_12], %12 {strides = array<i32>} : memref<16x128xf32, #tpu.memory_space<vmem>>, vector<16x128xf32>,
    } else {
    }
    %c0 = arith.constant 0 : index
    %c0_1 = arith.constant 0 : index
    %3 = vector.load %arg7[%c0, %c0_1] : memref<16x128xf32, #tpu.memory_space<vmem>>, vector<16x128xf32>
    %c0_2 = arith.constant 0 : index
    %c0_3 = arith.constant 0 : index
    %4 = vector.load %arg3[%c0_2, %c0_3] : memref<16x16xbf16, #tpu.memory_space<vmem>>, vector<16x16xbf16>
    %c0_4 = arith.constant 0 : index
    %c0_5 = arith.constant 0 : index
    %5 = vector.load %arg4[%c0_4, %c0_5] : memref<16x128xbf16, #tpu.memory_space<vmem>>, vector<16x128xbf16>
    %cst = arith.constant dense<0.000000e+00> : vector<16x128xf32>
    %6 = tpu.matmul %4, %5, %cst {dimension_numbers = #tpu.dot_dimension_numbers<[1], [0], [0], [1], [0, 0, 1, 1], [], []>} : vector<16x16xbf16>, vector<16x128xbf16>, vector<16x128xf32> -> vector<16x128xf32>
    %7 = arith.addf %3, %6 : vector<16x128xf32>
    %c0_6 = arith.constant 0 : index
    %c0_7 = arith.constant 0 : index
    %8 = vector.load %arg7[%c0_6, %c0_7] : memref<16x128xf32, #tpu.memory_space<vmem>>, vector<16x128xf32>
    tpu.vector_store %arg7[%c0_6, %c0_7], %7 {strides = array<i32>} : memref<16x128xf32, #tpu.memory_space<vmem>>, vector<16x128xf32>,
    %c0_i32_8 = arith.constant 0 : i32
    %9 = arith.cmpi eq, %arg2, %c0_i32_8 : i32
    %10 = arith.extui %9 : i1 to i32
    %c0_i32_9 = arith.constant 0 : i32
    %11 = arith.cmpi ne, %10, %c0_i32_9 : i32
    scf.if %11 {
      %c0_10 = arith.constant 0 : index
      %c0_11 = arith.constant 0 : index
      %12 = vector.load %arg7[%c0_10, %c0_11] : memref<16x128xf32, #tpu.memory_space<vmem>>, vector<16x128xf32>
      %c0_12 = arith.constant 0 : index
      %c0_13 = arith.constant 0 : index
      %13 = vector.load %arg5[%c0_12, %c0_13] : memref<1x128xf32, #tpu.memory_space<vmem>>, vector<1x128xf32>
      %14 = vector.broadcast %13 : vector<1x128xf32> to vector<16x128xf32>
      %15 = arith.addf %12, %14 : vector<16x128xf32>
      %16 = arith.truncf %15 : vector<16x128xf32> to vector<16x128xbf16>
      %c0_14 = arith.constant 0 : index
      %c0_15 = arith.constant 0 : index
      %17 = vector.load %arg6[%c0_14, %c0_15] : memref<16x128xbf16, #tpu.memory_space<vmem>>, vector<16x128xbf16>
      tpu.vector_store %arg6[%c0_14, %c0_15], %16 {strides = array<i32>} : memref<16x128xbf16, #tpu.memory_space<vmem>>, vector<16x128xbf16>,
    } else {
    }
    return
  }
  func.func @transform_0(%arg0: i32, %arg1: i32, %arg2: i32) -> (i32, i32) {
    %c0_i32 = arith.constant 0 : i32
    return %arg0, %arg2 : i32, i32
  }
  func.func @transform_1(%arg0: i32, %arg1: i32, %arg2: i32) -> (i32, i32) {
    %c0_i32 = arith.constant 0 : i32
    return %arg2, %arg1 : i32, i32
  }
  func.func @transform_2(%arg0: i32, %arg1: i32, %arg2: i32) -> (i32, i32) {
    %c0_i32 = arith.constant 0 : i32
    %c0_i32_0 = arith.constant 0 : i32
    return %c0_i32, %arg1 : i32, i32
  }
  func.func @transform_3(%arg0: i32, %arg1: i32, %arg2: i32) -> (i32, i32) {
    %c0_i32 = arith.constant 0 : i32
    return %arg0, %arg1 : i32, i32
  }
}

module attributes {stable_mosaic.version = 11 : i64} {
  func.func @kernel(%arg0: i32, %arg1: i32, %arg2: i32, %arg3: memref<16x8xbf16, #tpu.memory_space<vmem>>, %arg4: memref<8x128xbf16, #tpu.memory_space<vmem>>, %arg5: memref<1x128xf32, #tpu.memory_space<vmem>>, %arg6: memref<16x128xbf16, #tpu.memory_space<vmem>>, %arg7: memref<16x128xbf16, #tpu.memory_space<vmem>>, %arg8: memref<16x128xf32, #tpu.memory_space<vmem>>) attributes {dimension_semantics = [#tpu.dimension_semantics<parallel>, #tpu.dimension_semantics<parallel>, #tpu.dimension_semantics<arbitrary>], iteration_bounds = array<i64: 2, 1, 1>, scalar_prefetch = 0 : i64, scratch_operands = 1 : i64, tpu.core_type = #tpu.core_type<tc>, window_params = [{transform_indices = @transform_0, window_bounds = array<i64: 16, 8>}, {transform_indices = @transform_1, window_bounds = array<i64: 8, 128>}, {transform_indices = @transform_2, window_bounds = array<i64: 1, 128>}, {transform_indices = @transform_3, window_bounds = array<i64: 16, 128>}, {transform_indices = @transform_4, window_bounds = array<i64: 16, 128>}]} {
    %c0_i32 = arith.constant 0 : i32
    %0 = arith.cmpi eq, %arg2, %c0_i32 : i32
    %1 = arith.extui %0 : i1 to i32
    %c0_i32_0 = arith.constant 0 : i32
    %2 = arith.cmpi ne, %1, %c0_i32_0 : i32
    scf.if %2 {
      %cst_10 = arith.constant 0.000000e+00 : f32
      %12 = vector.broadcast %cst_10 : f32 to vector<16x128xf32>
      %c0_11 = arith.constant 0 : index
      %c0_12 = arith.constant 0 : index
      %13 = vector.load %arg8[%c0_11, %c0_12] : memref<16x128xf32, #tpu.memory_space<vmem>>, vector<16x128xf32>
      tpu.vector_store %arg8[%c0_11, %c0_12], %12 {strides = array<i32>} : memref<16x128xf32, #tpu.memory_space<vmem>>, vector<16x128xf32>,
    } else {
    }
    %c0 = arith.constant 0 : index
    %c0_1 = arith.constant 0 : index
    %3 = vector.load %arg8[%c0, %c0_1] : memref<16x128xf32, #tpu.memory_space<vmem>>, vector<16x128xf32>
    %c0_2 = arith.constant 0 : index
    %c0_3 = arith.constant 0 : index
    %4 = vector.load %arg3[%c0_2, %c0_3] : memref<16x8xbf16, #tpu.memory_space<vmem>>, vector<16x8xbf16>
    %c0_4 = arith.constant 0 : index
    %c0_5 = arith.constant 0 : index
    %5 = vector.load %arg4[%c0_4, %c0_5] : memref<8x128xbf16, #tpu.memory_space<vmem>>, vector<8x128xbf16>
    %cst = arith.constant dense<0.000000e+00> : vector<16x128xf32>
    %6 = tpu.matmul %4, %5, %cst {dimension_numbers = #tpu.dot_dimension_numbers<[1], [0], [0], [1], [0, 0, 1, 1], [], []>} : vector<16x8xbf16>, vector<8x128xbf16>, vector<16x128xf32> -> vector<16x128xf32>
    %7 = arith.addf %3, %6 : vector<16x128xf32>
    %c0_6 = arith.constant 0 : index
    %c0_7 = arith.constant 0 : index
    %8 = vector.load %arg8[%c0_6, %c0_7] : memref<16x128xf32, #tpu.memory_space<vmem>>, vector<16x128xf32>
    tpu.vector_store %arg8[%c0_6, %c0_7], %7 {strides = array<i32>} : memref<16x128xf32, #tpu.memory_space<vmem>>, vector<16x128xf32>,
    %c0_i32_8 = arith.constant 0 : i32
    %9 = arith.cmpi eq, %arg2, %c0_i32_8 : i32
    %10 = arith.extui %9 : i1 to i32
    %c0_i32_9 = arith.constant 0 : i32
    %11 = arith.cmpi ne, %10, %c0_i32_9 : i32
    scf.if %11 {
      %c0_10 = arith.constant 0 : index
      %c0_11 = arith.constant 0 : index
      %12 = vector.load %arg8[%c0_10, %c0_11] : memref<16x128xf32, #tpu.memory_space<vmem>>, vector<16x128xf32>
      %c0_12 = arith.constant 0 : index
      %c0_13 = arith.constant 0 : index
      %13 = vector.load %arg5[%c0_12, %c0_13] : memref<1x128xf32, #tpu.memory_space<vmem>>, vector<1x128xf32>
      %14 = vector.broadcast %13 : vector<1x128xf32> to vector<16x128xf32>
      %15 = arith.addf %12, %14 : vector<16x128xf32>
      %c0_14 = arith.constant 0 : index
      %c0_15 = arith.constant 0 : index
      %16 = vector.load %arg6[%c0_14, %c0_15] : memref<16x128xbf16, #tpu.memory_space<vmem>>, vector<16x128xbf16>
      %17 = arith.extf %16 : vector<16x128xbf16> to vector<16x128xf32>
      %18 = arith.addf %15, %17 : vector<16x128xf32>
      %cst_16 = arith.constant 0.000000e+00 : f32
      %19 = vector.broadcast %cst_16 : f32 to vector<16x128xf32>
      %20 = arith.maximumf %18, %19 : vector<16x128xf32>
      %21 = arith.truncf %20 : vector<16x128xf32> to vector<16x128xbf16>
      %c0_17 = arith.constant 0 : index
      %c0_18 = arith.constant 0 : index
      %22 = vector.load %arg7[%c0_17, %c0_18] : memref<16x128xbf16, #tpu.memory_space<vmem>>, vector<16x128xbf16>
      tpu.vector_store %arg7[%c0_17, %c0_18], %21 {strides = array<i32>} : memref<16x128xbf16, #tpu.memory_space<vmem>>, vector<16x128xbf16>,
    } else {
    }
    return
  }
  func.func @transform_0(%arg0: i32, %arg1: i32, %arg2: i32) -> (i32, i32) {
    %c0_i32 = arith.constant 0 : i32
    return %arg0, %arg2 : i32, i32
  }
  func.func @transform_1(%arg0: i32, %arg1: i32, %arg2: i32) -> (i32, i32) {
    %c0_i32 = arith.constant 0 : i32
    return %arg2, %arg1 : i32, i32
  }
  func.func @transform_2(%arg0: i32, %arg1: i32, %arg2: i32) -> (i32, i32) {
    %c0_i32 = arith.constant 0 : i32
    %c0_i32_0 = arith.constant 0 : i32
    return %c0_i32, %arg1 : i32, i32
  }
  func.func @transform_3(%arg0: i32, %arg1: i32, %arg2: i32) -> (i32, i32) {
    %c0_i32 = arith.constant 0 : i32
    return %arg0, %arg1 : i32, i32
  }
  func.func @transform_4(%arg0: i32, %arg1: i32, %arg2: i32) -> (i32, i32) {
    %c0_i32 = arith.constant 0 : i32
    return %arg0, %arg1 : i32, i32
  }
}

module attributes {stable_mosaic.version = 11 : i64} {
  func.func @kernel(%arg0: i32, %arg1: i32, %arg2: i32, %arg3: memref<16x32xbf16, #tpu.memory_space<vmem>>, %arg4: memref<32x128xbf16, #tpu.memory_space<vmem>>, %arg5: memref<1x128xf32, #tpu.memory_space<vmem>>, %arg6: memref<16x128xbf16, #tpu.memory_space<vmem>>, %arg7: memref<16x128xf32, #tpu.memory_space<vmem>>) attributes {dimension_semantics = [#tpu.dimension_semantics<parallel>, #tpu.dimension_semantics<parallel>, #tpu.dimension_semantics<arbitrary>], iteration_bounds = array<i64: 2, 1, 1>, scalar_prefetch = 0 : i64, scratch_operands = 1 : i64, tpu.core_type = #tpu.core_type<tc>, window_params = [{transform_indices = @transform_0, window_bounds = array<i64: 16, 32>}, {transform_indices = @transform_1, window_bounds = array<i64: 32, 128>}, {transform_indices = @transform_2, window_bounds = array<i64: 1, 128>}, {transform_indices = @transform_3, window_bounds = array<i64: 16, 128>}]} {
    %c0_i32 = arith.constant 0 : i32
    %0 = arith.cmpi eq, %arg2, %c0_i32 : i32
    %1 = arith.extui %0 : i1 to i32
    %c0_i32_0 = arith.constant 0 : i32
    %2 = arith.cmpi ne, %1, %c0_i32_0 : i32
    scf.if %2 {
      %cst_10 = arith.constant 0.000000e+00 : f32
      %12 = vector.broadcast %cst_10 : f32 to vector<16x128xf32>
      %c0_11 = arith.constant 0 : index
      %c0_12 = arith.constant 0 : index
      %13 = vector.load %arg7[%c0_11, %c0_12] : memref<16x128xf32, #tpu.memory_space<vmem>>, vector<16x128xf32>
      tpu.vector_store %arg7[%c0_11, %c0_12], %12 {strides = array<i32>} : memref<16x128xf32, #tpu.memory_space<vmem>>, vector<16x128xf32>,
    } else {
    }
    %c0 = arith.constant 0 : index
    %c0_1 = arith.constant 0 : index
    %3 = vector.load %arg7[%c0, %c0_1] : memref<16x128xf32, #tpu.memory_space<vmem>>, vector<16x128xf32>
    %c0_2 = arith.constant 0 : index
    %c0_3 = arith.constant 0 : index
    %4 = vector.load %arg3[%c0_2, %c0_3] : memref<16x32xbf16, #tpu.memory_space<vmem>>, vector<16x32xbf16>
    %c0_4 = arith.constant 0 : index
    %c0_5 = arith.constant 0 : index
    %5 = vector.load %arg4[%c0_4, %c0_5] : memref<32x128xbf16, #tpu.memory_space<vmem>>, vector<32x128xbf16>
    %cst = arith.constant dense<0.000000e+00> : vector<16x128xf32>
    %6 = tpu.matmul %4, %5, %cst {dimension_numbers = #tpu.dot_dimension_numbers<[1], [0], [0], [1], [0, 0, 1, 1], [], []>} : vector<16x32xbf16>, vector<32x128xbf16>, vector<16x128xf32> -> vector<16x128xf32>
    %7 = arith.addf %3, %6 : vector<16x128xf32>
    %c0_6 = arith.constant 0 : index
    %c0_7 = arith.constant 0 : index
    %8 = vector.load %arg7[%c0_6, %c0_7] : memref<16x128xf32, #tpu.memory_space<vmem>>, vector<16x128xf32>
    tpu.vector_store %arg7[%c0_6, %c0_7], %7 {strides = array<i32>} : memref<16x128xf32, #tpu.memory_space<vmem>>, vector<16x128xf32>,
    %c0_i32_8 = arith.constant 0 : i32
    %9 = arith.cmpi eq, %arg2, %c0_i32_8 : i32
    %10 = arith.extui %9 : i1 to i32
    %c0_i32_9 = arith.constant 0 : i32
    %11 = arith.cmpi ne, %10, %c0_i32_9 : i32
    scf.if %11 {
      %c0_10 = arith.constant 0 : index
      %c0_11 = arith.constant 0 : index
      %12 = vector.load %arg7[%c0_10, %c0_11] : memref<16x128xf32, #tpu.memory_space<vmem>>, vector<16x128xf32>
      %c0_12 = arith.constant 0 : index
      %c0_13 = arith.constant 0 : index
      %13 = vector.load %arg5[%c0_12, %c0_13] : memref<1x128xf32, #tpu.memory_space<vmem>>, vector<1x128xf32>
      %14 = vector.broadcast %13 : vector<1x128xf32> to vector<16x128xf32>
      %15 = arith.addf %12, %14 : vector<16x128xf32>
      %cst_14 = arith.constant 0.000000e+00 : f32
      %16 = vector.broadcast %cst_14 : f32 to vector<16x128xf32>
      %17 = arith.maximumf %15, %16 : vector<16x128xf32>
      %18 = arith.truncf %17 : vector<16x128xf32> to vector<16x128xbf16>
      %c0_15 = arith.constant 0 : index
      %c0_16 = arith.constant 0 : index
      %19 = vector.load %arg6[%c0_15, %c0_16] : memref<16x128xbf16, #tpu.memory_space<vmem>>, vector<16x128xbf16>
      tpu.vector_store %arg6[%c0_15, %c0_16], %18 {strides = array<i32>} : memref<16x128xbf16, #tpu.memory_space<vmem>>, vector<16x128xbf16>,
    } else {
    }
    return
  }
  func.func @transform_0(%arg0: i32, %arg1: i32, %arg2: i32) -> (i32, i32) {
    %c0_i32 = arith.constant 0 : i32
    return %arg0, %arg2 : i32, i32
  }
  func.func @transform_1(%arg0: i32, %arg1: i32, %arg2: i32) -> (i32, i32) {
    %c0_i32 = arith.constant 0 : i32
    return %arg2, %arg1 : i32, i32
  }
  func.func @transform_2(%arg0: i32, %arg1: i32, %arg2: i32) -> (i32, i32) {
    %c0_i32 = arith.constant 0 : i32
    %c0_i32_0 = arith.constant 0 : i32
    return %c0_i32, %arg1 : i32, i32
  }
  func.func @transform_3(%arg0: i32, %arg1: i32, %arg2: i32) -> (i32, i32) {
    %c0_i32 = arith.constant 0 : i32
    return %arg0, %arg1 : i32, i32
  }
}

module attributes {stable_mosaic.version = 11 : i64} {
  func.func @kernel(%arg0: i32, %arg1: i32, %arg2: i32, %arg3: memref<8x144xbf16, #tpu.memory_space<vmem>>, %arg4: memref<144x128xbf16, #tpu.memory_space<vmem>>, %arg5: memref<1x128xf32, #tpu.memory_space<vmem>>, %arg6: memref<8x128xbf16, #tpu.memory_space<vmem>>, %arg7: memref<8x128xf32, #tpu.memory_space<vmem>>) attributes {dimension_semantics = [#tpu.dimension_semantics<parallel>, #tpu.dimension_semantics<parallel>, #tpu.dimension_semantics<arbitrary>], iteration_bounds = array<i64: 1, 1, 1>, scalar_prefetch = 0 : i64, scratch_operands = 1 : i64, tpu.core_type = #tpu.core_type<tc>, window_params = [{transform_indices = @transform_0, window_bounds = array<i64: 8, 144>}, {transform_indices = @transform_1, window_bounds = array<i64: 144, 128>}, {transform_indices = @transform_2, window_bounds = array<i64: 1, 128>}, {transform_indices = @transform_3, window_bounds = array<i64: 8, 128>}]} {
    %c0_i32 = arith.constant 0 : i32
    %0 = arith.cmpi eq, %arg2, %c0_i32 : i32
    %1 = arith.extui %0 : i1 to i32
    %c0_i32_0 = arith.constant 0 : i32
    %2 = arith.cmpi ne, %1, %c0_i32_0 : i32
    scf.if %2 {
      %cst_10 = arith.constant 0.000000e+00 : f32
      %12 = vector.broadcast %cst_10 : f32 to vector<8x128xf32>
      %c0_11 = arith.constant 0 : index
      %c0_12 = arith.constant 0 : index
      %13 = vector.load %arg7[%c0_11, %c0_12] : memref<8x128xf32, #tpu.memory_space<vmem>>, vector<8x128xf32>
      tpu.vector_store %arg7[%c0_11, %c0_12], %12 {strides = array<i32>} : memref<8x128xf32, #tpu.memory_space<vmem>>, vector<8x128xf32>,
    } else {
    }
    %c0 = arith.constant 0 : index
    %c0_1 = arith.constant 0 : index
    %3 = vector.load %arg7[%c0, %c0_1] : memref<8x128xf32, #tpu.memory_space<vmem>>, vector<8x128xf32>
    %c0_2 = arith.constant 0 : index
    %c0_3 = arith.constant 0 : index
    %4 = vector.load %arg3[%c0_2, %c0_3] : memref<8x144xbf16, #tpu.memory_space<vmem>>, vector<8x144xbf16>
    %c0_4 = arith.constant 0 : index
    %c0_5 = arith.constant 0 : index
    %5 = vector.load %arg4[%c0_4, %c0_5] : memref<144x128xbf16, #tpu.memory_space<vmem>>, vector<144x128xbf16>
    %cst = arith.constant dense<0.000000e+00> : vector<8x128xf32>
    %6 = tpu.matmul %4, %5, %cst {dimension_numbers = #tpu.dot_dimension_numbers<[1], [0], [0], [1], [0, 0, 1, 1], [], []>} : vector<8x144xbf16>, vector<144x128xbf16>, vector<8x128xf32> -> vector<8x128xf32>
    %7 = arith.addf %3, %6 : vector<8x128xf32>
    %c0_6 = arith.constant 0 : index
    %c0_7 = arith.constant 0 : index
    %8 = vector.load %arg7[%c0_6, %c0_7] : memref<8x128xf32, #tpu.memory_space<vmem>>, vector<8x128xf32>
    tpu.vector_store %arg7[%c0_6, %c0_7], %7 {strides = array<i32>} : memref<8x128xf32, #tpu.memory_space<vmem>>, vector<8x128xf32>,
    %c0_i32_8 = arith.constant 0 : i32
    %9 = arith.cmpi eq, %arg2, %c0_i32_8 : i32
    %10 = arith.extui %9 : i1 to i32
    %c0_i32_9 = arith.constant 0 : i32
    %11 = arith.cmpi ne, %10, %c0_i32_9 : i32
    scf.if %11 {
      %c0_10 = arith.constant 0 : index
      %c0_11 = arith.constant 0 : index
      %12 = vector.load %arg7[%c0_10, %c0_11] : memref<8x128xf32, #tpu.memory_space<vmem>>, vector<8x128xf32>
      %c0_12 = arith.constant 0 : index
      %c0_13 = arith.constant 0 : index
      %13 = vector.load %arg5[%c0_12, %c0_13] : memref<1x128xf32, #tpu.memory_space<vmem>>, vector<1x128xf32>
      %14 = vector.broadcast %13 : vector<1x128xf32> to vector<8x128xf32>
      %15 = arith.addf %12, %14 : vector<8x128xf32>
      %cst_14 = arith.constant 0.000000e+00 : f32
      %16 = vector.broadcast %cst_14 : f32 to vector<8x128xf32>
      %17 = arith.maximumf %15, %16 : vector<8x128xf32>
      %18 = arith.truncf %17 : vector<8x128xf32> to vector<8x128xbf16>
      %c0_15 = arith.constant 0 : index
      %c0_16 = arith.constant 0 : index
      %19 = vector.load %arg6[%c0_15, %c0_16] : memref<8x128xbf16, #tpu.memory_space<vmem>>, vector<8x128xbf16>
      tpu.vector_store %arg6[%c0_15, %c0_16], %18 {strides = array<i32>} : memref<8x128xbf16, #tpu.memory_space<vmem>>, vector<8x128xbf16>,
    } else {
    }
    return
  }
  func.func @transform_0(%arg0: i32, %arg1: i32, %arg2: i32) -> (i32, i32) {
    %c0_i32 = arith.constant 0 : i32
    return %arg0, %arg2 : i32, i32
  }
  func.func @transform_1(%arg0: i32, %arg1: i32, %arg2: i32) -> (i32, i32) {
    %c0_i32 = arith.constant 0 : i32
    return %arg2, %arg1 : i32, i32
  }
  func.func @transform_2(%arg0: i32, %arg1: i32, %arg2: i32) -> (i32, i32) {
    %c0_i32 = arith.constant 0 : i32
    %c0_i32_0 = arith.constant 0 : i32
    return %c0_i32, %arg1 : i32, i32
  }
  func.func @transform_3(%arg0: i32, %arg1: i32, %arg2: i32) -> (i32, i32) {
    %c0_i32 = arith.constant 0 : i32
    return %arg0, %arg1 : i32, i32
  }
}

module attributes {stable_mosaic.version = 11 : i64} {
  func.func @kernel(%arg0: i32, %arg1: i32, %arg2: i32, %arg3: memref<8x32xbf16, #tpu.memory_space<vmem>>, %arg4: memref<32x128xbf16, #tpu.memory_space<vmem>>, %arg5: memref<1x128xf32, #tpu.memory_space<vmem>>, %arg6: memref<8x128xbf16, #tpu.memory_space<vmem>>, %arg7: memref<8x128xf32, #tpu.memory_space<vmem>>) attributes {dimension_semantics = [#tpu.dimension_semantics<parallel>, #tpu.dimension_semantics<parallel>, #tpu.dimension_semantics<arbitrary>], iteration_bounds = array<i64: 1, 1, 1>, scalar_prefetch = 0 : i64, scratch_operands = 1 : i64, tpu.core_type = #tpu.core_type<tc>, window_params = [{transform_indices = @transform_0, window_bounds = array<i64: 8, 32>}, {transform_indices = @transform_1, window_bounds = array<i64: 32, 128>}, {transform_indices = @transform_2, window_bounds = array<i64: 1, 128>}, {transform_indices = @transform_3, window_bounds = array<i64: 8, 128>}]} {
    %c0_i32 = arith.constant 0 : i32
    %0 = arith.cmpi eq, %arg2, %c0_i32 : i32
    %1 = arith.extui %0 : i1 to i32
    %c0_i32_0 = arith.constant 0 : i32
    %2 = arith.cmpi ne, %1, %c0_i32_0 : i32
    scf.if %2 {
      %cst_10 = arith.constant 0.000000e+00 : f32
      %12 = vector.broadcast %cst_10 : f32 to vector<8x128xf32>
      %c0_11 = arith.constant 0 : index
      %c0_12 = arith.constant 0 : index
      %13 = vector.load %arg7[%c0_11, %c0_12] : memref<8x128xf32, #tpu.memory_space<vmem>>, vector<8x128xf32>
      tpu.vector_store %arg7[%c0_11, %c0_12], %12 {strides = array<i32>} : memref<8x128xf32, #tpu.memory_space<vmem>>, vector<8x128xf32>,
    } else {
    }
    %c0 = arith.constant 0 : index
    %c0_1 = arith.constant 0 : index
    %3 = vector.load %arg7[%c0, %c0_1] : memref<8x128xf32, #tpu.memory_space<vmem>>, vector<8x128xf32>
    %c0_2 = arith.constant 0 : index
    %c0_3 = arith.constant 0 : index
    %4 = vector.load %arg3[%c0_2, %c0_3] : memref<8x32xbf16, #tpu.memory_space<vmem>>, vector<8x32xbf16>
    %c0_4 = arith.constant 0 : index
    %c0_5 = arith.constant 0 : index
    %5 = vector.load %arg4[%c0_4, %c0_5] : memref<32x128xbf16, #tpu.memory_space<vmem>>, vector<32x128xbf16>
    %cst = arith.constant dense<0.000000e+00> : vector<8x128xf32>
    %6 = tpu.matmul %4, %5, %cst {dimension_numbers = #tpu.dot_dimension_numbers<[1], [0], [0], [1], [0, 0, 1, 1], [], []>} : vector<8x32xbf16>, vector<32x128xbf16>, vector<8x128xf32> -> vector<8x128xf32>
    %7 = arith.addf %3, %6 : vector<8x128xf32>
    %c0_6 = arith.constant 0 : index
    %c0_7 = arith.constant 0 : index
    %8 = vector.load %arg7[%c0_6, %c0_7] : memref<8x128xf32, #tpu.memory_space<vmem>>, vector<8x128xf32>
    tpu.vector_store %arg7[%c0_6, %c0_7], %7 {strides = array<i32>} : memref<8x128xf32, #tpu.memory_space<vmem>>, vector<8x128xf32>,
    %c0_i32_8 = arith.constant 0 : i32
    %9 = arith.cmpi eq, %arg2, %c0_i32_8 : i32
    %10 = arith.extui %9 : i1 to i32
    %c0_i32_9 = arith.constant 0 : i32
    %11 = arith.cmpi ne, %10, %c0_i32_9 : i32
    scf.if %11 {
      %c0_10 = arith.constant 0 : index
      %c0_11 = arith.constant 0 : index
      %12 = vector.load %arg7[%c0_10, %c0_11] : memref<8x128xf32, #tpu.memory_space<vmem>>, vector<8x128xf32>
      %c0_12 = arith.constant 0 : index
      %c0_13 = arith.constant 0 : index
      %13 = vector.load %arg5[%c0_12, %c0_13] : memref<1x128xf32, #tpu.memory_space<vmem>>, vector<1x128xf32>
      %14 = vector.broadcast %13 : vector<1x128xf32> to vector<8x128xf32>
      %15 = arith.addf %12, %14 : vector<8x128xf32>
      %16 = arith.truncf %15 : vector<8x128xf32> to vector<8x128xbf16>
      %c0_14 = arith.constant 0 : index
      %c0_15 = arith.constant 0 : index
      %17 = vector.load %arg6[%c0_14, %c0_15] : memref<8x128xbf16, #tpu.memory_space<vmem>>, vector<8x128xbf16>
      tpu.vector_store %arg6[%c0_14, %c0_15], %16 {strides = array<i32>} : memref<8x128xbf16, #tpu.memory_space<vmem>>, vector<8x128xbf16>,
    } else {
    }
    return
  }
  func.func @transform_0(%arg0: i32, %arg1: i32, %arg2: i32) -> (i32, i32) {
    %c0_i32 = arith.constant 0 : i32
    return %arg0, %arg2 : i32, i32
  }
  func.func @transform_1(%arg0: i32, %arg1: i32, %arg2: i32) -> (i32, i32) {
    %c0_i32 = arith.constant 0 : i32
    return %arg2, %arg1 : i32, i32
  }
  func.func @transform_2(%arg0: i32, %arg1: i32, %arg2: i32) -> (i32, i32) {
    %c0_i32 = arith.constant 0 : i32
    %c0_i32_0 = arith.constant 0 : i32
    return %c0_i32, %arg1 : i32, i32
  }
  func.func @transform_3(%arg0: i32, %arg1: i32, %arg2: i32) -> (i32, i32) {
    %c0_i32 = arith.constant 0 : i32
    return %arg0, %arg1 : i32, i32
  }
}

module attributes {stable_mosaic.version = 11 : i64} {
  func.func @kernel(%arg0: i32, %arg1: i32, %arg2: i32, %arg3: memref<8x16xbf16, #tpu.memory_space<vmem>>, %arg4: memref<16x128xbf16, #tpu.memory_space<vmem>>, %arg5: memref<1x128xf32, #tpu.memory_space<vmem>>, %arg6: memref<8x128xbf16, #tpu.memory_space<vmem>>, %arg7: memref<8x128xbf16, #tpu.memory_space<vmem>>, %arg8: memref<8x128xf32, #tpu.memory_space<vmem>>) attributes {dimension_semantics = [#tpu.dimension_semantics<parallel>, #tpu.dimension_semantics<parallel>, #tpu.dimension_semantics<arbitrary>], iteration_bounds = array<i64: 1, 1, 1>, scalar_prefetch = 0 : i64, scratch_operands = 1 : i64, tpu.core_type = #tpu.core_type<tc>, window_params = [{transform_indices = @transform_0, window_bounds = array<i64: 8, 16>}, {transform_indices = @transform_1, window_bounds = array<i64: 16, 128>}, {transform_indices = @transform_2, window_bounds = array<i64: 1, 128>}, {transform_indices = @transform_3, window_bounds = array<i64: 8, 128>}, {transform_indices = @transform_4, window_bounds = array<i64: 8, 128>}]} {
    %c0_i32 = arith.constant 0 : i32
    %0 = arith.cmpi eq, %arg2, %c0_i32 : i32
    %1 = arith.extui %0 : i1 to i32
    %c0_i32_0 = arith.constant 0 : i32
    %2 = arith.cmpi ne, %1, %c0_i32_0 : i32
    scf.if %2 {
      %cst_10 = arith.constant 0.000000e+00 : f32
      %12 = vector.broadcast %cst_10 : f32 to vector<8x128xf32>
      %c0_11 = arith.constant 0 : index
      %c0_12 = arith.constant 0 : index
      %13 = vector.load %arg8[%c0_11, %c0_12] : memref<8x128xf32, #tpu.memory_space<vmem>>, vector<8x128xf32>
      tpu.vector_store %arg8[%c0_11, %c0_12], %12 {strides = array<i32>} : memref<8x128xf32, #tpu.memory_space<vmem>>, vector<8x128xf32>,
    } else {
    }
    %c0 = arith.constant 0 : index
    %c0_1 = arith.constant 0 : index
    %3 = vector.load %arg8[%c0, %c0_1] : memref<8x128xf32, #tpu.memory_space<vmem>>, vector<8x128xf32>
    %c0_2 = arith.constant 0 : index
    %c0_3 = arith.constant 0 : index
    %4 = vector.load %arg3[%c0_2, %c0_3] : memref<8x16xbf16, #tpu.memory_space<vmem>>, vector<8x16xbf16>
    %c0_4 = arith.constant 0 : index
    %c0_5 = arith.constant 0 : index
    %5 = vector.load %arg4[%c0_4, %c0_5] : memref<16x128xbf16, #tpu.memory_space<vmem>>, vector<16x128xbf16>
    %cst = arith.constant dense<0.000000e+00> : vector<8x128xf32>
    %6 = tpu.matmul %4, %5, %cst {dimension_numbers = #tpu.dot_dimension_numbers<[1], [0], [0], [1], [0, 0, 1, 1], [], []>} : vector<8x16xbf16>, vector<16x128xbf16>, vector<8x128xf32> -> vector<8x128xf32>
    %7 = arith.addf %3, %6 : vector<8x128xf32>
    %c0_6 = arith.constant 0 : index
    %c0_7 = arith.constant 0 : index
    %8 = vector.load %arg8[%c0_6, %c0_7] : memref<8x128xf32, #tpu.memory_space<vmem>>, vector<8x128xf32>
    tpu.vector_store %arg8[%c0_6, %c0_7], %7 {strides = array<i32>} : memref<8x128xf32, #tpu.memory_space<vmem>>, vector<8x128xf32>,
    %c0_i32_8 = arith.constant 0 : i32
    %9 = arith.cmpi eq, %arg2, %c0_i32_8 : i32
    %10 = arith.extui %9 : i1 to i32
    %c0_i32_9 = arith.constant 0 : i32
    %11 = arith.cmpi ne, %10, %c0_i32_9 : i32
    scf.if %11 {
      %c0_10 = arith.constant 0 : index
      %c0_11 = arith.constant 0 : index
      %12 = vector.load %arg8[%c0_10, %c0_11] : memref<8x128xf32, #tpu.memory_space<vmem>>, vector<8x128xf32>
      %c0_12 = arith.constant 0 : index
      %c0_13 = arith.constant 0 : index
      %13 = vector.load %arg5[%c0_12, %c0_13] : memref<1x128xf32, #tpu.memory_space<vmem>>, vector<1x128xf32>
      %14 = vector.broadcast %13 : vector<1x128xf32> to vector<8x128xf32>
      %15 = arith.addf %12, %14 : vector<8x128xf32>
      %c0_14 = arith.constant 0 : index
      %c0_15 = arith.constant 0 : index
      %16 = vector.load %arg6[%c0_14, %c0_15] : memref<8x128xbf16, #tpu.memory_space<vmem>>, vector<8x128xbf16>
      %17 = arith.extf %16 : vector<8x128xbf16> to vector<8x128xf32>
      %18 = arith.addf %15, %17 : vector<8x128xf32>
      %cst_16 = arith.constant 0.000000e+00 : f32
      %19 = vector.broadcast %cst_16 : f32 to vector<8x128xf32>
      %20 = arith.maximumf %18, %19 : vector<8x128xf32>
      %21 = arith.truncf %20 : vector<8x128xf32> to vector<8x128xbf16>
      %c0_17 = arith.constant 0 : index
      %c0_18 = arith.constant 0 : index
      %22 = vector.load %arg7[%c0_17, %c0_18] : memref<8x128xbf16, #tpu.memory_space<vmem>>, vector<8x128xbf16>
      tpu.vector_store %arg7[%c0_17, %c0_18], %21 {strides = array<i32>} : memref<8x128xbf16, #tpu.memory_space<vmem>>, vector<8x128xbf16>,
    } else {
    }
    return
  }
  func.func @transform_0(%arg0: i32, %arg1: i32, %arg2: i32) -> (i32, i32) {
    %c0_i32 = arith.constant 0 : i32
    return %arg0, %arg2 : i32, i32
  }
  func.func @transform_1(%arg0: i32, %arg1: i32, %arg2: i32) -> (i32, i32) {
    %c0_i32 = arith.constant 0 : i32
    return %arg2, %arg1 : i32, i32
  }
  func.func @transform_2(%arg0: i32, %arg1: i32, %arg2: i32) -> (i32, i32) {
    %c0_i32 = arith.constant 0 : i32
    %c0_i32_0 = arith.constant 0 : i32
    return %c0_i32, %arg1 : i32, i32
  }
  func.func @transform_3(%arg0: i32, %arg1: i32, %arg2: i32) -> (i32, i32) {
    %c0_i32 = arith.constant 0 : i32
    return %arg0, %arg1 : i32, i32
  }
  func.func @transform_4(%arg0: i32, %arg1: i32, %arg2: i32) -> (i32, i32) {
    %c0_i32 = arith.constant 0 : i32
    return %arg0, %arg1 : i32, i32
  }
}

module attributes {stable_mosaic.version = 11 : i64} {
  func.func @_cbam_channel_kernel(%arg0: i32, %arg1: memref<1x4x64xbf16, #tpu.memory_space<vmem>>, %arg2: memref<64x8xbf16, #tpu.memory_space<vmem>>, %arg3: memref<1x8xf32, #tpu.memory_space<vmem>>, %arg4: memref<8x64xbf16, #tpu.memory_space<vmem>>, %arg5: memref<1x64xf32, #tpu.memory_space<vmem>>, %arg6: memref<1x4x64xbf16, #tpu.memory_space<vmem>>, %arg7: memref<1x4x2xf32, #tpu.memory_space<vmem>>) attributes {dimension_semantics = [#tpu.dimension_semantics<parallel>], iteration_bounds = array<i64: 2>, scalar_prefetch = 0 : i64, scratch_operands = 0 : i64, tpu.core_type = #tpu.core_type<tc>, window_params = [{transform_indices = @transform_0, window_bounds = array<i64: 1, 4, 64>}, {pipeline_mode = #tpu.pipeline_mode<synchronous>, transform_indices = @transform_1, window_bounds = array<i64: 64, 8>}, {pipeline_mode = #tpu.pipeline_mode<synchronous>, transform_indices = @transform_2, window_bounds = array<i64: 1, 8>}, {pipeline_mode = #tpu.pipeline_mode<synchronous>, transform_indices = @transform_3, window_bounds = array<i64: 8, 64>}, {pipeline_mode = #tpu.pipeline_mode<synchronous>, transform_indices = @transform_4, window_bounds = array<i64: 1, 64>}, {transform_indices = @transform_5, window_bounds = array<i64: 1, 4, 64>}, {transform_indices = @transform_6, window_bounds = array<i64: 1, 4, 2>}]} {
    %c0 = arith.constant 0 : index
    %c0_0 = arith.constant 0 : index
    %c0_1 = arith.constant 0 : index
    %0 = vector.load %arg1[%c0, %c0_0, %c0_1] : memref<1x4x64xbf16, #tpu.memory_space<vmem>>, vector<1x4x64xbf16>
    %1 = vector.shape_cast %0 : vector<1x4x64xbf16> to vector<4x64xbf16>
    %2 = arith.extf %1 : vector<4x64xbf16> to vector<4x64xf32>
    %cst = arith.constant dense<0.000000e+00> : vector<64xf32>
    %3 = vector.multi_reduction <add>, %2, %cst [0] : vector<4x64xf32> to vector<64xf32>
    %4 = vector.shape_cast %3 : vector<64xf32> to vector<1x64xf32>
    %cst_2 = arith.constant 4.000000e+00 : f32
    %5 = vector.broadcast %cst_2 : f32 to vector<1x64xf32>
    %6 = arith.divf %4, %5 : vector<1x64xf32>
    %cst_3 = arith.constant dense<0xFF800000> : vector<64xf32>
    %7 = vector.multi_reduction <maximumf>, %2, %cst_3 [0] : vector<4x64xf32> to vector<64xf32>
    %8 = vector.shape_cast %7 : vector<64xf32> to vector<1x64xf32>
    %9 = tpu.concatenate %6, %8 in 0 : vector<1x64xf32>, vector<1x64xf32> -> vector<2x64xf32>
    %10 = arith.truncf %9 : vector<2x64xf32> to vector<2x64xbf16>
    %c0_4 = arith.constant 0 : index
    %c0_5 = arith.constant 0 : index
    %11 = vector.load %arg2[%c0_4, %c0_5] : memref<64x8xbf16, #tpu.memory_space<vmem>>, vector<64x8xbf16>
    %cst_6 = arith.constant dense<0.000000e+00> : vector<2x8xf32>
    %12 = tpu.matmul %10, %11, %cst_6 {dimension_numbers = #tpu.dot_dimension_numbers<[1], [0], [0], [1], [0, 0, 1, 1], [], []>} : vector<2x64xbf16>, vector<64x8xbf16>, vector<2x8xf32> -> vector<2x8xf32>
    %c0_7 = arith.constant 0 : index
    %c0_8 = arith.constant 0 : index
    %13 = vector.load %arg3[%c0_7, %c0_8] : memref<1x8xf32, #tpu.memory_space<vmem>>, vector<1x8xf32>
    %14 = vector.broadcast %13 : vector<1x8xf32> to vector<2x8xf32>
    %15 = arith.addf %12, %14 : vector<2x8xf32>
    %cst_9 = arith.constant 0.000000e+00 : f32
    %16 = vector.broadcast %cst_9 : f32 to vector<2x8xf32>
    %17 = arith.maximumf %15, %16 : vector<2x8xf32>
    %18 = arith.truncf %17 : vector<2x8xf32> to vector<2x8xbf16>
    %c0_10 = arith.constant 0 : index
    %c0_11 = arith.constant 0 : index
    %19 = vector.load %arg4[%c0_10, %c0_11] : memref<8x64xbf16, #tpu.memory_space<vmem>>, vector<8x64xbf16>
    %cst_12 = arith.constant dense<0.000000e+00> : vector<2x64xf32>
    %20 = tpu.matmul %18, %19, %cst_12 {dimension_numbers = #tpu.dot_dimension_numbers<[1], [0], [0], [1], [0, 0, 1, 1], [], []>} : vector<2x8xbf16>, vector<8x64xbf16>, vector<2x64xf32> -> vector<2x64xf32>
    %c0_13 = arith.constant 0 : index
    %c0_14 = arith.constant 0 : index
    %21 = vector.load %arg5[%c0_13, %c0_14] : memref<1x64xf32, #tpu.memory_space<vmem>>, vector<1x64xf32>
    %22 = vector.broadcast %21 : vector<1x64xf32> to vector<2x64xf32>
    %23 = arith.addf %20, %22 : vector<2x64xf32>
    %24 = vector.extract_strided_slice %23 {offsets = [0, 0], sizes = [1, 64], strides = [1, 1]} : vector<2x64xf32> to vector<1x64xf32>
    %25 = vector.extract_strided_slice %23 {offsets = [1, 0], sizes = [1, 64], strides = [1, 1]} : vector<2x64xf32> to vector<1x64xf32>
    %26 = arith.addf %24, %25 : vector<1x64xf32>
    %27 = arith.negf %26 : vector<1x64xf32>
    %28 = math.exp %27 : vector<1x64xf32>
    %cst_15 = arith.constant 1.000000e+00 : f32
    %29 = vector.broadcast %cst_15 : f32 to vector<1x64xf32>
    %30 = arith.addf %29, %28 : vector<1x64xf32>
    %31 = arith.divf %29, %30 : vector<1x64xf32>
    %32 = vector.broadcast %31 : vector<1x64xf32> to vector<4x64xf32>
    %33 = arith.mulf %2, %32 : vector<4x64xf32>
    %34 = arith.truncf %33 : vector<4x64xf32> to vector<4x64xbf16>
    %c0_16 = arith.constant 0 : index
    %c0_17 = arith.constant 0 : index
    %c0_18 = arith.constant 0 : index
    %35 = vector.load %arg6[%c0_16, %c0_17, %c0_18] : memref<1x4x64xbf16, #tpu.memory_space<vmem>>, vector<1x4x64xbf16>
    %36 = vector.shape_cast %35 : vector<1x4x64xbf16> to vector<4x64xbf16>
    %37 = vector.shape_cast %34 : vector<4x64xbf16> to vector<1x4x64xbf16>
    tpu.vector_store %arg6[%c0_16, %c0_17, %c0_18], %37 {strides = array<i32>} : memref<1x4x64xbf16, #tpu.memory_space<vmem>>, vector<1x4x64xbf16>,
    %cst_19 = arith.constant dense<0.000000e+00> : vector<4xf32>
    %38 = vector.multi_reduction <add>, %33, %cst_19 [1] : vector<4x64xf32> to vector<4xf32>
    %39 = vector.shape_cast %38 : vector<4xf32> to vector<4x1xf32>
    %cst_20 = arith.constant 6.400000e+01 : f32
    %40 = vector.broadcast %cst_20 : f32 to vector<4x1xf32>
    %41 = arith.divf %39, %40 : vector<4x1xf32>
    %cst_21 = arith.constant dense<0xFF800000> : vector<4xf32>
    %42 = vector.multi_reduction <maximumf>, %33, %cst_21 [1] : vector<4x64xf32> to vector<4xf32>
    %43 = vector.shape_cast %42 : vector<4xf32> to vector<4x1xf32>
    %44 = tpu.concatenate %41, %43 in 1 : vector<4x1xf32>, vector<4x1xf32> -> vector<4x2xf32>
    %c0_22 = arith.constant 0 : index
    %c0_23 = arith.constant 0 : index
    %c0_24 = arith.constant 0 : index
    %45 = vector.load %arg7[%c0_22, %c0_23, %c0_24] : memref<1x4x2xf32, #tpu.memory_space<vmem>>, vector<1x4x2xf32>
    %46 = vector.shape_cast %45 : vector<1x4x2xf32> to vector<4x2xf32>
    %47 = vector.shape_cast %44 : vector<4x2xf32> to vector<1x4x2xf32>
    tpu.vector_store %arg7[%c0_22, %c0_23, %c0_24], %47 {strides = array<i32>} : memref<1x4x2xf32, #tpu.memory_space<vmem>>, vector<1x4x2xf32>,
    return
  }
  func.func @transform_0(%arg0: i32) -> (i32, i32, i32) {
    %c0_i32 = arith.constant 0 : i32
    %c0_i32_0 = arith.constant 0 : i32
    %c0_i32_1 = arith.constant 0 : i32
    return %arg0, %c0_i32, %c0_i32_0 : i32, i32, i32
  }
  func.func @transform_1(%arg0: i32) -> (i32, i32) {
    %c0_i32 = arith.constant 0 : i32
    %c0_i32_0 = arith.constant 0 : i32
    %c0_i32_1 = arith.constant 0 : i32
    return %c0_i32, %c0_i32_0 : i32, i32
  }
  func.func @transform_2(%arg0: i32) -> (i32, i32) {
    %c0_i32 = arith.constant 0 : i32
    %c0_i32_0 = arith.constant 0 : i32
    %c0_i32_1 = arith.constant 0 : i32
    return %c0_i32, %c0_i32_0 : i32, i32
  }
  func.func @transform_3(%arg0: i32) -> (i32, i32) {
    %c0_i32 = arith.constant 0 : i32
    %c0_i32_0 = arith.constant 0 : i32
    %c0_i32_1 = arith.constant 0 : i32
    return %c0_i32, %c0_i32_0 : i32, i32
  }
  func.func @transform_4(%arg0: i32) -> (i32, i32) {
    %c0_i32 = arith.constant 0 : i32
    %c0_i32_0 = arith.constant 0 : i32
    %c0_i32_1 = arith.constant 0 : i32
    return %c0_i32, %c0_i32_0 : i32, i32
  }
  func.func @transform_5(%arg0: i32) -> (i32, i32, i32) {
    %c0_i32 = arith.constant 0 : i32
    %c0_i32_0 = arith.constant 0 : i32
    %c0_i32_1 = arith.constant 0 : i32
    return %arg0, %c0_i32, %c0_i32_0 : i32, i32, i32
  }
  func.func @transform_6(%arg0: i32) -> (i32, i32, i32) {
    %c0_i32 = arith.constant 0 : i32
    %c0_i32_0 = arith.constant 0 : i32
    %c0_i32_1 = arith.constant 0 : i32
    return %arg0, %c0_i32, %c0_i32_0 : i32, i32, i32
  }
}

module attributes {stable_mosaic.version = 11 : i64} {
  func.func @_cbam_channel_kernel(%arg0: i32, %arg1: memref<1x4x64xbf16, #tpu.memory_space<vmem>>, %arg2: memref<64x8xbf16, #tpu.memory_space<vmem>>, %arg3: memref<1x8xf32, #tpu.memory_space<vmem>>, %arg4: memref<8x64xbf16, #tpu.memory_space<vmem>>, %arg5: memref<1x64xf32, #tpu.memory_space<vmem>>, %arg6: memref<1x4x64xbf16, #tpu.memory_space<vmem>>, %arg7: memref<1x4x2xf32, #tpu.memory_space<vmem>>) attributes {dimension_semantics = [#tpu.dimension_semantics<parallel>], iteration_bounds = array<i64: 2>, scalar_prefetch = 0 : i64, scratch_operands = 0 : i64, tpu.core_type = #tpu.core_type<tc>, window_params = [{transform_indices = @transform_0, window_bounds = array<i64: 1, 4, 64>}, {pipeline_mode = #tpu.pipeline_mode<synchronous>, transform_indices = @transform_1, window_bounds = array<i64: 64, 8>}, {pipeline_mode = #tpu.pipeline_mode<synchronous>, transform_indices = @transform_2, window_bounds = array<i64: 1, 8>}, {pipeline_mode = #tpu.pipeline_mode<synchronous>, transform_indices = @transform_3, window_bounds = array<i64: 8, 64>}, {pipeline_mode = #tpu.pipeline_mode<synchronous>, transform_indices = @transform_4, window_bounds = array<i64: 1, 64>}, {transform_indices = @transform_5, window_bounds = array<i64: 1, 4, 64>}, {transform_indices = @transform_6, window_bounds = array<i64: 1, 4, 2>}]} {
    %c0 = arith.constant 0 : index
    %c0_0 = arith.constant 0 : index
    %c0_1 = arith.constant 0 : index
    %0 = vector.load %arg1[%c0, %c0_0, %c0_1] : memref<1x4x64xbf16, #tpu.memory_space<vmem>>, vector<1x4x64xbf16>
    %1 = vector.shape_cast %0 : vector<1x4x64xbf16> to vector<4x64xbf16>
    %2 = arith.extf %1 : vector<4x64xbf16> to vector<4x64xf32>
    %cst = arith.constant dense<0.000000e+00> : vector<64xf32>
    %3 = vector.multi_reduction <add>, %2, %cst [0] : vector<4x64xf32> to vector<64xf32>
    %4 = vector.shape_cast %3 : vector<64xf32> to vector<1x64xf32>
    %cst_2 = arith.constant 4.000000e+00 : f32
    %5 = vector.broadcast %cst_2 : f32 to vector<1x64xf32>
    %6 = arith.divf %4, %5 : vector<1x64xf32>
    %cst_3 = arith.constant dense<0xFF800000> : vector<64xf32>
    %7 = vector.multi_reduction <maximumf>, %2, %cst_3 [0] : vector<4x64xf32> to vector<64xf32>
    %8 = vector.shape_cast %7 : vector<64xf32> to vector<1x64xf32>
    %9 = tpu.concatenate %6, %8 in 0 : vector<1x64xf32>, vector<1x64xf32> -> vector<2x64xf32>
    %10 = arith.truncf %9 : vector<2x64xf32> to vector<2x64xbf16>
    %c0_4 = arith.constant 0 : index
    %c0_5 = arith.constant 0 : index
    %11 = vector.load %arg2[%c0_4, %c0_5] : memref<64x8xbf16, #tpu.memory_space<vmem>>, vector<64x8xbf16>
    %cst_6 = arith.constant dense<0.000000e+00> : vector<2x8xf32>
    %12 = tpu.matmul %10, %11, %cst_6 {dimension_numbers = #tpu.dot_dimension_numbers<[1], [0], [0], [1], [0, 0, 1, 1], [], []>} : vector<2x64xbf16>, vector<64x8xbf16>, vector<2x8xf32> -> vector<2x8xf32>
    %c0_7 = arith.constant 0 : index
    %c0_8 = arith.constant 0 : index
    %13 = vector.load %arg3[%c0_7, %c0_8] : memref<1x8xf32, #tpu.memory_space<vmem>>, vector<1x8xf32>
    %14 = vector.broadcast %13 : vector<1x8xf32> to vector<2x8xf32>
    %15 = arith.addf %12, %14 : vector<2x8xf32>
    %cst_9 = arith.constant 0.000000e+00 : f32
    %16 = vector.broadcast %cst_9 : f32 to vector<2x8xf32>
    %17 = arith.maximumf %15, %16 : vector<2x8xf32>
    %18 = arith.truncf %17 : vector<2x8xf32> to vector<2x8xbf16>
    %c0_10 = arith.constant 0 : index
    %c0_11 = arith.constant 0 : index
    %19 = vector.load %arg4[%c0_10, %c0_11] : memref<8x64xbf16, #tpu.memory_space<vmem>>, vector<8x64xbf16>
    %cst_12 = arith.constant dense<0.000000e+00> : vector<2x64xf32>
    %20 = tpu.matmul %18, %19, %cst_12 {dimension_numbers = #tpu.dot_dimension_numbers<[1], [0], [0], [1], [0, 0, 1, 1], [], []>} : vector<2x8xbf16>, vector<8x64xbf16>, vector<2x64xf32> -> vector<2x64xf32>
    %c0_13 = arith.constant 0 : index
    %c0_14 = arith.constant 0 : index
    %21 = vector.load %arg5[%c0_13, %c0_14] : memref<1x64xf32, #tpu.memory_space<vmem>>, vector<1x64xf32>
    %22 = vector.broadcast %21 : vector<1x64xf32> to vector<2x64xf32>
    %23 = arith.addf %20, %22 : vector<2x64xf32>
    %24 = vector.extract_strided_slice %23 {offsets = [0, 0], sizes = [1, 64], strides = [1, 1]} : vector<2x64xf32> to vector<1x64xf32>
    %25 = vector.extract_strided_slice %23 {offsets = [1, 0], sizes = [1, 64], strides = [1, 1]} : vector<2x64xf32> to vector<1x64xf32>
    %26 = arith.addf %24, %25 : vector<1x64xf32>
    %27 = arith.negf %26 : vector<1x64xf32>
    %28 = math.exp %27 : vector<1x64xf32>
    %cst_15 = arith.constant 1.000000e+00 : f32
    %29 = vector.broadcast %cst_15 : f32 to vector<1x64xf32>
    %30 = arith.addf %29, %28 : vector<1x64xf32>
    %31 = arith.divf %29, %30 : vector<1x64xf32>
    %32 = vector.broadcast %31 : vector<1x64xf32> to vector<4x64xf32>
    %33 = arith.mulf %2, %32 : vector<4x64xf32>
    %34 = arith.truncf %33 : vector<4x64xf32> to vector<4x64xbf16>
    %c0_16 = arith.constant 0 : index
    %c0_17 = arith.constant 0 : index
    %c0_18 = arith.constant 0 : index
    %35 = vector.load %arg6[%c0_16, %c0_17, %c0_18] : memref<1x4x64xbf16, #tpu.memory_space<vmem>>, vector<1x4x64xbf16>
    %36 = vector.shape_cast %35 : vector<1x4x64xbf16> to vector<4x64xbf16>
    %37 = vector.shape_cast %34 : vector<4x64xbf16> to vector<1x4x64xbf16>
    tpu.vector_store %arg6[%c0_16, %c0_17, %c0_18], %37 {strides = array<i32>} : memref<1x4x64xbf16, #tpu.memory_space<vmem>>, vector<1x4x64xbf16>,
    %cst_19 = arith.constant dense<0.000000e+00> : vector<4xf32>
    %38 = vector.multi_reduction <add>, %33, %cst_19 [1] : vector<4x64xf32> to vector<4xf32>
    %39 = vector.shape_cast %38 : vector<4xf32> to vector<4x1xf32>
    %cst_20 = arith.constant 6.400000e+01 : f32
    %40 = vector.broadcast %cst_20 : f32 to vector<4x1xf32>
    %41 = arith.divf %39, %40 : vector<4x1xf32>
    %cst_21 = arith.constant dense<0xFF800000> : vector<4xf32>
    %42 = vector.multi_reduction <maximumf>, %33, %cst_21 [1] : vector<4x64xf32> to vector<4xf32>
    %43 = vector.shape_cast %42 : vector<4xf32> to vector<4x1xf32>
    %44 = tpu.concatenate %41, %43 in 1 : vector<4x1xf32>, vector<4x1xf32> -> vector<4x2xf32>
    %c0_22 = arith.constant 0 : index
    %c0_23 = arith.constant 0 : index
    %c0_24 = arith.constant 0 : index
    %45 = vector.load %arg7[%c0_22, %c0_23, %c0_24] : memref<1x4x2xf32, #tpu.memory_space<vmem>>, vector<1x4x2xf32>
    %46 = vector.shape_cast %45 : vector<1x4x2xf32> to vector<4x2xf32>
    %47 = vector.shape_cast %44 : vector<4x2xf32> to vector<1x4x2xf32>
    tpu.vector_store %arg7[%c0_22, %c0_23, %c0_24], %47 {strides = array<i32>} : memref<1x4x2xf32, #tpu.memory_space<vmem>>, vector<1x4x2xf32>,
    return
  }
  func.func @transform_0(%arg0: i32) -> (i32, i32, i32) {
    %c0_i32 = arith.constant 0 : i32
    %c0_i32_0 = arith.constant 0 : i32
    %c0_i32_1 = arith.constant 0 : i32
    return %arg0, %c0_i32, %c0_i32_0 : i32, i32, i32
  }
  func.func @transform_1(%arg0: i32) -> (i32, i32) {
    %c0_i32 = arith.constant 0 : i32
    %c0_i32_0 = arith.constant 0 : i32
    %c0_i32_1 = arith.constant 0 : i32
    return %c0_i32, %c0_i32_0 : i32, i32
  }
  func.func @transform_2(%arg0: i32) -> (i32, i32) {
    %c0_i32 = arith.constant 0 : i32
    %c0_i32_0 = arith.constant 0 : i32
    %c0_i32_1 = arith.constant 0 : i32
    return %c0_i32, %c0_i32_0 : i32, i32
  }
  func.func @transform_3(%arg0: i32) -> (i32, i32) {
    %c0_i32 = arith.constant 0 : i32
    %c0_i32_0 = arith.constant 0 : i32
    %c0_i32_1 = arith.constant 0 : i32
    return %c0_i32, %c0_i32_0 : i32, i32
  }
  func.func @transform_4(%arg0: i32) -> (i32, i32) {
    %c0_i32 = arith.constant 0 : i32
    %c0_i32_0 = arith.constant 0 : i32
    %c0_i32_1 = arith.constant 0 : i32
    return %c0_i32, %c0_i32_0 : i32, i32
  }
  func.func @transform_5(%arg0: i32) -> (i32, i32, i32) {
    %c0_i32 = arith.constant 0 : i32
    %c0_i32_0 = arith.constant 0 : i32
    %c0_i32_1 = arith.constant 0 : i32
    return %arg0, %c0_i32, %c0_i32_0 : i32, i32, i32
  }
  func.func @transform_6(%arg0: i32) -> (i32, i32, i32) {
    %c0_i32 = arith.constant 0 : i32
    %c0_i32_0 = arith.constant 0 : i32
    %c0_i32_1 = arith.constant 0 : i32
    return %arg0, %c0_i32, %c0_i32_0 : i32, i32, i32
  }
}

module attributes {stable_mosaic.version = 11 : i64} {
  func.func @_cbam_pair_finalize_kernel(%arg0: i32, %arg1: memref<1x4x64xbf16, #tpu.memory_space<vmem>>, %arg2: memref<1x4x1xf32, #tpu.memory_space<vmem>>, %arg3: memref<1x4x64xbf16, #tpu.memory_space<vmem>>, %arg4: memref<1x4x1xf32, #tpu.memory_space<vmem>>, %arg5: memref<1x1x64xf32, #tpu.memory_space<vmem>>, %arg6: memref<1x1x64xf32, #tpu.memory_space<vmem>>, %arg7: memref<1x1x64xf32, #tpu.memory_space<vmem>>, %arg8: memref<1x1x64xf32, #tpu.memory_space<vmem>>, %arg9: memref<1x4x64xbf16, #tpu.memory_space<vmem>>, %arg10: memref<1x4x64xbf16, #tpu.memory_space<vmem>>, %arg11: memref<1x4x64xbf16, #tpu.memory_space<vmem>>) attributes {dimension_semantics = [#tpu.dimension_semantics<parallel>], iteration_bounds = array<i64: 2>, scalar_prefetch = 0 : i64, scratch_operands = 0 : i64, tpu.core_type = #tpu.core_type<tc>, window_params = [{transform_indices = @transform_0, window_bounds = array<i64: 1, 4, 64>}, {transform_indices = @transform_1, window_bounds = array<i64: 1, 4, 1>}, {transform_indices = @transform_2, window_bounds = array<i64: 1, 4, 64>}, {transform_indices = @transform_3, window_bounds = array<i64: 1, 4, 1>}, {pipeline_mode = #tpu.pipeline_mode<synchronous>, transform_indices = @transform_4, window_bounds = array<i64: 1, 1, 64>}, {pipeline_mode = #tpu.pipeline_mode<synchronous>, transform_indices = @transform_5, window_bounds = array<i64: 1, 1, 64>}, {pipeline_mode = #tpu.pipeline_mode<synchronous>, transform_indices = @transform_6, window_bounds = array<i64: 1, 1, 64>}, {pipeline_mode = #tpu.pipeline_mode<synchronous>, transform_indices = @transform_7, window_bounds = array<i64: 1, 1, 64>}, {transform_indices = @transform_8, window_bounds = array<i64: 1, 4, 64>}, {transform_indices = @transform_9, window_bounds = array<i64: 1, 4, 64>}, {transform_indices = @transform_10, window_bounds = array<i64: 1, 4, 64>}]} {
    %c0 = arith.constant 0 : index
    %c0_0 = arith.constant 0 : index
    %c0_1 = arith.constant 0 : index
    %0 = vector.load %arg1[%c0, %c0_0, %c0_1] : memref<1x4x64xbf16, #tpu.memory_space<vmem>>, vector<1x4x64xbf16>
    %1 = arith.extf %0 : vector<1x4x64xbf16> to vector<1x4x64xf32>
    %c0_2 = arith.constant 0 : index
    %c0_3 = arith.constant 0 : index
    %c0_4 = arith.constant 0 : index
    %2 = vector.load %arg2[%c0_2, %c0_3, %c0_4] : memref<1x4x1xf32, #tpu.memory_space<vmem>>, vector<1x4x1xf32>
    %3 = arith.negf %2 : vector<1x4x1xf32>
    %4 = math.exp %3 : vector<1x4x1xf32>
    %cst = arith.constant 1.000000e+00 : f32
    %5 = vector.broadcast %cst : f32 to vector<1x4x1xf32>
    %6 = arith.addf %5, %4 : vector<1x4x1xf32>
    %7 = arith.divf %5, %6 : vector<1x4x1xf32>
    %8 = vector.broadcast %7 : vector<1x4x1xf32> to vector<1x4x64xf32>
    %9 = arith.mulf %1, %8 : vector<1x4x64xf32>
    %c0_5 = arith.constant 0 : index
    %c0_6 = arith.constant 0 : index
    %c0_7 = arith.constant 0 : index
    %10 = vector.load %arg3[%c0_5, %c0_6, %c0_7] : memref<1x4x64xbf16, #tpu.memory_space<vmem>>, vector<1x4x64xbf16>
    %11 = arith.extf %10 : vector<1x4x64xbf16> to vector<1x4x64xf32>
    %c0_8 = arith.constant 0 : index
    %c0_9 = arith.constant 0 : index
    %c0_10 = arith.constant 0 : index
    %12 = vector.load %arg4[%c0_8, %c0_9, %c0_10] : memref<1x4x1xf32, #tpu.memory_space<vmem>>, vector<1x4x1xf32>
    %13 = arith.negf %12 : vector<1x4x1xf32>
    %14 = math.exp %13 : vector<1x4x1xf32>
    %cst_11 = arith.constant 1.000000e+00 : f32
    %15 = vector.broadcast %cst_11 : f32 to vector<1x4x1xf32>
    %16 = arith.addf %15, %14 : vector<1x4x1xf32>
    %17 = arith.divf %15, %16 : vector<1x4x1xf32>
    %18 = vector.broadcast %17 : vector<1x4x1xf32> to vector<1x4x64xf32>
    %19 = arith.mulf %11, %18 : vector<1x4x64xf32>
    %20 = arith.truncf %9 : vector<1x4x64xf32> to vector<1x4x64xbf16>
    %c0_12 = arith.constant 0 : index
    %c0_13 = arith.constant 0 : index
    %c0_14 = arith.constant 0 : index
    %21 = vector.load %arg9[%c0_12, %c0_13, %c0_14] : memref<1x4x64xbf16, #tpu.memory_space<vmem>>, vector<1x4x64xbf16>
    tpu.vector_store %arg9[%c0_12, %c0_13, %c0_14], %20 {strides = array<i32>} : memref<1x4x64xbf16, #tpu.memory_space<vmem>>, vector<1x4x64xbf16>,
    %22 = arith.truncf %19 : vector<1x4x64xf32> to vector<1x4x64xbf16>
    %c0_15 = arith.constant 0 : index
    %c0_16 = arith.constant 0 : index
    %c0_17 = arith.constant 0 : index
    %23 = vector.load %arg10[%c0_15, %c0_16, %c0_17] : memref<1x4x64xbf16, #tpu.memory_space<vmem>>, vector<1x4x64xbf16>
    tpu.vector_store %arg10[%c0_15, %c0_16, %c0_17], %22 {strides = array<i32>} : memref<1x4x64xbf16, #tpu.memory_space<vmem>>, vector<1x4x64xbf16>,
    %c0_18 = arith.constant 0 : index
    %c0_19 = arith.constant 0 : index
    %c0_20 = arith.constant 0 : index
    %24 = vector.load %arg5[%c0_18, %c0_19, %c0_20] : memref<1x1x64xf32, #tpu.memory_space<vmem>>, vector<1x1x64xf32>
    %25 = vector.broadcast %24 : vector<1x1x64xf32> to vector<1x4x64xf32>
    %26 = arith.mulf %9, %25 : vector<1x4x64xf32>
    %c0_21 = arith.constant 0 : index
    %c0_22 = arith.constant 0 : index
    %c0_23 = arith.constant 0 : index
    %27 = vector.load %arg6[%c0_21, %c0_22, %c0_23] : memref<1x1x64xf32, #tpu.memory_space<vmem>>, vector<1x1x64xf32>
    %28 = vector.broadcast %27 : vector<1x1x64xf32> to vector<1x4x64xf32>
    %29 = arith.addf %26, %28 : vector<1x4x64xf32>
    %c0_24 = arith.constant 0 : index
    %c0_25 = arith.constant 0 : index
    %c0_26 = arith.constant 0 : index
    %30 = vector.load %arg7[%c0_24, %c0_25, %c0_26] : memref<1x1x64xf32, #tpu.memory_space<vmem>>, vector<1x1x64xf32>
    %31 = vector.broadcast %30 : vector<1x1x64xf32> to vector<1x4x64xf32>
    %32 = arith.mulf %19, %31 : vector<1x4x64xf32>
    %33 = arith.addf %29, %32 : vector<1x4x64xf32>
    %c0_27 = arith.constant 0 : index
    %c0_28 = arith.constant 0 : index
    %c0_29 = arith.constant 0 : index
    %34 = vector.load %arg8[%c0_27, %c0_28, %c0_29] : memref<1x1x64xf32, #tpu.memory_space<vmem>>, vector<1x1x64xf32>
    %35 = vector.broadcast %34 : vector<1x1x64xf32> to vector<1x4x64xf32>
    %36 = arith.addf %33, %35 : vector<1x4x64xf32>
    %37 = arith.truncf %36 : vector<1x4x64xf32> to vector<1x4x64xbf16>
    %c0_30 = arith.constant 0 : index
    %c0_31 = arith.constant 0 : index
    %c0_32 = arith.constant 0 : index
    %38 = vector.load %arg11[%c0_30, %c0_31, %c0_32] : memref<1x4x64xbf16, #tpu.memory_space<vmem>>, vector<1x4x64xbf16>
    tpu.vector_store %arg11[%c0_30, %c0_31, %c0_32], %37 {strides = array<i32>} : memref<1x4x64xbf16, #tpu.memory_space<vmem>>, vector<1x4x64xbf16>,
    return
  }
  func.func @transform_0(%arg0: i32) -> (i32, i32, i32) {
    %c0_i32 = arith.constant 0 : i32
    %c0_i32_0 = arith.constant 0 : i32
    %c0_i32_1 = arith.constant 0 : i32
    return %arg0, %c0_i32, %c0_i32_0 : i32, i32, i32
  }
  func.func @transform_1(%arg0: i32) -> (i32, i32, i32) {
    %c0_i32 = arith.constant 0 : i32
    %c0_i32_0 = arith.constant 0 : i32
    %c0_i32_1 = arith.constant 0 : i32
    return %arg0, %c0_i32, %c0_i32_0 : i32, i32, i32
  }
  func.func @transform_2(%arg0: i32) -> (i32, i32, i32) {
    %c0_i32 = arith.constant 0 : i32
    %c0_i32_0 = arith.constant 0 : i32
    %c0_i32_1 = arith.constant 0 : i32
    return %arg0, %c0_i32, %c0_i32_0 : i32, i32, i32
  }
  func.func @transform_3(%arg0: i32) -> (i32, i32, i32) {
    %c0_i32 = arith.constant 0 : i32
    %c0_i32_0 = arith.constant 0 : i32
    %c0_i32_1 = arith.constant 0 : i32
    return %arg0, %c0_i32, %c0_i32_0 : i32, i32, i32
  }
  func.func @transform_4(%arg0: i32) -> (i32, i32, i32) {
    %c0_i32 = arith.constant 0 : i32
    %c0_i32_0 = arith.constant 0 : i32
    %c0_i32_1 = arith.constant 0 : i32
    %c0_i32_2 = arith.constant 0 : i32
    return %c0_i32, %c0_i32_0, %c0_i32_1 : i32, i32, i32
  }
  func.func @transform_5(%arg0: i32) -> (i32, i32, i32) {
    %c0_i32 = arith.constant 0 : i32
    %c0_i32_0 = arith.constant 0 : i32
    %c0_i32_1 = arith.constant 0 : i32
    %c0_i32_2 = arith.constant 0 : i32
    return %c0_i32, %c0_i32_0, %c0_i32_1 : i32, i32, i32
  }
  func.func @transform_6(%arg0: i32) -> (i32, i32, i32) {
    %c0_i32 = arith.constant 0 : i32
    %c0_i32_0 = arith.constant 0 : i32
    %c0_i32_1 = arith.constant 0 : i32
    %c0_i32_2 = arith.constant 0 : i32
    return %c0_i32, %c0_i32_0, %c0_i32_1 : i32, i32, i32
  }
  func.func @transform_7(%arg0: i32) -> (i32, i32, i32) {
    %c0_i32 = arith.constant 0 : i32
    %c0_i32_0 = arith.constant 0 : i32
    %c0_i32_1 = arith.constant 0 : i32
    %c0_i32_2 = arith.constant 0 : i32
    return %c0_i32, %c0_i32_0, %c0_i32_1 : i32, i32, i32
  }
  func.func @transform_8(%arg0: i32) -> (i32, i32, i32) {
    %c0_i32 = arith.constant 0 : i32
    %c0_i32_0 = arith.constant 0 : i32
    %c0_i32_1 = arith.constant 0 : i32
    return %arg0, %c0_i32, %c0_i32_0 : i32, i32, i32
  }
  func.func @transform_9(%arg0: i32) -> (i32, i32, i32) {
    %c0_i32 = arith.constant 0 : i32
    %c0_i32_0 = arith.constant 0 : i32
    %c0_i32_1 = arith.constant 0 : i32
    return %arg0, %c0_i32, %c0_i32_0 : i32, i32, i32
  }
  func.func @transform_10(%arg0: i32) -> (i32, i32, i32) {
    %c0_i32 = arith.constant 0 : i32
    %c0_i32_0 = arith.constant 0 : i32
    %c0_i32_1 = arith.constant 0 : i32
    return %arg0, %c0_i32, %c0_i32_0 : i32, i32, i32
  }
}

module attributes {stable_mosaic.version = 11 : i64} {
  func.func @kernel(%arg0: i32, %arg1: i32, %arg2: i32, %arg3: memref<8x64xbf16, #tpu.memory_space<vmem>>, %arg4: memref<64x128xbf16, #tpu.memory_space<vmem>>, %arg5: memref<1x128xf32, #tpu.memory_space<vmem>>, %arg6: memref<8x128xbf16, #tpu.memory_space<vmem>>, %arg7: memref<8x128xf32, #tpu.memory_space<vmem>>) attributes {dimension_semantics = [#tpu.dimension_semantics<parallel>, #tpu.dimension_semantics<parallel>, #tpu.dimension_semantics<arbitrary>], iteration_bounds = array<i64: 1, 1, 1>, scalar_prefetch = 0 : i64, scratch_operands = 1 : i64, tpu.core_type = #tpu.core_type<tc>, window_params = [{transform_indices = @transform_0, window_bounds = array<i64: 8, 64>}, {transform_indices = @transform_1, window_bounds = array<i64: 64, 128>}, {transform_indices = @transform_2, window_bounds = array<i64: 1, 128>}, {transform_indices = @transform_3, window_bounds = array<i64: 8, 128>}]} {
    %c0_i32 = arith.constant 0 : i32
    %0 = arith.cmpi eq, %arg2, %c0_i32 : i32
    %1 = arith.extui %0 : i1 to i32
    %c0_i32_0 = arith.constant 0 : i32
    %2 = arith.cmpi ne, %1, %c0_i32_0 : i32
    scf.if %2 {
      %cst_10 = arith.constant 0.000000e+00 : f32
      %12 = vector.broadcast %cst_10 : f32 to vector<8x128xf32>
      %c0_11 = arith.constant 0 : index
      %c0_12 = arith.constant 0 : index
      %13 = vector.load %arg7[%c0_11, %c0_12] : memref<8x128xf32, #tpu.memory_space<vmem>>, vector<8x128xf32>
      tpu.vector_store %arg7[%c0_11, %c0_12], %12 {strides = array<i32>} : memref<8x128xf32, #tpu.memory_space<vmem>>, vector<8x128xf32>,
    } else {
    }
    %c0 = arith.constant 0 : index
    %c0_1 = arith.constant 0 : index
    %3 = vector.load %arg7[%c0, %c0_1] : memref<8x128xf32, #tpu.memory_space<vmem>>, vector<8x128xf32>
    %c0_2 = arith.constant 0 : index
    %c0_3 = arith.constant 0 : index
    %4 = vector.load %arg3[%c0_2, %c0_3] : memref<8x64xbf16, #tpu.memory_space<vmem>>, vector<8x64xbf16>
    %c0_4 = arith.constant 0 : index
    %c0_5 = arith.constant 0 : index
    %5 = vector.load %arg4[%c0_4, %c0_5] : memref<64x128xbf16, #tpu.memory_space<vmem>>, vector<64x128xbf16>
    %cst = arith.constant dense<0.000000e+00> : vector<8x128xf32>
    %6 = tpu.matmul %4, %5, %cst {dimension_numbers = #tpu.dot_dimension_numbers<[1], [0], [0], [1], [0, 0, 1, 1], [], []>} : vector<8x64xbf16>, vector<64x128xbf16>, vector<8x128xf32> -> vector<8x128xf32>
    %7 = arith.addf %3, %6 : vector<8x128xf32>
    %c0_6 = arith.constant 0 : index
    %c0_7 = arith.constant 0 : index
    %8 = vector.load %arg7[%c0_6, %c0_7] : memref<8x128xf32, #tpu.memory_space<vmem>>, vector<8x128xf32>
    tpu.vector_store %arg7[%c0_6, %c0_7], %7 {strides = array<i32>} : memref<8x128xf32, #tpu.memory_space<vmem>>, vector<8x128xf32>,
    %c0_i32_8 = arith.constant 0 : i32
    %9 = arith.cmpi eq, %arg2, %c0_i32_8 : i32
    %10 = arith.extui %9 : i1 to i32
    %c0_i32_9 = arith.constant 0 : i32
    %11 = arith.cmpi ne, %10, %c0_i32_9 : i32
    scf.if %11 {
      %c0_10 = arith.constant 0 : index
      %c0_11 = arith.constant 0 : index
      %12 = vector.load %arg7[%c0_10, %c0_11] : memref<8x128xf32, #tpu.memory_space<vmem>>, vector<8x128xf32>
      %c0_12 = arith.constant 0 : index
      %c0_13 = arith.constant 0 : index
      %13 = vector.load %arg5[%c0_12, %c0_13] : memref<1x128xf32, #tpu.memory_space<vmem>>, vector<1x128xf32>
      %14 = vector.broadcast %13 : vector<1x128xf32> to vector<8x128xf32>
      %15 = arith.addf %12, %14 : vector<8x128xf32>
      %cst_14 = arith.constant 0.000000e+00 : f32
      %16 = vector.broadcast %cst_14 : f32 to vector<8x128xf32>
      %17 = arith.maximumf %15, %16 : vector<8x128xf32>
      %18 = arith.truncf %17 : vector<8x128xf32> to vector<8x128xbf16>
      %c0_15 = arith.constant 0 : index
      %c0_16 = arith.constant 0 : index
      %19 = vector.load %arg6[%c0_15, %c0_16] : memref<8x128xbf16, #tpu.memory_space<vmem>>, vector<8x128xbf16>
      tpu.vector_store %arg6[%c0_15, %c0_16], %18 {strides = array<i32>} : memref<8x128xbf16, #tpu.memory_space<vmem>>, vector<8x128xbf16>,
    } else {
    }
    return
  }
  func.func @transform_0(%arg0: i32, %arg1: i32, %arg2: i32) -> (i32, i32) {
    %c0_i32 = arith.constant 0 : i32
    return %arg0, %arg2 : i32, i32
  }
  func.func @transform_1(%arg0: i32, %arg1: i32, %arg2: i32) -> (i32, i32) {
    %c0_i32 = arith.constant 0 : i32
    return %arg2, %arg1 : i32, i32
  }
  func.func @transform_2(%arg0: i32, %arg1: i32, %arg2: i32) -> (i32, i32) {
    %c0_i32 = arith.constant 0 : i32
    %c0_i32_0 = arith.constant 0 : i32
    return %c0_i32, %arg1 : i32, i32
  }
  func.func @transform_3(%arg0: i32, %arg1: i32, %arg2: i32) -> (i32, i32) {
    %c0_i32 = arith.constant 0 : i32
    return %arg0, %arg1 : i32, i32
  }
}

module attributes {stable_mosaic.version = 11 : i64} {
  func.func @kernel(%arg0: i32, %arg1: i32, %arg2: i32, %arg3: memref<2x288xbf16, #tpu.memory_space<vmem>>, %arg4: memref<288x128xbf16, #tpu.memory_space<vmem>>, %arg5: memref<1x128xf32, #tpu.memory_space<vmem>>, %arg6: memref<2x128xbf16, #tpu.memory_space<vmem>>, %arg7: memref<2x128xf32, #tpu.memory_space<vmem>>) attributes {dimension_semantics = [#tpu.dimension_semantics<parallel>, #tpu.dimension_semantics<parallel>, #tpu.dimension_semantics<arbitrary>], iteration_bounds = array<i64: 1, 1, 1>, scalar_prefetch = 0 : i64, scratch_operands = 1 : i64, tpu.core_type = #tpu.core_type<tc>, window_params = [{transform_indices = @transform_0, window_bounds = array<i64: 2, 288>}, {transform_indices = @transform_1, window_bounds = array<i64: 288, 128>}, {transform_indices = @transform_2, window_bounds = array<i64: 1, 128>}, {transform_indices = @transform_3, window_bounds = array<i64: 2, 128>}]} {
    %c0_i32 = arith.constant 0 : i32
    %0 = arith.cmpi eq, %arg2, %c0_i32 : i32
    %1 = arith.extui %0 : i1 to i32
    %c0_i32_0 = arith.constant 0 : i32
    %2 = arith.cmpi ne, %1, %c0_i32_0 : i32
    scf.if %2 {
      %cst_10 = arith.constant 0.000000e+00 : f32
      %12 = vector.broadcast %cst_10 : f32 to vector<2x128xf32>
      %c0_11 = arith.constant 0 : index
      %c0_12 = arith.constant 0 : index
      %13 = vector.load %arg7[%c0_11, %c0_12] : memref<2x128xf32, #tpu.memory_space<vmem>>, vector<2x128xf32>
      tpu.vector_store %arg7[%c0_11, %c0_12], %12 {strides = array<i32>} : memref<2x128xf32, #tpu.memory_space<vmem>>, vector<2x128xf32>,
    } else {
    }
    %c0 = arith.constant 0 : index
    %c0_1 = arith.constant 0 : index
    %3 = vector.load %arg7[%c0, %c0_1] : memref<2x128xf32, #tpu.memory_space<vmem>>, vector<2x128xf32>
    %c0_2 = arith.constant 0 : index
    %c0_3 = arith.constant 0 : index
    %4 = vector.load %arg3[%c0_2, %c0_3] : memref<2x288xbf16, #tpu.memory_space<vmem>>, vector<2x288xbf16>
    %c0_4 = arith.constant 0 : index
    %c0_5 = arith.constant 0 : index
    %5 = vector.load %arg4[%c0_4, %c0_5] : memref<288x128xbf16, #tpu.memory_space<vmem>>, vector<288x128xbf16>
    %cst = arith.constant dense<0.000000e+00> : vector<2x128xf32>
    %6 = tpu.matmul %4, %5, %cst {dimension_numbers = #tpu.dot_dimension_numbers<[1], [0], [0], [1], [0, 0, 1, 1], [], []>} : vector<2x288xbf16>, vector<288x128xbf16>, vector<2x128xf32> -> vector<2x128xf32>
    %7 = arith.addf %3, %6 : vector<2x128xf32>
    %c0_6 = arith.constant 0 : index
    %c0_7 = arith.constant 0 : index
    %8 = vector.load %arg7[%c0_6, %c0_7] : memref<2x128xf32, #tpu.memory_space<vmem>>, vector<2x128xf32>
    tpu.vector_store %arg7[%c0_6, %c0_7], %7 {strides = array<i32>} : memref<2x128xf32, #tpu.memory_space<vmem>>, vector<2x128xf32>,
    %c0_i32_8 = arith.constant 0 : i32
    %9 = arith.cmpi eq, %arg2, %c0_i32_8 : i32
    %10 = arith.extui %9 : i1 to i32
    %c0_i32_9 = arith.constant 0 : i32
    %11 = arith.cmpi ne, %10, %c0_i32_9 : i32
    scf.if %11 {
      %c0_10 = arith.constant 0 : index
      %c0_11 = arith.constant 0 : index
      %12 = vector.load %arg7[%c0_10, %c0_11] : memref<2x128xf32, #tpu.memory_space<vmem>>, vector<2x128xf32>
      %c0_12 = arith.constant 0 : index
      %c0_13 = arith.constant 0 : index
      %13 = vector.load %arg5[%c0_12, %c0_13] : memref<1x128xf32, #tpu.memory_space<vmem>>, vector<1x128xf32>
      %14 = vector.broadcast %13 : vector<1x128xf32> to vector<2x128xf32>
      %15 = arith.addf %12, %14 : vector<2x128xf32>
      %cst_14 = arith.constant 0.000000e+00 : f32
      %16 = vector.broadcast %cst_14 : f32 to vector<2x128xf32>
      %17 = arith.maximumf %15, %16 : vector<2x128xf32>
      %18 = arith.truncf %17 : vector<2x128xf32> to vector<2x128xbf16>
      %c0_15 = arith.constant 0 : index
      %c0_16 = arith.constant 0 : index
      %19 = vector.load %arg6[%c0_15, %c0_16] : memref<2x128xbf16, #tpu.memory_space<vmem>>, vector<2x128xbf16>
      tpu.vector_store %arg6[%c0_15, %c0_16], %18 {strides = array<i32>} : memref<2x128xbf16, #tpu.memory_space<vmem>>, vector<2x128xbf16>,
    } else {
    }
    return
  }
  func.func @transform_0(%arg0: i32, %arg1: i32, %arg2: i32) -> (i32, i32) {
    %c0_i32 = arith.constant 0 : i32
    return %arg0, %arg2 : i32, i32
  }
  func.func @transform_1(%arg0: i32, %arg1: i32, %arg2: i32) -> (i32, i32) {
    %c0_i32 = arith.constant 0 : i32
    return %arg2, %arg1 : i32, i32
  }
  func.func @transform_2(%arg0: i32, %arg1: i32, %arg2: i32) -> (i32, i32) {
    %c0_i32 = arith.constant 0 : i32
    %c0_i32_0 = arith.constant 0 : i32
    return %c0_i32, %arg1 : i32, i32
  }
  func.func @transform_3(%arg0: i32, %arg1: i32, %arg2: i32) -> (i32, i32) {
    %c0_i32 = arith.constant 0 : i32
    return %arg0, %arg1 : i32, i32
  }
}

module attributes {stable_mosaic.version = 11 : i64} {
  func.func @kernel(%arg0: i32, %arg1: i32, %arg2: i32, %arg3: memref<2x64xbf16, #tpu.memory_space<vmem>>, %arg4: memref<64x128xbf16, #tpu.memory_space<vmem>>, %arg5: memref<1x128xf32, #tpu.memory_space<vmem>>, %arg6: memref<2x128xbf16, #tpu.memory_space<vmem>>, %arg7: memref<2x128xf32, #tpu.memory_space<vmem>>) attributes {dimension_semantics = [#tpu.dimension_semantics<parallel>, #tpu.dimension_semantics<parallel>, #tpu.dimension_semantics<arbitrary>], iteration_bounds = array<i64: 1, 1, 1>, scalar_prefetch = 0 : i64, scratch_operands = 1 : i64, tpu.core_type = #tpu.core_type<tc>, window_params = [{transform_indices = @transform_0, window_bounds = array<i64: 2, 64>}, {transform_indices = @transform_1, window_bounds = array<i64: 64, 128>}, {transform_indices = @transform_2, window_bounds = array<i64: 1, 128>}, {transform_indices = @transform_3, window_bounds = array<i64: 2, 128>}]} {
    %c0_i32 = arith.constant 0 : i32
    %0 = arith.cmpi eq, %arg2, %c0_i32 : i32
    %1 = arith.extui %0 : i1 to i32
    %c0_i32_0 = arith.constant 0 : i32
    %2 = arith.cmpi ne, %1, %c0_i32_0 : i32
    scf.if %2 {
      %cst_10 = arith.constant 0.000000e+00 : f32
      %12 = vector.broadcast %cst_10 : f32 to vector<2x128xf32>
      %c0_11 = arith.constant 0 : index
      %c0_12 = arith.constant 0 : index
      %13 = vector.load %arg7[%c0_11, %c0_12] : memref<2x128xf32, #tpu.memory_space<vmem>>, vector<2x128xf32>
      tpu.vector_store %arg7[%c0_11, %c0_12], %12 {strides = array<i32>} : memref<2x128xf32, #tpu.memory_space<vmem>>, vector<2x128xf32>,
    } else {
    }
    %c0 = arith.constant 0 : index
    %c0_1 = arith.constant 0 : index
    %3 = vector.load %arg7[%c0, %c0_1] : memref<2x128xf32, #tpu.memory_space<vmem>>, vector<2x128xf32>
    %c0_2 = arith.constant 0 : index
    %c0_3 = arith.constant 0 : index
    %4 = vector.load %arg3[%c0_2, %c0_3] : memref<2x64xbf16, #tpu.memory_space<vmem>>, vector<2x64xbf16>
    %c0_4 = arith.constant 0 : index
    %c0_5 = arith.constant 0 : index
    %5 = vector.load %arg4[%c0_4, %c0_5] : memref<64x128xbf16, #tpu.memory_space<vmem>>, vector<64x128xbf16>
    %cst = arith.constant dense<0.000000e+00> : vector<2x128xf32>
    %6 = tpu.matmul %4, %5, %cst {dimension_numbers = #tpu.dot_dimension_numbers<[1], [0], [0], [1], [0, 0, 1, 1], [], []>} : vector<2x64xbf16>, vector<64x128xbf16>, vector<2x128xf32> -> vector<2x128xf32>
    %7 = arith.addf %3, %6 : vector<2x128xf32>
    %c0_6 = arith.constant 0 : index
    %c0_7 = arith.constant 0 : index
    %8 = vector.load %arg7[%c0_6, %c0_7] : memref<2x128xf32, #tpu.memory_space<vmem>>, vector<2x128xf32>
    tpu.vector_store %arg7[%c0_6, %c0_7], %7 {strides = array<i32>} : memref<2x128xf32, #tpu.memory_space<vmem>>, vector<2x128xf32>,
    %c0_i32_8 = arith.constant 0 : i32
    %9 = arith.cmpi eq, %arg2, %c0_i32_8 : i32
    %10 = arith.extui %9 : i1 to i32
    %c0_i32_9 = arith.constant 0 : i32
    %11 = arith.cmpi ne, %10, %c0_i32_9 : i32
    scf.if %11 {
      %c0_10 = arith.constant 0 : index
      %c0_11 = arith.constant 0 : index
      %12 = vector.load %arg7[%c0_10, %c0_11] : memref<2x128xf32, #tpu.memory_space<vmem>>, vector<2x128xf32>
      %c0_12 = arith.constant 0 : index
      %c0_13 = arith.constant 0 : index
      %13 = vector.load %arg5[%c0_12, %c0_13] : memref<1x128xf32, #tpu.memory_space<vmem>>, vector<1x128xf32>
      %14 = vector.broadcast %13 : vector<1x128xf32> to vector<2x128xf32>
      %15 = arith.addf %12, %14 : vector<2x128xf32>
      %16 = arith.truncf %15 : vector<2x128xf32> to vector<2x128xbf16>
      %c0_14 = arith.constant 0 : index
      %c0_15 = arith.constant 0 : index
      %17 = vector.load %arg6[%c0_14, %c0_15] : memref<2x128xbf16, #tpu.memory_space<vmem>>, vector<2x128xbf16>
      tpu.vector_store %arg6[%c0_14, %c0_15], %16 {strides = array<i32>} : memref<2x128xbf16, #tpu.memory_space<vmem>>, vector<2x128xbf16>,
    } else {
    }
    return
  }
  func.func @transform_0(%arg0: i32, %arg1: i32, %arg2: i32) -> (i32, i32) {
    %c0_i32 = arith.constant 0 : i32
    return %arg0, %arg2 : i32, i32
  }
  func.func @transform_1(%arg0: i32, %arg1: i32, %arg2: i32) -> (i32, i32) {
    %c0_i32 = arith.constant 0 : i32
    return %arg2, %arg1 : i32, i32
  }
  func.func @transform_2(%arg0: i32, %arg1: i32, %arg2: i32) -> (i32, i32) {
    %c0_i32 = arith.constant 0 : i32
    %c0_i32_0 = arith.constant 0 : i32
    return %c0_i32, %arg1 : i32, i32
  }
  func.func @transform_3(%arg0: i32, %arg1: i32, %arg2: i32) -> (i32, i32) {
    %c0_i32 = arith.constant 0 : i32
    return %arg0, %arg1 : i32, i32
  }
}

module attributes {stable_mosaic.version = 11 : i64} {
  func.func @kernel(%arg0: i32, %arg1: i32, %arg2: i32, %arg3: memref<2x32xbf16, #tpu.memory_space<vmem>>, %arg4: memref<32x128xbf16, #tpu.memory_space<vmem>>, %arg5: memref<1x128xf32, #tpu.memory_space<vmem>>, %arg6: memref<2x128xbf16, #tpu.memory_space<vmem>>, %arg7: memref<2x128xbf16, #tpu.memory_space<vmem>>, %arg8: memref<2x128xf32, #tpu.memory_space<vmem>>) attributes {dimension_semantics = [#tpu.dimension_semantics<parallel>, #tpu.dimension_semantics<parallel>, #tpu.dimension_semantics<arbitrary>], iteration_bounds = array<i64: 1, 1, 1>, scalar_prefetch = 0 : i64, scratch_operands = 1 : i64, tpu.core_type = #tpu.core_type<tc>, window_params = [{transform_indices = @transform_0, window_bounds = array<i64: 2, 32>}, {transform_indices = @transform_1, window_bounds = array<i64: 32, 128>}, {transform_indices = @transform_2, window_bounds = array<i64: 1, 128>}, {transform_indices = @transform_3, window_bounds = array<i64: 2, 128>}, {transform_indices = @transform_4, window_bounds = array<i64: 2, 128>}]} {
    %c0_i32 = arith.constant 0 : i32
    %0 = arith.cmpi eq, %arg2, %c0_i32 : i32
    %1 = arith.extui %0 : i1 to i32
    %c0_i32_0 = arith.constant 0 : i32
    %2 = arith.cmpi ne, %1, %c0_i32_0 : i32
    scf.if %2 {
      %cst_10 = arith.constant 0.000000e+00 : f32
      %12 = vector.broadcast %cst_10 : f32 to vector<2x128xf32>
      %c0_11 = arith.constant 0 : index
      %c0_12 = arith.constant 0 : index
      %13 = vector.load %arg8[%c0_11, %c0_12] : memref<2x128xf32, #tpu.memory_space<vmem>>, vector<2x128xf32>
      tpu.vector_store %arg8[%c0_11, %c0_12], %12 {strides = array<i32>} : memref<2x128xf32, #tpu.memory_space<vmem>>, vector<2x128xf32>,
    } else {
    }
    %c0 = arith.constant 0 : index
    %c0_1 = arith.constant 0 : index
    %3 = vector.load %arg8[%c0, %c0_1] : memref<2x128xf32, #tpu.memory_space<vmem>>, vector<2x128xf32>
    %c0_2 = arith.constant 0 : index
    %c0_3 = arith.constant 0 : index
    %4 = vector.load %arg3[%c0_2, %c0_3] : memref<2x32xbf16, #tpu.memory_space<vmem>>, vector<2x32xbf16>
    %c0_4 = arith.constant 0 : index
    %c0_5 = arith.constant 0 : index
    %5 = vector.load %arg4[%c0_4, %c0_5] : memref<32x128xbf16, #tpu.memory_space<vmem>>, vector<32x128xbf16>
    %cst = arith.constant dense<0.000000e+00> : vector<2x128xf32>
    %6 = tpu.matmul %4, %5, %cst {dimension_numbers = #tpu.dot_dimension_numbers<[1], [0], [0], [1], [0, 0, 1, 1], [], []>} : vector<2x32xbf16>, vector<32x128xbf16>, vector<2x128xf32> -> vector<2x128xf32>
    %7 = arith.addf %3, %6 : vector<2x128xf32>
    %c0_6 = arith.constant 0 : index
    %c0_7 = arith.constant 0 : index
    %8 = vector.load %arg8[%c0_6, %c0_7] : memref<2x128xf32, #tpu.memory_space<vmem>>, vector<2x128xf32>
    tpu.vector_store %arg8[%c0_6, %c0_7], %7 {strides = array<i32>} : memref<2x128xf32, #tpu.memory_space<vmem>>, vector<2x128xf32>,
    %c0_i32_8 = arith.constant 0 : i32
    %9 = arith.cmpi eq, %arg2, %c0_i32_8 : i32
    %10 = arith.extui %9 : i1 to i32
    %c0_i32_9 = arith.constant 0 : i32
    %11 = arith.cmpi ne, %10, %c0_i32_9 : i32
    scf.if %11 {
      %c0_10 = arith.constant 0 : index
      %c0_11 = arith.constant 0 : index
      %12 = vector.load %arg8[%c0_10, %c0_11] : memref<2x128xf32, #tpu.memory_space<vmem>>, vector<2x128xf32>
      %c0_12 = arith.constant 0 : index
      %c0_13 = arith.constant 0 : index
      %13 = vector.load %arg5[%c0_12, %c0_13] : memref<1x128xf32, #tpu.memory_space<vmem>>, vector<1x128xf32>
      %14 = vector.broadcast %13 : vector<1x128xf32> to vector<2x128xf32>
      %15 = arith.addf %12, %14 : vector<2x128xf32>
      %c0_14 = arith.constant 0 : index
      %c0_15 = arith.constant 0 : index
      %16 = vector.load %arg6[%c0_14, %c0_15] : memref<2x128xbf16, #tpu.memory_space<vmem>>, vector<2x128xbf16>
      %17 = arith.extf %16 : vector<2x128xbf16> to vector<2x128xf32>
      %18 = arith.addf %15, %17 : vector<2x128xf32>
      %cst_16 = arith.constant 0.000000e+00 : f32
      %19 = vector.broadcast %cst_16 : f32 to vector<2x128xf32>
      %20 = arith.maximumf %18, %19 : vector<2x128xf32>
      %21 = arith.truncf %20 : vector<2x128xf32> to vector<2x128xbf16>
      %c0_17 = arith.constant 0 : index
      %c0_18 = arith.constant 0 : index
      %22 = vector.load %arg7[%c0_17, %c0_18] : memref<2x128xbf16, #tpu.memory_space<vmem>>, vector<2x128xbf16>
      tpu.vector_store %arg7[%c0_17, %c0_18], %21 {strides = array<i32>} : memref<2x128xbf16, #tpu.memory_space<vmem>>, vector<2x128xbf16>,
    } else {
    }
    return
  }
  func.func @transform_0(%arg0: i32, %arg1: i32, %arg2: i32) -> (i32, i32) {
    %c0_i32 = arith.constant 0 : i32
    return %arg0, %arg2 : i32, i32
  }
  func.func @transform_1(%arg0: i32, %arg1: i32, %arg2: i32) -> (i32, i32) {
    %c0_i32 = arith.constant 0 : i32
    return %arg2, %arg1 : i32, i32
  }
  func.func @transform_2(%arg0: i32, %arg1: i32, %arg2: i32) -> (i32, i32) {
    %c0_i32 = arith.constant 0 : i32
    %c0_i32_0 = arith.constant 0 : i32
    return %c0_i32, %arg1 : i32, i32
  }
  func.func @transform_3(%arg0: i32, %arg1: i32, %arg2: i32) -> (i32, i32) {
    %c0_i32 = arith.constant 0 : i32
    return %arg0, %arg1 : i32, i32
  }
  func.func @transform_4(%arg0: i32, %arg1: i32, %arg2: i32) -> (i32, i32) {
    %c0_i32 = arith.constant 0 : i32
    return %arg0, %arg1 : i32, i32
  }
}

module attributes {stable_mosaic.version = 11 : i64} {
  func.func @_cbam_channel_kernel(%arg0: i32, %arg1: memref<1x1x128xbf16, #tpu.memory_space<vmem>>, %arg2: memref<128x16xbf16, #tpu.memory_space<vmem>>, %arg3: memref<1x16xf32, #tpu.memory_space<vmem>>, %arg4: memref<16x128xbf16, #tpu.memory_space<vmem>>, %arg5: memref<1x128xf32, #tpu.memory_space<vmem>>, %arg6: memref<1x1x128xbf16, #tpu.memory_space<vmem>>, %arg7: memref<1x1x2xf32, #tpu.memory_space<vmem>>) attributes {dimension_semantics = [#tpu.dimension_semantics<parallel>], iteration_bounds = array<i64: 2>, scalar_prefetch = 0 : i64, scratch_operands = 0 : i64, tpu.core_type = #tpu.core_type<tc>, window_params = [{transform_indices = @transform_0, window_bounds = array<i64: 1, 1, 128>}, {pipeline_mode = #tpu.pipeline_mode<synchronous>, transform_indices = @transform_1, window_bounds = array<i64: 128, 16>}, {pipeline_mode = #tpu.pipeline_mode<synchronous>, transform_indices = @transform_2, window_bounds = array<i64: 1, 16>}, {pipeline_mode = #tpu.pipeline_mode<synchronous>, transform_indices = @transform_3, window_bounds = array<i64: 16, 128>}, {pipeline_mode = #tpu.pipeline_mode<synchronous>, transform_indices = @transform_4, window_bounds = array<i64: 1, 128>}, {transform_indices = @transform_5, window_bounds = array<i64: 1, 1, 128>}, {transform_indices = @transform_6, window_bounds = array<i64: 1, 1, 2>}]} {
    %c0 = arith.constant 0 : index
    %c0_0 = arith.constant 0 : index
    %c0_1 = arith.constant 0 : index
    %0 = vector.load %arg1[%c0, %c0_0, %c0_1] : memref<1x1x128xbf16, #tpu.memory_space<vmem>>, vector<1x1x128xbf16>
    %1 = vector.shape_cast %0 : vector<1x1x128xbf16> to vector<1x128xbf16>
    %2 = arith.extf %1 : vector<1x128xbf16> to vector<1x128xf32>
    %cst = arith.constant dense<0.000000e+00> : vector<128xf32>
    %3 = vector.multi_reduction <add>, %2, %cst [0] : vector<1x128xf32> to vector<128xf32>
    %4 = vector.shape_cast %3 : vector<128xf32> to vector<1x128xf32>
    %cst_2 = arith.constant 1.000000e+00 : f32
    %5 = vector.broadcast %cst_2 : f32 to vector<1x128xf32>
    %6 = arith.divf %4, %5 : vector<1x128xf32>
    %cst_3 = arith.constant dense<0xFF800000> : vector<128xf32>
    %7 = vector.multi_reduction <maximumf>, %2, %cst_3 [0] : vector<1x128xf32> to vector<128xf32>
    %8 = vector.shape_cast %7 : vector<128xf32> to vector<1x128xf32>
    %9 = tpu.concatenate %6, %8 in 0 : vector<1x128xf32>, vector<1x128xf32> -> vector<2x128xf32>
    %10 = arith.truncf %9 : vector<2x128xf32> to vector<2x128xbf16>
    %c0_4 = arith.constant 0 : index
    %c0_5 = arith.constant 0 : index
    %11 = vector.load %arg2[%c0_4, %c0_5] : memref<128x16xbf16, #tpu.memory_space<vmem>>, vector<128x16xbf16>
    %cst_6 = arith.constant dense<0.000000e+00> : vector<2x16xf32>
    %12 = tpu.matmul %10, %11, %cst_6 {dimension_numbers = #tpu.dot_dimension_numbers<[1], [0], [0], [1], [0, 0, 1, 1], [], []>} : vector<2x128xbf16>, vector<128x16xbf16>, vector<2x16xf32> -> vector<2x16xf32>
    %c0_7 = arith.constant 0 : index
    %c0_8 = arith.constant 0 : index
    %13 = vector.load %arg3[%c0_7, %c0_8] : memref<1x16xf32, #tpu.memory_space<vmem>>, vector<1x16xf32>
    %14 = vector.broadcast %13 : vector<1x16xf32> to vector<2x16xf32>
    %15 = arith.addf %12, %14 : vector<2x16xf32>
    %cst_9 = arith.constant 0.000000e+00 : f32
    %16 = vector.broadcast %cst_9 : f32 to vector<2x16xf32>
    %17 = arith.maximumf %15, %16 : vector<2x16xf32>
    %18 = arith.truncf %17 : vector<2x16xf32> to vector<2x16xbf16>
    %c0_10 = arith.constant 0 : index
    %c0_11 = arith.constant 0 : index
    %19 = vector.load %arg4[%c0_10, %c0_11] : memref<16x128xbf16, #tpu.memory_space<vmem>>, vector<16x128xbf16>
    %cst_12 = arith.constant dense<0.000000e+00> : vector<2x128xf32>
    %20 = tpu.matmul %18, %19, %cst_12 {dimension_numbers = #tpu.dot_dimension_numbers<[1], [0], [0], [1], [0, 0, 1, 1], [], []>} : vector<2x16xbf16>, vector<16x128xbf16>, vector<2x128xf32> -> vector<2x128xf32>
    %c0_13 = arith.constant 0 : index
    %c0_14 = arith.constant 0 : index
    %21 = vector.load %arg5[%c0_13, %c0_14] : memref<1x128xf32, #tpu.memory_space<vmem>>, vector<1x128xf32>
    %22 = vector.broadcast %21 : vector<1x128xf32> to vector<2x128xf32>
    %23 = arith.addf %20, %22 : vector<2x128xf32>
    %24 = vector.extract_strided_slice %23 {offsets = [0, 0], sizes = [1, 128], strides = [1, 1]} : vector<2x128xf32> to vector<1x128xf32>
    %25 = vector.extract_strided_slice %23 {offsets = [1, 0], sizes = [1, 128], strides = [1, 1]} : vector<2x128xf32> to vector<1x128xf32>
    %26 = arith.addf %24, %25 : vector<1x128xf32>
    %27 = arith.negf %26 : vector<1x128xf32>
    %28 = math.exp %27 : vector<1x128xf32>
    %cst_15 = arith.constant 1.000000e+00 : f32
    %29 = vector.broadcast %cst_15 : f32 to vector<1x128xf32>
    %30 = arith.addf %29, %28 : vector<1x128xf32>
    %31 = arith.divf %29, %30 : vector<1x128xf32>
    %32 = arith.mulf %2, %31 : vector<1x128xf32>
    %33 = arith.truncf %32 : vector<1x128xf32> to vector<1x128xbf16>
    %c0_16 = arith.constant 0 : index
    %c0_17 = arith.constant 0 : index
    %c0_18 = arith.constant 0 : index
    %34 = vector.load %arg6[%c0_16, %c0_17, %c0_18] : memref<1x1x128xbf16, #tpu.memory_space<vmem>>, vector<1x1x128xbf16>
    %35 = vector.shape_cast %34 : vector<1x1x128xbf16> to vector<1x128xbf16>
    %36 = vector.shape_cast %33 : vector<1x128xbf16> to vector<1x1x128xbf16>
    tpu.vector_store %arg6[%c0_16, %c0_17, %c0_18], %36 {strides = array<i32>} : memref<1x1x128xbf16, #tpu.memory_space<vmem>>, vector<1x1x128xbf16>,
    %cst_19 = arith.constant dense<0.000000e+00> : vector<1xf32>
    %37 = vector.multi_reduction <add>, %32, %cst_19 [1] : vector<1x128xf32> to vector<1xf32>
    %38 = vector.shape_cast %37 : vector<1xf32> to vector<1x1xf32>
    %cst_20 = arith.constant 1.280000e+02 : f32
    %39 = vector.broadcast %cst_20 : f32 to vector<1x1xf32>
    %40 = arith.divf %38, %39 : vector<1x1xf32>
    %cst_21 = arith.constant dense<0xFF800000> : vector<1xf32>
    %41 = vector.multi_reduction <maximumf>, %32, %cst_21 [1] : vector<1x128xf32> to vector<1xf32>
    %42 = vector.shape_cast %41 : vector<1xf32> to vector<1x1xf32>
    %43 = tpu.concatenate %40, %42 in 1 : vector<1x1xf32>, vector<1x1xf32> -> vector<1x2xf32>
    %c0_22 = arith.constant 0 : index
    %c0_23 = arith.constant 0 : index
    %c0_24 = arith.constant 0 : index
    %44 = vector.load %arg7[%c0_22, %c0_23, %c0_24] : memref<1x1x2xf32, #tpu.memory_space<vmem>>, vector<1x1x2xf32>
    %45 = vector.shape_cast %44 : vector<1x1x2xf32> to vector<1x2xf32>
    %46 = vector.shape_cast %43 : vector<1x2xf32> to vector<1x1x2xf32>
    tpu.vector_store %arg7[%c0_22, %c0_23, %c0_24], %46 {strides = array<i32>} : memref<1x1x2xf32, #tpu.memory_space<vmem>>, vector<1x1x2xf32>,
    return
  }
  func.func @transform_0(%arg0: i32) -> (i32, i32, i32) {
    %c0_i32 = arith.constant 0 : i32
    %c0_i32_0 = arith.constant 0 : i32
    %c0_i32_1 = arith.constant 0 : i32
    return %arg0, %c0_i32, %c0_i32_0 : i32, i32, i32
  }
  func.func @transform_1(%arg0: i32) -> (i32, i32) {
    %c0_i32 = arith.constant 0 : i32
    %c0_i32_0 = arith.constant 0 : i32
    %c0_i32_1 = arith.constant 0 : i32
    return %c0_i32, %c0_i32_0 : i32, i32
  }
  func.func @transform_2(%arg0: i32) -> (i32, i32) {
    %c0_i32 = arith.constant 0 : i32
    %c0_i32_0 = arith.constant 0 : i32
    %c0_i32_1 = arith.constant 0 : i32
    return %c0_i32, %c0_i32_0 : i32, i32
  }
  func.func @transform_3(%arg0: i32) -> (i32, i32) {
    %c0_i32 = arith.constant 0 : i32
    %c0_i32_0 = arith.constant 0 : i32
    %c0_i32_1 = arith.constant 0 : i32
    return %c0_i32, %c0_i32_0 : i32, i32
  }
  func.func @transform_4(%arg0: i32) -> (i32, i32) {
    %c0_i32 = arith.constant 0 : i32
    %c0_i32_0 = arith.constant 0 : i32
    %c0_i32_1 = arith.constant 0 : i32
    return %c0_i32, %c0_i32_0 : i32, i32
  }
  func.func @transform_5(%arg0: i32) -> (i32, i32, i32) {
    %c0_i32 = arith.constant 0 : i32
    %c0_i32_0 = arith.constant 0 : i32
    %c0_i32_1 = arith.constant 0 : i32
    return %arg0, %c0_i32, %c0_i32_0 : i32, i32, i32
  }
  func.func @transform_6(%arg0: i32) -> (i32, i32, i32) {
    %c0_i32 = arith.constant 0 : i32
    %c0_i32_0 = arith.constant 0 : i32
    %c0_i32_1 = arith.constant 0 : i32
    return %arg0, %c0_i32, %c0_i32_0 : i32, i32, i32
  }
}

module attributes {stable_mosaic.version = 11 : i64} {
  func.func @_cbam_channel_kernel(%arg0: i32, %arg1: memref<1x1x128xbf16, #tpu.memory_space<vmem>>, %arg2: memref<128x16xbf16, #tpu.memory_space<vmem>>, %arg3: memref<1x16xf32, #tpu.memory_space<vmem>>, %arg4: memref<16x128xbf16, #tpu.memory_space<vmem>>, %arg5: memref<1x128xf32, #tpu.memory_space<vmem>>, %arg6: memref<1x1x128xbf16, #tpu.memory_space<vmem>>, %arg7: memref<1x1x2xf32, #tpu.memory_space<vmem>>) attributes {dimension_semantics = [#tpu.dimension_semantics<parallel>], iteration_bounds = array<i64: 2>, scalar_prefetch = 0 : i64, scratch_operands = 0 : i64, tpu.core_type = #tpu.core_type<tc>, window_params = [{transform_indices = @transform_0, window_bounds = array<i64: 1, 1, 128>}, {pipeline_mode = #tpu.pipeline_mode<synchronous>, transform_indices = @transform_1, window_bounds = array<i64: 128, 16>}, {pipeline_mode = #tpu.pipeline_mode<synchronous>, transform_indices = @transform_2, window_bounds = array<i64: 1, 16>}, {pipeline_mode = #tpu.pipeline_mode<synchronous>, transform_indices = @transform_3, window_bounds = array<i64: 16, 128>}, {pipeline_mode = #tpu.pipeline_mode<synchronous>, transform_indices = @transform_4, window_bounds = array<i64: 1, 128>}, {transform_indices = @transform_5, window_bounds = array<i64: 1, 1, 128>}, {transform_indices = @transform_6, window_bounds = array<i64: 1, 1, 2>}]} {
    %c0 = arith.constant 0 : index
    %c0_0 = arith.constant 0 : index
    %c0_1 = arith.constant 0 : index
    %0 = vector.load %arg1[%c0, %c0_0, %c0_1] : memref<1x1x128xbf16, #tpu.memory_space<vmem>>, vector<1x1x128xbf16>
    %1 = vector.shape_cast %0 : vector<1x1x128xbf16> to vector<1x128xbf16>
    %2 = arith.extf %1 : vector<1x128xbf16> to vector<1x128xf32>
    %cst = arith.constant dense<0.000000e+00> : vector<128xf32>
    %3 = vector.multi_reduction <add>, %2, %cst [0] : vector<1x128xf32> to vector<128xf32>
    %4 = vector.shape_cast %3 : vector<128xf32> to vector<1x128xf32>
    %cst_2 = arith.constant 1.000000e+00 : f32
    %5 = vector.broadcast %cst_2 : f32 to vector<1x128xf32>
    %6 = arith.divf %4, %5 : vector<1x128xf32>
    %cst_3 = arith.constant dense<0xFF800000> : vector<128xf32>
    %7 = vector.multi_reduction <maximumf>, %2, %cst_3 [0] : vector<1x128xf32> to vector<128xf32>
    %8 = vector.shape_cast %7 : vector<128xf32> to vector<1x128xf32>
    %9 = tpu.concatenate %6, %8 in 0 : vector<1x128xf32>, vector<1x128xf32> -> vector<2x128xf32>
    %10 = arith.truncf %9 : vector<2x128xf32> to vector<2x128xbf16>
    %c0_4 = arith.constant 0 : index
    %c0_5 = arith.constant 0 : index
    %11 = vector.load %arg2[%c0_4, %c0_5] : memref<128x16xbf16, #tpu.memory_space<vmem>>, vector<128x16xbf16>
    %cst_6 = arith.constant dense<0.000000e+00> : vector<2x16xf32>
    %12 = tpu.matmul %10, %11, %cst_6 {dimension_numbers = #tpu.dot_dimension_numbers<[1], [0], [0], [1], [0, 0, 1, 1], [], []>} : vector<2x128xbf16>, vector<128x16xbf16>, vector<2x16xf32> -> vector<2x16xf32>
    %c0_7 = arith.constant 0 : index
    %c0_8 = arith.constant 0 : index
    %13 = vector.load %arg3[%c0_7, %c0_8] : memref<1x16xf32, #tpu.memory_space<vmem>>, vector<1x16xf32>
    %14 = vector.broadcast %13 : vector<1x16xf32> to vector<2x16xf32>
    %15 = arith.addf %12, %14 : vector<2x16xf32>
    %cst_9 = arith.constant 0.000000e+00 : f32
    %16 = vector.broadcast %cst_9 : f32 to vector<2x16xf32>
    %17 = arith.maximumf %15, %16 : vector<2x16xf32>
    %18 = arith.truncf %17 : vector<2x16xf32> to vector<2x16xbf16>
    %c0_10 = arith.constant 0 : index
    %c0_11 = arith.constant 0 : index
    %19 = vector.load %arg4[%c0_10, %c0_11] : memref<16x128xbf16, #tpu.memory_space<vmem>>, vector<16x128xbf16>
    %cst_12 = arith.constant dense<0.000000e+00> : vector<2x128xf32>
    %20 = tpu.matmul %18, %19, %cst_12 {dimension_numbers = #tpu.dot_dimension_numbers<[1], [0], [0], [1], [0, 0, 1, 1], [], []>} : vector<2x16xbf16>, vector<16x128xbf16>, vector<2x128xf32> -> vector<2x128xf32>
    %c0_13 = arith.constant 0 : index
    %c0_14 = arith.constant 0 : index
    %21 = vector.load %arg5[%c0_13, %c0_14] : memref<1x128xf32, #tpu.memory_space<vmem>>, vector<1x128xf32>
    %22 = vector.broadcast %21 : vector<1x128xf32> to vector<2x128xf32>
    %23 = arith.addf %20, %22 : vector<2x128xf32>
    %24 = vector.extract_strided_slice %23 {offsets = [0, 0], sizes = [1, 128], strides = [1, 1]} : vector<2x128xf32> to vector<1x128xf32>
    %25 = vector.extract_strided_slice %23 {offsets = [1, 0], sizes = [1, 128], strides = [1, 1]} : vector<2x128xf32> to vector<1x128xf32>
    %26 = arith.addf %24, %25 : vector<1x128xf32>
    %27 = arith.negf %26 : vector<1x128xf32>
    %28 = math.exp %27 : vector<1x128xf32>
    %cst_15 = arith.constant 1.000000e+00 : f32
    %29 = vector.broadcast %cst_15 : f32 to vector<1x128xf32>
    %30 = arith.addf %29, %28 : vector<1x128xf32>
    %31 = arith.divf %29, %30 : vector<1x128xf32>
    %32 = arith.mulf %2, %31 : vector<1x128xf32>
    %33 = arith.truncf %32 : vector<1x128xf32> to vector<1x128xbf16>
    %c0_16 = arith.constant 0 : index
    %c0_17 = arith.constant 0 : index
    %c0_18 = arith.constant 0 : index
    %34 = vector.load %arg6[%c0_16, %c0_17, %c0_18] : memref<1x1x128xbf16, #tpu.memory_space<vmem>>, vector<1x1x128xbf16>
    %35 = vector.shape_cast %34 : vector<1x1x128xbf16> to vector<1x128xbf16>
    %36 = vector.shape_cast %33 : vector<1x128xbf16> to vector<1x1x128xbf16>
    tpu.vector_store %arg6[%c0_16, %c0_17, %c0_18], %36 {strides = array<i32>} : memref<1x1x128xbf16, #tpu.memory_space<vmem>>, vector<1x1x128xbf16>,
    %cst_19 = arith.constant dense<0.000000e+00> : vector<1xf32>
    %37 = vector.multi_reduction <add>, %32, %cst_19 [1] : vector<1x128xf32> to vector<1xf32>
    %38 = vector.shape_cast %37 : vector<1xf32> to vector<1x1xf32>
    %cst_20 = arith.constant 1.280000e+02 : f32
    %39 = vector.broadcast %cst_20 : f32 to vector<1x1xf32>
    %40 = arith.divf %38, %39 : vector<1x1xf32>
    %cst_21 = arith.constant dense<0xFF800000> : vector<1xf32>
    %41 = vector.multi_reduction <maximumf>, %32, %cst_21 [1] : vector<1x128xf32> to vector<1xf32>
    %42 = vector.shape_cast %41 : vector<1xf32> to vector<1x1xf32>
    %43 = tpu.concatenate %40, %42 in 1 : vector<1x1xf32>, vector<1x1xf32> -> vector<1x2xf32>
    %c0_22 = arith.constant 0 : index
    %c0_23 = arith.constant 0 : index
    %c0_24 = arith.constant 0 : index
    %44 = vector.load %arg7[%c0_22, %c0_23, %c0_24] : memref<1x1x2xf32, #tpu.memory_space<vmem>>, vector<1x1x2xf32>
    %45 = vector.shape_cast %44 : vector<1x1x2xf32> to vector<1x2xf32>
    %46 = vector.shape_cast %43 : vector<1x2xf32> to vector<1x1x2xf32>
    tpu.vector_store %arg7[%c0_22, %c0_23, %c0_24], %46 {strides = array<i32>} : memref<1x1x2xf32, #tpu.memory_space<vmem>>, vector<1x1x2xf32>,
    return
  }
  func.func @transform_0(%arg0: i32) -> (i32, i32, i32) {
    %c0_i32 = arith.constant 0 : i32
    %c0_i32_0 = arith.constant 0 : i32
    %c0_i32_1 = arith.constant 0 : i32
    return %arg0, %c0_i32, %c0_i32_0 : i32, i32, i32
  }
  func.func @transform_1(%arg0: i32) -> (i32, i32) {
    %c0_i32 = arith.constant 0 : i32
    %c0_i32_0 = arith.constant 0 : i32
    %c0_i32_1 = arith.constant 0 : i32
    return %c0_i32, %c0_i32_0 : i32, i32
  }
  func.func @transform_2(%arg0: i32) -> (i32, i32) {
    %c0_i32 = arith.constant 0 : i32
    %c0_i32_0 = arith.constant 0 : i32
    %c0_i32_1 = arith.constant 0 : i32
    return %c0_i32, %c0_i32_0 : i32, i32
  }
  func.func @transform_3(%arg0: i32) -> (i32, i32) {
    %c0_i32 = arith.constant 0 : i32
    %c0_i32_0 = arith.constant 0 : i32
    %c0_i32_1 = arith.constant 0 : i32
    return %c0_i32, %c0_i32_0 : i32, i32
  }
  func.func @transform_4(%arg0: i32) -> (i32, i32) {
    %c0_i32 = arith.constant 0 : i32
    %c0_i32_0 = arith.constant 0 : i32
    %c0_i32_1 = arith.constant 0 : i32
    return %c0_i32, %c0_i32_0 : i32, i32
  }
  func.func @transform_5(%arg0: i32) -> (i32, i32, i32) {
    %c0_i32 = arith.constant 0 : i32
    %c0_i32_0 = arith.constant 0 : i32
    %c0_i32_1 = arith.constant 0 : i32
    return %arg0, %c0_i32, %c0_i32_0 : i32, i32, i32
  }
  func.func @transform_6(%arg0: i32) -> (i32, i32, i32) {
    %c0_i32 = arith.constant 0 : i32
    %c0_i32_0 = arith.constant 0 : i32
    %c0_i32_1 = arith.constant 0 : i32
    return %arg0, %c0_i32, %c0_i32_0 : i32, i32, i32
  }
}

module attributes {stable_mosaic.version = 11 : i64} {
  func.func @_cbam_pair_finalize_kernel(%arg0: i32, %arg1: memref<1x1x128xbf16, #tpu.memory_space<vmem>>, %arg2: memref<1x1x1xf32, #tpu.memory_space<vmem>>, %arg3: memref<1x1x128xbf16, #tpu.memory_space<vmem>>, %arg4: memref<1x1x1xf32, #tpu.memory_space<vmem>>, %arg5: memref<1x1x128xf32, #tpu.memory_space<vmem>>, %arg6: memref<1x1x128xf32, #tpu.memory_space<vmem>>, %arg7: memref<1x1x128xf32, #tpu.memory_space<vmem>>, %arg8: memref<1x1x128xf32, #tpu.memory_space<vmem>>, %arg9: memref<1x1x128xbf16, #tpu.memory_space<vmem>>, %arg10: memref<1x1x128xbf16, #tpu.memory_space<vmem>>, %arg11: memref<1x1x128xbf16, #tpu.memory_space<vmem>>) attributes {dimension_semantics = [#tpu.dimension_semantics<parallel>], iteration_bounds = array<i64: 2>, scalar_prefetch = 0 : i64, scratch_operands = 0 : i64, tpu.core_type = #tpu.core_type<tc>, window_params = [{transform_indices = @transform_0, window_bounds = array<i64: 1, 1, 128>}, {transform_indices = @transform_1, window_bounds = array<i64: 1, 1, 1>}, {transform_indices = @transform_2, window_bounds = array<i64: 1, 1, 128>}, {transform_indices = @transform_3, window_bounds = array<i64: 1, 1, 1>}, {pipeline_mode = #tpu.pipeline_mode<synchronous>, transform_indices = @transform_4, window_bounds = array<i64: 1, 1, 128>}, {pipeline_mode = #tpu.pipeline_mode<synchronous>, transform_indices = @transform_5, window_bounds = array<i64: 1, 1, 128>}, {pipeline_mode = #tpu.pipeline_mode<synchronous>, transform_indices = @transform_6, window_bounds = array<i64: 1, 1, 128>}, {pipeline_mode = #tpu.pipeline_mode<synchronous>, transform_indices = @transform_7, window_bounds = array<i64: 1, 1, 128>}, {transform_indices = @transform_8, window_bounds = array<i64: 1, 1, 128>}, {transform_indices = @transform_9, window_bounds = array<i64: 1, 1, 128>}, {transform_indices = @transform_10, window_bounds = array<i64: 1, 1, 128>}]} {
    %c0 = arith.constant 0 : index
    %c0_0 = arith.constant 0 : index
    %c0_1 = arith.constant 0 : index
    %0 = vector.load %arg1[%c0, %c0_0, %c0_1] : memref<1x1x128xbf16, #tpu.memory_space<vmem>>, vector<1x1x128xbf16>
    %1 = arith.extf %0 : vector<1x1x128xbf16> to vector<1x1x128xf32>
    %c0_2 = arith.constant 0 : index
    %c0_3 = arith.constant 0 : index
    %c0_4 = arith.constant 0 : index
    %2 = vector.load %arg2[%c0_2, %c0_3, %c0_4] : memref<1x1x1xf32, #tpu.memory_space<vmem>>, vector<1x1x1xf32>
    %3 = arith.negf %2 : vector<1x1x1xf32>
    %4 = math.exp %3 : vector<1x1x1xf32>
    %cst = arith.constant 1.000000e+00 : f32
    %5 = vector.broadcast %cst : f32 to vector<1x1x1xf32>
    %6 = arith.addf %5, %4 : vector<1x1x1xf32>
    %7 = arith.divf %5, %6 : vector<1x1x1xf32>
    %8 = vector.broadcast %7 : vector<1x1x1xf32> to vector<1x1x128xf32>
    %9 = arith.mulf %1, %8 : vector<1x1x128xf32>
    %c0_5 = arith.constant 0 : index
    %c0_6 = arith.constant 0 : index
    %c0_7 = arith.constant 0 : index
    %10 = vector.load %arg3[%c0_5, %c0_6, %c0_7] : memref<1x1x128xbf16, #tpu.memory_space<vmem>>, vector<1x1x128xbf16>
    %11 = arith.extf %10 : vector<1x1x128xbf16> to vector<1x1x128xf32>
    %c0_8 = arith.constant 0 : index
    %c0_9 = arith.constant 0 : index
    %c0_10 = arith.constant 0 : index
    %12 = vector.load %arg4[%c0_8, %c0_9, %c0_10] : memref<1x1x1xf32, #tpu.memory_space<vmem>>, vector<1x1x1xf32>
    %13 = arith.negf %12 : vector<1x1x1xf32>
    %14 = math.exp %13 : vector<1x1x1xf32>
    %cst_11 = arith.constant 1.000000e+00 : f32
    %15 = vector.broadcast %cst_11 : f32 to vector<1x1x1xf32>
    %16 = arith.addf %15, %14 : vector<1x1x1xf32>
    %17 = arith.divf %15, %16 : vector<1x1x1xf32>
    %18 = vector.broadcast %17 : vector<1x1x1xf32> to vector<1x1x128xf32>
    %19 = arith.mulf %11, %18 : vector<1x1x128xf32>
    %20 = arith.truncf %9 : vector<1x1x128xf32> to vector<1x1x128xbf16>
    %c0_12 = arith.constant 0 : index
    %c0_13 = arith.constant 0 : index
    %c0_14 = arith.constant 0 : index
    %21 = vector.load %arg9[%c0_12, %c0_13, %c0_14] : memref<1x1x128xbf16, #tpu.memory_space<vmem>>, vector<1x1x128xbf16>
    tpu.vector_store %arg9[%c0_12, %c0_13, %c0_14], %20 {strides = array<i32>} : memref<1x1x128xbf16, #tpu.memory_space<vmem>>, vector<1x1x128xbf16>,
    %22 = arith.truncf %19 : vector<1x1x128xf32> to vector<1x1x128xbf16>
    %c0_15 = arith.constant 0 : index
    %c0_16 = arith.constant 0 : index
    %c0_17 = arith.constant 0 : index
    %23 = vector.load %arg10[%c0_15, %c0_16, %c0_17] : memref<1x1x128xbf16, #tpu.memory_space<vmem>>, vector<1x1x128xbf16>
    tpu.vector_store %arg10[%c0_15, %c0_16, %c0_17], %22 {strides = array<i32>} : memref<1x1x128xbf16, #tpu.memory_space<vmem>>, vector<1x1x128xbf16>,
    %c0_18 = arith.constant 0 : index
    %c0_19 = arith.constant 0 : index
    %c0_20 = arith.constant 0 : index
    %24 = vector.load %arg5[%c0_18, %c0_19, %c0_20] : memref<1x1x128xf32, #tpu.memory_space<vmem>>, vector<1x1x128xf32>
    %25 = arith.mulf %9, %24 : vector<1x1x128xf32>
    %c0_21 = arith.constant 0 : index
    %c0_22 = arith.constant 0 : index
    %c0_23 = arith.constant 0 : index
    %26 = vector.load %arg6[%c0_21, %c0_22, %c0_23] : memref<1x1x128xf32, #tpu.memory_space<vmem>>, vector<1x1x128xf32>
    %27 = arith.addf %25, %26 : vector<1x1x128xf32>
    %c0_24 = arith.constant 0 : index
    %c0_25 = arith.constant 0 : index
    %c0_26 = arith.constant 0 : index
    %28 = vector.load %arg7[%c0_24, %c0_25, %c0_26] : memref<1x1x128xf32, #tpu.memory_space<vmem>>, vector<1x1x128xf32>
    %29 = arith.mulf %19, %28 : vector<1x1x128xf32>
    %30 = arith.addf %27, %29 : vector<1x1x128xf32>
    %c0_27 = arith.constant 0 : index
    %c0_28 = arith.constant 0 : index
    %c0_29 = arith.constant 0 : index
    %31 = vector.load %arg8[%c0_27, %c0_28, %c0_29] : memref<1x1x128xf32, #tpu.memory_space<vmem>>, vector<1x1x128xf32>
    %32 = arith.addf %30, %31 : vector<1x1x128xf32>
    %33 = arith.truncf %32 : vector<1x1x128xf32> to vector<1x1x128xbf16>
    %c0_30 = arith.constant 0 : index
    %c0_31 = arith.constant 0 : index
    %c0_32 = arith.constant 0 : index
    %34 = vector.load %arg11[%c0_30, %c0_31, %c0_32] : memref<1x1x128xbf16, #tpu.memory_space<vmem>>, vector<1x1x128xbf16>
    tpu.vector_store %arg11[%c0_30, %c0_31, %c0_32], %33 {strides = array<i32>} : memref<1x1x128xbf16, #tpu.memory_space<vmem>>, vector<1x1x128xbf16>,
    return
  }
  func.func @transform_0(%arg0: i32) -> (i32, i32, i32) {
    %c0_i32 = arith.constant 0 : i32
    %c0_i32_0 = arith.constant 0 : i32
    %c0_i32_1 = arith.constant 0 : i32
    return %arg0, %c0_i32, %c0_i32_0 : i32, i32, i32
  }
  func.func @transform_1(%arg0: i32) -> (i32, i32, i32) {
    %c0_i32 = arith.constant 0 : i32
    %c0_i32_0 = arith.constant 0 : i32
    %c0_i32_1 = arith.constant 0 : i32
    return %arg0, %c0_i32, %c0_i32_0 : i32, i32, i32
  }
  func.func @transform_2(%arg0: i32) -> (i32, i32, i32) {
    %c0_i32 = arith.constant 0 : i32
    %c0_i32_0 = arith.constant 0 : i32
    %c0_i32_1 = arith.constant 0 : i32
    return %arg0, %c0_i32, %c0_i32_0 : i32, i32, i32
  }
  func.func @transform_3(%arg0: i32) -> (i32, i32, i32) {
    %c0_i32 = arith.constant 0 : i32
    %c0_i32_0 = arith.constant 0 : i32
    %c0_i32_1 = arith.constant 0 : i32
    return %arg0, %c0_i32, %c0_i32_0 : i32, i32, i32
  }
  func.func @transform_4(%arg0: i32) -> (i32, i32, i32) {
    %c0_i32 = arith.constant 0 : i32
    %c0_i32_0 = arith.constant 0 : i32
    %c0_i32_1 = arith.constant 0 : i32
    %c0_i32_2 = arith.constant 0 : i32
    return %c0_i32, %c0_i32_0, %c0_i32_1 : i32, i32, i32
  }
  func.func @transform_5(%arg0: i32) -> (i32, i32, i32) {
    %c0_i32 = arith.constant 0 : i32
    %c0_i32_0 = arith.constant 0 : i32
    %c0_i32_1 = arith.constant 0 : i32
    %c0_i32_2 = arith.constant 0 : i32
    return %c0_i32, %c0_i32_0, %c0_i32_1 : i32, i32, i32
  }
  func.func @transform_6(%arg0: i32) -> (i32, i32, i32) {
    %c0_i32 = arith.constant 0 : i32
    %c0_i32_0 = arith.constant 0 : i32
    %c0_i32_1 = arith.constant 0 : i32
    %c0_i32_2 = arith.constant 0 : i32
    return %c0_i32, %c0_i32_0, %c0_i32_1 : i32, i32, i32
  }
  func.func @transform_7(%arg0: i32) -> (i32, i32, i32) {
    %c0_i32 = arith.constant 0 : i32
    %c0_i32_0 = arith.constant 0 : i32
    %c0_i32_1 = arith.constant 0 : i32
    %c0_i32_2 = arith.constant 0 : i32
    return %c0_i32, %c0_i32_0, %c0_i32_1 : i32, i32, i32
  }
  func.func @transform_8(%arg0: i32) -> (i32, i32, i32) {
    %c0_i32 = arith.constant 0 : i32
    %c0_i32_0 = arith.constant 0 : i32
    %c0_i32_1 = arith.constant 0 : i32
    return %arg0, %c0_i32, %c0_i32_0 : i32, i32, i32
  }
  func.func @transform_9(%arg0: i32) -> (i32, i32, i32) {
    %c0_i32 = arith.constant 0 : i32
    %c0_i32_0 = arith.constant 0 : i32
    %c0_i32_1 = arith.constant 0 : i32
    return %arg0, %c0_i32, %c0_i32_0 : i32, i32, i32
  }
  func.func @transform_10(%arg0: i32) -> (i32, i32, i32) {
    %c0_i32 = arith.constant 0 : i32
    %c0_i32_0 = arith.constant 0 : i32
    %c0_i32_1 = arith.constant 0 : i32
    return %arg0, %c0_i32, %c0_i32_0 : i32, i32, i32
  }
}

module attributes {stable_mosaic.version = 11 : i64} {
  func.func @kernel(%arg0: i32, %arg1: i32, %arg2: i32, %arg3: memref<8x1728xbf16, #tpu.memory_space<vmem>>, %arg4: memref<1728x128xbf16, #tpu.memory_space<vmem>>, %arg5: memref<1x128xf32, #tpu.memory_space<vmem>>, %arg6: memref<8x128xbf16, #tpu.memory_space<vmem>>, %arg7: memref<8x128xf32, #tpu.memory_space<vmem>>) attributes {dimension_semantics = [#tpu.dimension_semantics<parallel>, #tpu.dimension_semantics<parallel>, #tpu.dimension_semantics<arbitrary>], iteration_bounds = array<i64: 1, 1, 1>, scalar_prefetch = 0 : i64, scratch_operands = 1 : i64, tpu.core_type = #tpu.core_type<tc>, window_params = [{transform_indices = @transform_0, window_bounds = array<i64: 8, 1728>}, {transform_indices = @transform_1, window_bounds = array<i64: 1728, 128>}, {transform_indices = @transform_2, window_bounds = array<i64: 1, 128>}, {transform_indices = @transform_3, window_bounds = array<i64: 8, 128>}]} {
    %c0_i32 = arith.constant 0 : i32
    %0 = arith.cmpi eq, %arg2, %c0_i32 : i32
    %1 = arith.extui %0 : i1 to i32
    %c0_i32_0 = arith.constant 0 : i32
    %2 = arith.cmpi ne, %1, %c0_i32_0 : i32
    scf.if %2 {
      %cst_10 = arith.constant 0.000000e+00 : f32
      %12 = vector.broadcast %cst_10 : f32 to vector<8x128xf32>
      %c0_11 = arith.constant 0 : index
      %c0_12 = arith.constant 0 : index
      %13 = vector.load %arg7[%c0_11, %c0_12] : memref<8x128xf32, #tpu.memory_space<vmem>>, vector<8x128xf32>
      tpu.vector_store %arg7[%c0_11, %c0_12], %12 {strides = array<i32>} : memref<8x128xf32, #tpu.memory_space<vmem>>, vector<8x128xf32>,
    } else {
    }
    %c0 = arith.constant 0 : index
    %c0_1 = arith.constant 0 : index
    %3 = vector.load %arg7[%c0, %c0_1] : memref<8x128xf32, #tpu.memory_space<vmem>>, vector<8x128xf32>
    %c0_2 = arith.constant 0 : index
    %c0_3 = arith.constant 0 : index
    %4 = vector.load %arg3[%c0_2, %c0_3] : memref<8x1728xbf16, #tpu.memory_space<vmem>>, vector<8x1728xbf16>
    %c0_4 = arith.constant 0 : index
    %c0_5 = arith.constant 0 : index
    %5 = vector.load %arg4[%c0_4, %c0_5] : memref<1728x128xbf16, #tpu.memory_space<vmem>>, vector<1728x128xbf16>
    %cst = arith.constant dense<0.000000e+00> : vector<8x128xf32>
    %6 = tpu.matmul %4, %5, %cst {dimension_numbers = #tpu.dot_dimension_numbers<[1], [0], [0], [1], [0, 0, 1, 1], [], []>} : vector<8x1728xbf16>, vector<1728x128xbf16>, vector<8x128xf32> -> vector<8x128xf32>
    %7 = arith.addf %3, %6 : vector<8x128xf32>
    %c0_6 = arith.constant 0 : index
    %c0_7 = arith.constant 0 : index
    %8 = vector.load %arg7[%c0_6, %c0_7] : memref<8x128xf32, #tpu.memory_space<vmem>>, vector<8x128xf32>
    tpu.vector_store %arg7[%c0_6, %c0_7], %7 {strides = array<i32>} : memref<8x128xf32, #tpu.memory_space<vmem>>, vector<8x128xf32>,
    %c0_i32_8 = arith.constant 0 : i32
    %9 = arith.cmpi eq, %arg2, %c0_i32_8 : i32
    %10 = arith.extui %9 : i1 to i32
    %c0_i32_9 = arith.constant 0 : i32
    %11 = arith.cmpi ne, %10, %c0_i32_9 : i32
    scf.if %11 {
      %c0_10 = arith.constant 0 : index
      %c0_11 = arith.constant 0 : index
      %12 = vector.load %arg7[%c0_10, %c0_11] : memref<8x128xf32, #tpu.memory_space<vmem>>, vector<8x128xf32>
      %c0_12 = arith.constant 0 : index
      %c0_13 = arith.constant 0 : index
      %13 = vector.load %arg5[%c0_12, %c0_13] : memref<1x128xf32, #tpu.memory_space<vmem>>, vector<1x128xf32>
      %14 = vector.broadcast %13 : vector<1x128xf32> to vector<8x128xf32>
      %15 = arith.addf %12, %14 : vector<8x128xf32>
      %cst_14 = arith.constant 0.000000e+00 : f32
      %16 = vector.broadcast %cst_14 : f32 to vector<8x128xf32>
      %17 = arith.maximumf %15, %16 : vector<8x128xf32>
      %18 = arith.truncf %17 : vector<8x128xf32> to vector<8x128xbf16>
      %c0_15 = arith.constant 0 : index
      %c0_16 = arith.constant 0 : index
      %19 = vector.load %arg6[%c0_15, %c0_16] : memref<8x128xbf16, #tpu.memory_space<vmem>>, vector<8x128xbf16>
      tpu.vector_store %arg6[%c0_15, %c0_16], %18 {strides = array<i32>} : memref<8x128xbf16, #tpu.memory_space<vmem>>, vector<8x128xbf16>,
    } else {
    }
    return
  }
  func.func @transform_0(%arg0: i32, %arg1: i32, %arg2: i32) -> (i32, i32) {
    %c0_i32 = arith.constant 0 : i32
    return %arg0, %arg2 : i32, i32
  }
  func.func @transform_1(%arg0: i32, %arg1: i32, %arg2: i32) -> (i32, i32) {
    %c0_i32 = arith.constant 0 : i32
    return %arg2, %arg1 : i32, i32
  }
  func.func @transform_2(%arg0: i32, %arg1: i32, %arg2: i32) -> (i32, i32) {
    %c0_i32 = arith.constant 0 : i32
    %c0_i32_0 = arith.constant 0 : i32
    return %c0_i32, %arg1 : i32, i32
  }
  func.func @transform_3(%arg0: i32, %arg1: i32, %arg2: i32) -> (i32, i32) {
    %c0_i32 = arith.constant 0 : i32
    return %arg0, %arg1 : i32, i32
  }
}

module attributes {stable_mosaic.version = 11 : i64} {
  func.func @_fuse_bn_add_kernel(%arg0: i32, %arg1: memref<8x128xbf16, #tpu.memory_space<vmem>>, %arg2: memref<8x128xbf16, #tpu.memory_space<vmem>>, %arg3: memref<1x128xf32, #tpu.memory_space<vmem>>, %arg4: memref<1x128xf32, #tpu.memory_space<vmem>>, %arg5: memref<1x128xf32, #tpu.memory_space<vmem>>, %arg6: memref<1x128xf32, #tpu.memory_space<vmem>>, %arg7: memref<8x128xbf16, #tpu.memory_space<vmem>>) attributes {dimension_semantics = [#tpu.dimension_semantics<parallel>], iteration_bounds = array<i64: 1>, scalar_prefetch = 0 : i64, scratch_operands = 0 : i64, tpu.core_type = #tpu.core_type<tc>, window_params = [{transform_indices = @transform_0, window_bounds = array<i64: 8, 128>}, {transform_indices = @transform_1, window_bounds = array<i64: 8, 128>}, {pipeline_mode = #tpu.pipeline_mode<synchronous>, transform_indices = @transform_2, window_bounds = array<i64: 1, 128>}, {pipeline_mode = #tpu.pipeline_mode<synchronous>, transform_indices = @transform_3, window_bounds = array<i64: 1, 128>}, {pipeline_mode = #tpu.pipeline_mode<synchronous>, transform_indices = @transform_4, window_bounds = array<i64: 1, 128>}, {pipeline_mode = #tpu.pipeline_mode<synchronous>, transform_indices = @transform_5, window_bounds = array<i64: 1, 128>}, {transform_indices = @transform_6, window_bounds = array<i64: 8, 128>}]} {
    %c0 = arith.constant 0 : index
    %c0_0 = arith.constant 0 : index
    %0 = vector.load %arg1[%c0, %c0_0] : memref<8x128xbf16, #tpu.memory_space<vmem>>, vector<8x128xbf16>
    %1 = arith.extf %0 : vector<8x128xbf16> to vector<8x128xf32>
    %c0_1 = arith.constant 0 : index
    %c0_2 = arith.constant 0 : index
    %2 = vector.load %arg3[%c0_1, %c0_2] : memref<1x128xf32, #tpu.memory_space<vmem>>, vector<1x128xf32>
    %3 = vector.broadcast %2 : vector<1x128xf32> to vector<8x128xf32>
    %4 = arith.mulf %1, %3 : vector<8x128xf32>
    %c0_3 = arith.constant 0 : index
    %c0_4 = arith.constant 0 : index
    %5 = vector.load %arg4[%c0_3, %c0_4] : memref<1x128xf32, #tpu.memory_space<vmem>>, vector<1x128xf32>
    %6 = vector.broadcast %5 : vector<1x128xf32> to vector<8x128xf32>
    %7 = arith.addf %4, %6 : vector<8x128xf32>
    %c0_5 = arith.constant 0 : index
    %c0_6 = arith.constant 0 : index
    %8 = vector.load %arg2[%c0_5, %c0_6] : memref<8x128xbf16, #tpu.memory_space<vmem>>, vector<8x128xbf16>
    %9 = arith.extf %8 : vector<8x128xbf16> to vector<8x128xf32>
    %c0_7 = arith.constant 0 : index
    %c0_8 = arith.constant 0 : index
    %10 = vector.load %arg5[%c0_7, %c0_8] : memref<1x128xf32, #tpu.memory_space<vmem>>, vector<1x128xf32>
    %11 = vector.broadcast %10 : vector<1x128xf32> to vector<8x128xf32>
    %12 = arith.mulf %9, %11 : vector<8x128xf32>
    %13 = arith.addf %7, %12 : vector<8x128xf32>
    %c0_9 = arith.constant 0 : index
    %c0_10 = arith.constant 0 : index
    %14 = vector.load %arg6[%c0_9, %c0_10] : memref<1x128xf32, #tpu.memory_space<vmem>>, vector<1x128xf32>
    %15 = vector.broadcast %14 : vector<1x128xf32> to vector<8x128xf32>
    %16 = arith.addf %13, %15 : vector<8x128xf32>
    %17 = arith.truncf %16 : vector<8x128xf32> to vector<8x128xbf16>
    %c0_11 = arith.constant 0 : index
    %c0_12 = arith.constant 0 : index
    %18 = vector.load %arg7[%c0_11, %c0_12] : memref<8x128xbf16, #tpu.memory_space<vmem>>, vector<8x128xbf16>
    tpu.vector_store %arg7[%c0_11, %c0_12], %17 {strides = array<i32>} : memref<8x128xbf16, #tpu.memory_space<vmem>>, vector<8x128xbf16>,
    return
  }
  func.func @transform_0(%arg0: i32) -> (i32, i32) {
    %c0_i32 = arith.constant 0 : i32
    %c0_i32_0 = arith.constant 0 : i32
    return %arg0, %c0_i32 : i32, i32
  }
  func.func @transform_1(%arg0: i32) -> (i32, i32) {
    %c0_i32 = arith.constant 0 : i32
    %c0_i32_0 = arith.constant 0 : i32
    return %arg0, %c0_i32 : i32, i32
  }
  func.func @transform_2(%arg0: i32) -> (i32, i32) {
    %c0_i32 = arith.constant 0 : i32
    %c0_i32_0 = arith.constant 0 : i32
    %c0_i32_1 = arith.constant 0 : i32
    return %c0_i32, %c0_i32_0 : i32, i32
  }
  func.func @transform_3(%arg0: i32) -> (i32, i32) {
    %c0_i32 = arith.constant 0 : i32
    %c0_i32_0 = arith.constant 0 : i32
    %c0_i32_1 = arith.constant 0 : i32
    return %c0_i32, %c0_i32_0 : i32, i32
  }
  func.func @transform_4(%arg0: i32) -> (i32, i32) {
    %c0_i32 = arith.constant 0 : i32
    %c0_i32_0 = arith.constant 0 : i32
    %c0_i32_1 = arith.constant 0 : i32
    return %c0_i32, %c0_i32_0 : i32, i32
  }
  func.func @transform_5(%arg0: i32) -> (i32, i32) {
    %c0_i32 = arith.constant 0 : i32
    %c0_i32_0 = arith.constant 0 : i32
    %c0_i32_1 = arith.constant 0 : i32
    return %c0_i32, %c0_i32_0 : i32, i32
  }
  func.func @transform_6(%arg0: i32) -> (i32, i32) {
    %c0_i32 = arith.constant 0 : i32
    %c0_i32_0 = arith.constant 0 : i32
    return %arg0, %c0_i32 : i32, i32
  }
}

module attributes {stable_mosaic.version = 11 : i64} {
  func.func @kernel(%arg0: i32, %arg1: i32, %arg2: i32, %arg3: memref<16x576xbf16, #tpu.memory_space<vmem>>, %arg4: memref<576x128xbf16, #tpu.memory_space<vmem>>, %arg5: memref<1x128xf32, #tpu.memory_space<vmem>>, %arg6: memref<16x128xbf16, #tpu.memory_space<vmem>>, %arg7: memref<16x128xf32, #tpu.memory_space<vmem>>) attributes {dimension_semantics = [#tpu.dimension_semantics<parallel>, #tpu.dimension_semantics<parallel>, #tpu.dimension_semantics<arbitrary>], iteration_bounds = array<i64: 2, 1, 1>, scalar_prefetch = 0 : i64, scratch_operands = 1 : i64, tpu.core_type = #tpu.core_type<tc>, window_params = [{transform_indices = @transform_0, window_bounds = array<i64: 16, 576>}, {transform_indices = @transform_1, window_bounds = array<i64: 576, 128>}, {transform_indices = @transform_2, window_bounds = array<i64: 1, 128>}, {transform_indices = @transform_3, window_bounds = array<i64: 16, 128>}]} {
    %c0_i32 = arith.constant 0 : i32
    %0 = arith.cmpi eq, %arg2, %c0_i32 : i32
    %1 = arith.extui %0 : i1 to i32
    %c0_i32_0 = arith.constant 0 : i32
    %2 = arith.cmpi ne, %1, %c0_i32_0 : i32
    scf.if %2 {
      %cst_10 = arith.constant 0.000000e+00 : f32
      %12 = vector.broadcast %cst_10 : f32 to vector<16x128xf32>
      %c0_11 = arith.constant 0 : index
      %c0_12 = arith.constant 0 : index
      %13 = vector.load %arg7[%c0_11, %c0_12] : memref<16x128xf32, #tpu.memory_space<vmem>>, vector<16x128xf32>
      tpu.vector_store %arg7[%c0_11, %c0_12], %12 {strides = array<i32>} : memref<16x128xf32, #tpu.memory_space<vmem>>, vector<16x128xf32>,
    } else {
    }
    %c0 = arith.constant 0 : index
    %c0_1 = arith.constant 0 : index
    %3 = vector.load %arg7[%c0, %c0_1] : memref<16x128xf32, #tpu.memory_space<vmem>>, vector<16x128xf32>
    %c0_2 = arith.constant 0 : index
    %c0_3 = arith.constant 0 : index
    %4 = vector.load %arg3[%c0_2, %c0_3] : memref<16x576xbf16, #tpu.memory_space<vmem>>, vector<16x576xbf16>
    %c0_4 = arith.constant 0 : index
    %c0_5 = arith.constant 0 : index
    %5 = vector.load %arg4[%c0_4, %c0_5] : memref<576x128xbf16, #tpu.memory_space<vmem>>, vector<576x128xbf16>
    %cst = arith.constant dense<0.000000e+00> : vector<16x128xf32>
    %6 = tpu.matmul %4, %5, %cst {dimension_numbers = #tpu.dot_dimension_numbers<[1], [0], [0], [1], [0, 0, 1, 1], [], []>} : vector<16x576xbf16>, vector<576x128xbf16>, vector<16x128xf32> -> vector<16x128xf32>
    %7 = arith.addf %3, %6 : vector<16x128xf32>
    %c0_6 = arith.constant 0 : index
    %c0_7 = arith.constant 0 : index
    %8 = vector.load %arg7[%c0_6, %c0_7] : memref<16x128xf32, #tpu.memory_space<vmem>>, vector<16x128xf32>
    tpu.vector_store %arg7[%c0_6, %c0_7], %7 {strides = array<i32>} : memref<16x128xf32, #tpu.memory_space<vmem>>, vector<16x128xf32>,
    %c0_i32_8 = arith.constant 0 : i32
    %9 = arith.cmpi eq, %arg2, %c0_i32_8 : i32
    %10 = arith.extui %9 : i1 to i32
    %c0_i32_9 = arith.constant 0 : i32
    %11 = arith.cmpi ne, %10, %c0_i32_9 : i32
    scf.if %11 {
      %c0_10 = arith.constant 0 : index
      %c0_11 = arith.constant 0 : index
      %12 = vector.load %arg7[%c0_10, %c0_11] : memref<16x128xf32, #tpu.memory_space<vmem>>, vector<16x128xf32>
      %c0_12 = arith.constant 0 : index
      %c0_13 = arith.constant 0 : index
      %13 = vector.load %arg5[%c0_12, %c0_13] : memref<1x128xf32, #tpu.memory_space<vmem>>, vector<1x128xf32>
      %14 = vector.broadcast %13 : vector<1x128xf32> to vector<16x128xf32>
      %15 = arith.addf %12, %14 : vector<16x128xf32>
      %cst_14 = arith.constant 0.000000e+00 : f32
      %16 = vector.broadcast %cst_14 : f32 to vector<16x128xf32>
      %17 = arith.maximumf %15, %16 : vector<16x128xf32>
      %18 = arith.truncf %17 : vector<16x128xf32> to vector<16x128xbf16>
      %c0_15 = arith.constant 0 : index
      %c0_16 = arith.constant 0 : index
      %19 = vector.load %arg6[%c0_15, %c0_16] : memref<16x128xbf16, #tpu.memory_space<vmem>>, vector<16x128xbf16>
      tpu.vector_store %arg6[%c0_15, %c0_16], %18 {strides = array<i32>} : memref<16x128xbf16, #tpu.memory_space<vmem>>, vector<16x128xbf16>,
    } else {
    }
    return
  }
  func.func @transform_0(%arg0: i32, %arg1: i32, %arg2: i32) -> (i32, i32) {
    %c0_i32 = arith.constant 0 : i32
    return %arg0, %arg2 : i32, i32
  }
  func.func @transform_1(%arg0: i32, %arg1: i32, %arg2: i32) -> (i32, i32) {
    %c0_i32 = arith.constant 0 : i32
    return %arg2, %arg1 : i32, i32
  }
  func.func @transform_2(%arg0: i32, %arg1: i32, %arg2: i32) -> (i32, i32) {
    %c0_i32 = arith.constant 0 : i32
    %c0_i32_0 = arith.constant 0 : i32
    return %c0_i32, %arg1 : i32, i32
  }
  func.func @transform_3(%arg0: i32, %arg1: i32, %arg2: i32) -> (i32, i32) {
    %c0_i32 = arith.constant 0 : i32
    return %arg0, %arg1 : i32, i32
  }
}

module attributes {stable_mosaic.version = 11 : i64} {
  func.func @_fuse_bn_add_kernel(%arg0: i32, %arg1: memref<16x128xbf16, #tpu.memory_space<vmem>>, %arg2: memref<16x128xbf16, #tpu.memory_space<vmem>>, %arg3: memref<1x128xf32, #tpu.memory_space<vmem>>, %arg4: memref<1x128xf32, #tpu.memory_space<vmem>>, %arg5: memref<1x128xf32, #tpu.memory_space<vmem>>, %arg6: memref<1x128xf32, #tpu.memory_space<vmem>>, %arg7: memref<16x128xbf16, #tpu.memory_space<vmem>>) attributes {dimension_semantics = [#tpu.dimension_semantics<parallel>], iteration_bounds = array<i64: 1>, scalar_prefetch = 0 : i64, scratch_operands = 0 : i64, tpu.core_type = #tpu.core_type<tc>, window_params = [{transform_indices = @transform_0, window_bounds = array<i64: 16, 128>}, {transform_indices = @transform_1, window_bounds = array<i64: 16, 128>}, {pipeline_mode = #tpu.pipeline_mode<synchronous>, transform_indices = @transform_2, window_bounds = array<i64: 1, 128>}, {pipeline_mode = #tpu.pipeline_mode<synchronous>, transform_indices = @transform_3, window_bounds = array<i64: 1, 128>}, {pipeline_mode = #tpu.pipeline_mode<synchronous>, transform_indices = @transform_4, window_bounds = array<i64: 1, 128>}, {pipeline_mode = #tpu.pipeline_mode<synchronous>, transform_indices = @transform_5, window_bounds = array<i64: 1, 128>}, {transform_indices = @transform_6, window_bounds = array<i64: 16, 128>}]} {
    %c0 = arith.constant 0 : index
    %c0_0 = arith.constant 0 : index
    %0 = vector.load %arg1[%c0, %c0_0] : memref<16x128xbf16, #tpu.memory_space<vmem>>, vector<16x128xbf16>
    %1 = arith.extf %0 : vector<16x128xbf16> to vector<16x128xf32>
    %c0_1 = arith.constant 0 : index
    %c0_2 = arith.constant 0 : index
    %2 = vector.load %arg3[%c0_1, %c0_2] : memref<1x128xf32, #tpu.memory_space<vmem>>, vector<1x128xf32>
    %3 = vector.broadcast %2 : vector<1x128xf32> to vector<16x128xf32>
    %4 = arith.mulf %1, %3 : vector<16x128xf32>
    %c0_3 = arith.constant 0 : index
    %c0_4 = arith.constant 0 : index
    %5 = vector.load %arg4[%c0_3, %c0_4] : memref<1x128xf32, #tpu.memory_space<vmem>>, vector<1x128xf32>
    %6 = vector.broadcast %5 : vector<1x128xf32> to vector<16x128xf32>
    %7 = arith.addf %4, %6 : vector<16x128xf32>
    %c0_5 = arith.constant 0 : index
    %c0_6 = arith.constant 0 : index
    %8 = vector.load %arg2[%c0_5, %c0_6] : memref<16x128xbf16, #tpu.memory_space<vmem>>, vector<16x128xbf16>
    %9 = arith.extf %8 : vector<16x128xbf16> to vector<16x128xf32>
    %c0_7 = arith.constant 0 : index
    %c0_8 = arith.constant 0 : index
    %10 = vector.load %arg5[%c0_7, %c0_8] : memref<1x128xf32, #tpu.memory_space<vmem>>, vector<1x128xf32>
    %11 = vector.broadcast %10 : vector<1x128xf32> to vector<16x128xf32>
    %12 = arith.mulf %9, %11 : vector<16x128xf32>
    %13 = arith.addf %7, %12 : vector<16x128xf32>
    %c0_9 = arith.constant 0 : index
    %c0_10 = arith.constant 0 : index
    %14 = vector.load %arg6[%c0_9, %c0_10] : memref<1x128xf32, #tpu.memory_space<vmem>>, vector<1x128xf32>
    %15 = vector.broadcast %14 : vector<1x128xf32> to vector<16x128xf32>
    %16 = arith.addf %13, %15 : vector<16x128xf32>
    %17 = arith.truncf %16 : vector<16x128xf32> to vector<16x128xbf16>
    %c0_11 = arith.constant 0 : index
    %c0_12 = arith.constant 0 : index
    %18 = vector.load %arg7[%c0_11, %c0_12] : memref<16x128xbf16, #tpu.memory_space<vmem>>, vector<16x128xbf16>
    tpu.vector_store %arg7[%c0_11, %c0_12], %17 {strides = array<i32>} : memref<16x128xbf16, #tpu.memory_space<vmem>>, vector<16x128xbf16>,
    return
  }
  func.func @transform_0(%arg0: i32) -> (i32, i32) {
    %c0_i32 = arith.constant 0 : i32
    %c0_i32_0 = arith.constant 0 : i32
    return %arg0, %c0_i32 : i32, i32
  }
  func.func @transform_1(%arg0: i32) -> (i32, i32) {
    %c0_i32 = arith.constant 0 : i32
    %c0_i32_0 = arith.constant 0 : i32
    return %arg0, %c0_i32 : i32, i32
  }
  func.func @transform_2(%arg0: i32) -> (i32, i32) {
    %c0_i32 = arith.constant 0 : i32
    %c0_i32_0 = arith.constant 0 : i32
    %c0_i32_1 = arith.constant 0 : i32
    return %c0_i32, %c0_i32_0 : i32, i32
  }
  func.func @transform_3(%arg0: i32) -> (i32, i32) {
    %c0_i32 = arith.constant 0 : i32
    %c0_i32_0 = arith.constant 0 : i32
    %c0_i32_1 = arith.constant 0 : i32
    return %c0_i32, %c0_i32_0 : i32, i32
  }
  func.func @transform_4(%arg0: i32) -> (i32, i32) {
    %c0_i32 = arith.constant 0 : i32
    %c0_i32_0 = arith.constant 0 : i32
    %c0_i32_1 = arith.constant 0 : i32
    return %c0_i32, %c0_i32_0 : i32, i32
  }
  func.func @transform_5(%arg0: i32) -> (i32, i32) {
    %c0_i32 = arith.constant 0 : i32
    %c0_i32_0 = arith.constant 0 : i32
    %c0_i32_1 = arith.constant 0 : i32
    return %c0_i32, %c0_i32_0 : i32, i32
  }
  func.func @transform_6(%arg0: i32) -> (i32, i32) {
    %c0_i32 = arith.constant 0 : i32
    %c0_i32_0 = arith.constant 0 : i32
    return %arg0, %c0_i32 : i32, i32
  }
}

module attributes {stable_mosaic.version = 11 : i64} {
  func.func @kernel(%arg0: i32, %arg1: i32, %arg2: i32, %arg3: memref<64x288xbf16, #tpu.memory_space<vmem>>, %arg4: memref<288x128xbf16, #tpu.memory_space<vmem>>, %arg5: memref<1x128xf32, #tpu.memory_space<vmem>>, %arg6: memref<64x128xbf16, #tpu.memory_space<vmem>>, %arg7: memref<64x128xf32, #tpu.memory_space<vmem>>) attributes {dimension_semantics = [#tpu.dimension_semantics<parallel>, #tpu.dimension_semantics<parallel>, #tpu.dimension_semantics<arbitrary>], iteration_bounds = array<i64: 2, 1, 1>, scalar_prefetch = 0 : i64, scratch_operands = 1 : i64, tpu.core_type = #tpu.core_type<tc>, window_params = [{transform_indices = @transform_0, window_bounds = array<i64: 64, 288>}, {transform_indices = @transform_1, window_bounds = array<i64: 288, 128>}, {transform_indices = @transform_2, window_bounds = array<i64: 1, 128>}, {transform_indices = @transform_3, window_bounds = array<i64: 64, 128>}]} {
    %c0_i32 = arith.constant 0 : i32
    %0 = arith.cmpi eq, %arg2, %c0_i32 : i32
    %1 = arith.extui %0 : i1 to i32
    %c0_i32_0 = arith.constant 0 : i32
    %2 = arith.cmpi ne, %1, %c0_i32_0 : i32
    scf.if %2 {
      %cst_10 = arith.constant 0.000000e+00 : f32
      %12 = vector.broadcast %cst_10 : f32 to vector<64x128xf32>
      %c0_11 = arith.constant 0 : index
      %c0_12 = arith.constant 0 : index
      %13 = vector.load %arg7[%c0_11, %c0_12] : memref<64x128xf32, #tpu.memory_space<vmem>>, vector<64x128xf32>
      tpu.vector_store %arg7[%c0_11, %c0_12], %12 {strides = array<i32>} : memref<64x128xf32, #tpu.memory_space<vmem>>, vector<64x128xf32>,
    } else {
    }
    %c0 = arith.constant 0 : index
    %c0_1 = arith.constant 0 : index
    %3 = vector.load %arg7[%c0, %c0_1] : memref<64x128xf32, #tpu.memory_space<vmem>>, vector<64x128xf32>
    %c0_2 = arith.constant 0 : index
    %c0_3 = arith.constant 0 : index
    %4 = vector.load %arg3[%c0_2, %c0_3] : memref<64x288xbf16, #tpu.memory_space<vmem>>, vector<64x288xbf16>
    %c0_4 = arith.constant 0 : index
    %c0_5 = arith.constant 0 : index
    %5 = vector.load %arg4[%c0_4, %c0_5] : memref<288x128xbf16, #tpu.memory_space<vmem>>, vector<288x128xbf16>
    %cst = arith.constant dense<0.000000e+00> : vector<64x128xf32>
    %6 = tpu.matmul %4, %5, %cst {dimension_numbers = #tpu.dot_dimension_numbers<[1], [0], [0], [1], [0, 0, 1, 1], [], []>} : vector<64x288xbf16>, vector<288x128xbf16>, vector<64x128xf32> -> vector<64x128xf32>
    %7 = arith.addf %3, %6 : vector<64x128xf32>
    %c0_6 = arith.constant 0 : index
    %c0_7 = arith.constant 0 : index
    %8 = vector.load %arg7[%c0_6, %c0_7] : memref<64x128xf32, #tpu.memory_space<vmem>>, vector<64x128xf32>
    tpu.vector_store %arg7[%c0_6, %c0_7], %7 {strides = array<i32>} : memref<64x128xf32, #tpu.memory_space<vmem>>, vector<64x128xf32>,
    %c0_i32_8 = arith.constant 0 : i32
    %9 = arith.cmpi eq, %arg2, %c0_i32_8 : i32
    %10 = arith.extui %9 : i1 to i32
    %c0_i32_9 = arith.constant 0 : i32
    %11 = arith.cmpi ne, %10, %c0_i32_9 : i32
    scf.if %11 {
      %c0_10 = arith.constant 0 : index
      %c0_11 = arith.constant 0 : index
      %12 = vector.load %arg7[%c0_10, %c0_11] : memref<64x128xf32, #tpu.memory_space<vmem>>, vector<64x128xf32>
      %c0_12 = arith.constant 0 : index
      %c0_13 = arith.constant 0 : index
      %13 = vector.load %arg5[%c0_12, %c0_13] : memref<1x128xf32, #tpu.memory_space<vmem>>, vector<1x128xf32>
      %14 = vector.broadcast %13 : vector<1x128xf32> to vector<64x128xf32>
      %15 = arith.addf %12, %14 : vector<64x128xf32>
      %cst_14 = arith.constant 0.000000e+00 : f32
      %16 = vector.broadcast %cst_14 : f32 to vector<64x128xf32>
      %17 = arith.maximumf %15, %16 : vector<64x128xf32>
      %18 = arith.truncf %17 : vector<64x128xf32> to vector<64x128xbf16>
      %c0_15 = arith.constant 0 : index
      %c0_16 = arith.constant 0 : index
      %19 = vector.load %arg6[%c0_15, %c0_16] : memref<64x128xbf16, #tpu.memory_space<vmem>>, vector<64x128xbf16>
      tpu.vector_store %arg6[%c0_15, %c0_16], %18 {strides = array<i32>} : memref<64x128xbf16, #tpu.memory_space<vmem>>, vector<64x128xbf16>,
    } else {
    }
    return
  }
  func.func @transform_0(%arg0: i32, %arg1: i32, %arg2: i32) -> (i32, i32) {
    %c0_i32 = arith.constant 0 : i32
    return %arg0, %arg2 : i32, i32
  }
  func.func @transform_1(%arg0: i32, %arg1: i32, %arg2: i32) -> (i32, i32) {
    %c0_i32 = arith.constant 0 : i32
    return %arg2, %arg1 : i32, i32
  }
  func.func @transform_2(%arg0: i32, %arg1: i32, %arg2: i32) -> (i32, i32) {
    %c0_i32 = arith.constant 0 : i32
    %c0_i32_0 = arith.constant 0 : i32
    return %c0_i32, %arg1 : i32, i32
  }
  func.func @transform_3(%arg0: i32, %arg1: i32, %arg2: i32) -> (i32, i32) {
    %c0_i32 = arith.constant 0 : i32
    return %arg0, %arg1 : i32, i32
  }
}

module attributes {stable_mosaic.version = 11 : i64} {
  func.func @kernel(%arg0: i32, %arg1: i32, %arg2: i32, %arg3: memref<256x144xbf16, #tpu.memory_space<vmem>>, %arg4: memref<144x128xbf16, #tpu.memory_space<vmem>>, %arg5: memref<1x128xf32, #tpu.memory_space<vmem>>, %arg6: memref<256x128xbf16, #tpu.memory_space<vmem>>, %arg7: memref<256x128xf32, #tpu.memory_space<vmem>>) attributes {dimension_semantics = [#tpu.dimension_semantics<parallel>, #tpu.dimension_semantics<parallel>, #tpu.dimension_semantics<arbitrary>], iteration_bounds = array<i64: 2, 1, 1>, scalar_prefetch = 0 : i64, scratch_operands = 1 : i64, tpu.core_type = #tpu.core_type<tc>, window_params = [{transform_indices = @transform_0, window_bounds = array<i64: 256, 144>}, {transform_indices = @transform_1, window_bounds = array<i64: 144, 128>}, {transform_indices = @transform_2, window_bounds = array<i64: 1, 128>}, {transform_indices = @transform_3, window_bounds = array<i64: 256, 128>}]} {
    %c0_i32 = arith.constant 0 : i32
    %0 = arith.cmpi eq, %arg2, %c0_i32 : i32
    %1 = arith.extui %0 : i1 to i32
    %c0_i32_0 = arith.constant 0 : i32
    %2 = arith.cmpi ne, %1, %c0_i32_0 : i32
    scf.if %2 {
      %cst_10 = arith.constant 0.000000e+00 : f32
      %12 = vector.broadcast %cst_10 : f32 to vector<256x128xf32>
      %c0_11 = arith.constant 0 : index
      %c0_12 = arith.constant 0 : index
      %13 = vector.load %arg7[%c0_11, %c0_12] : memref<256x128xf32, #tpu.memory_space<vmem>>, vector<256x128xf32>
      tpu.vector_store %arg7[%c0_11, %c0_12], %12 {strides = array<i32>} : memref<256x128xf32, #tpu.memory_space<vmem>>, vector<256x128xf32>,
    } else {
    }
    %c0 = arith.constant 0 : index
    %c0_1 = arith.constant 0 : index
    %3 = vector.load %arg7[%c0, %c0_1] : memref<256x128xf32, #tpu.memory_space<vmem>>, vector<256x128xf32>
    %c0_2 = arith.constant 0 : index
    %c0_3 = arith.constant 0 : index
    %4 = vector.load %arg3[%c0_2, %c0_3] : memref<256x144xbf16, #tpu.memory_space<vmem>>, vector<256x144xbf16>
    %c0_4 = arith.constant 0 : index
    %c0_5 = arith.constant 0 : index
    %5 = vector.load %arg4[%c0_4, %c0_5] : memref<144x128xbf16, #tpu.memory_space<vmem>>, vector<144x128xbf16>
    %cst = arith.constant dense<0.000000e+00> : vector<256x128xf32>
    %6 = tpu.matmul %4, %5, %cst {dimension_numbers = #tpu.dot_dimension_numbers<[1], [0], [0], [1], [0, 0, 1, 1], [], []>} : vector<256x144xbf16>, vector<144x128xbf16>, vector<256x128xf32> -> vector<256x128xf32>
    %7 = arith.addf %3, %6 : vector<256x128xf32>
    %c0_6 = arith.constant 0 : index
    %c0_7 = arith.constant 0 : index
    %8 = vector.load %arg7[%c0_6, %c0_7] : memref<256x128xf32, #tpu.memory_space<vmem>>, vector<256x128xf32>
    tpu.vector_store %arg7[%c0_6, %c0_7], %7 {strides = array<i32>} : memref<256x128xf32, #tpu.memory_space<vmem>>, vector<256x128xf32>,
    %c0_i32_8 = arith.constant 0 : i32
    %9 = arith.cmpi eq, %arg2, %c0_i32_8 : i32
    %10 = arith.extui %9 : i1 to i32
    %c0_i32_9 = arith.constant 0 : i32
    %11 = arith.cmpi ne, %10, %c0_i32_9 : i32
    scf.if %11 {
      %c0_10 = arith.constant 0 : index
      %c0_11 = arith.constant 0 : index
      %12 = vector.load %arg7[%c0_10, %c0_11] : memref<256x128xf32, #tpu.memory_space<vmem>>, vector<256x128xf32>
      %c0_12 = arith.constant 0 : index
      %c0_13 = arith.constant 0 : index
      %13 = vector.load %arg5[%c0_12, %c0_13] : memref<1x128xf32, #tpu.memory_space<vmem>>, vector<1x128xf32>
      %14 = vector.broadcast %13 : vector<1x128xf32> to vector<256x128xf32>
      %15 = arith.addf %12, %14 : vector<256x128xf32>
      %cst_14 = arith.constant 0.000000e+00 : f32
      %16 = vector.broadcast %cst_14 : f32 to vector<256x128xf32>
      %17 = arith.maximumf %15, %16 : vector<256x128xf32>
      %18 = arith.truncf %17 : vector<256x128xf32> to vector<256x128xbf16>
      %c0_15 = arith.constant 0 : index
      %c0_16 = arith.constant 0 : index
      %19 = vector.load %arg6[%c0_15, %c0_16] : memref<256x128xbf16, #tpu.memory_space<vmem>>, vector<256x128xbf16>
      tpu.vector_store %arg6[%c0_15, %c0_16], %18 {strides = array<i32>} : memref<256x128xbf16, #tpu.memory_space<vmem>>, vector<256x128xbf16>,
    } else {
    }
    return
  }
  func.func @transform_0(%arg0: i32, %arg1: i32, %arg2: i32) -> (i32, i32) {
    %c0_i32 = arith.constant 0 : i32
    return %arg0, %arg2 : i32, i32
  }
  func.func @transform_1(%arg0: i32, %arg1: i32, %arg2: i32) -> (i32, i32) {
    %c0_i32 = arith.constant 0 : i32
    return %arg2, %arg1 : i32, i32
  }
  func.func @transform_2(%arg0: i32, %arg1: i32, %arg2: i32) -> (i32, i32) {
    %c0_i32 = arith.constant 0 : i32
    %c0_i32_0 = arith.constant 0 : i32
    return %c0_i32, %arg1 : i32, i32
  }
  func.func @transform_3(%arg0: i32, %arg1: i32, %arg2: i32) -> (i32, i32) {
    %c0_i32 = arith.constant 0 : i32
    return %arg0, %arg1 : i32, i32
  }
}

module attributes {stable_mosaic.version = 11 : i64} {
  func.func @kernel(%arg0: i32, %arg1: i32, %arg2: i32, %arg3: memref<256x72xbf16, #tpu.memory_space<vmem>>, %arg4: memref<72x128xbf16, #tpu.memory_space<vmem>>, %arg5: memref<1x128xf32, #tpu.memory_space<vmem>>, %arg6: memref<256x128xbf16, #tpu.memory_space<vmem>>, %arg7: memref<256x128xf32, #tpu.memory_space<vmem>>) attributes {dimension_semantics = [#tpu.dimension_semantics<parallel>, #tpu.dimension_semantics<parallel>, #tpu.dimension_semantics<arbitrary>], iteration_bounds = array<i64: 8, 1, 1>, scalar_prefetch = 0 : i64, scratch_operands = 1 : i64, tpu.core_type = #tpu.core_type<tc>, window_params = [{transform_indices = @transform_0, window_bounds = array<i64: 256, 72>}, {transform_indices = @transform_1, window_bounds = array<i64: 72, 128>}, {transform_indices = @transform_2, window_bounds = array<i64: 1, 128>}, {transform_indices = @transform_3, window_bounds = array<i64: 256, 128>}]} {
    %c0_i32 = arith.constant 0 : i32
    %0 = arith.cmpi eq, %arg2, %c0_i32 : i32
    %1 = arith.extui %0 : i1 to i32
    %c0_i32_0 = arith.constant 0 : i32
    %2 = arith.cmpi ne, %1, %c0_i32_0 : i32
    scf.if %2 {
      %cst_10 = arith.constant 0.000000e+00 : f32
      %12 = vector.broadcast %cst_10 : f32 to vector<256x128xf32>
      %c0_11 = arith.constant 0 : index
      %c0_12 = arith.constant 0 : index
      %13 = vector.load %arg7[%c0_11, %c0_12] : memref<256x128xf32, #tpu.memory_space<vmem>>, vector<256x128xf32>
      tpu.vector_store %arg7[%c0_11, %c0_12], %12 {strides = array<i32>} : memref<256x128xf32, #tpu.memory_space<vmem>>, vector<256x128xf32>,
    } else {
    }
    %c0 = arith.constant 0 : index
    %c0_1 = arith.constant 0 : index
    %3 = vector.load %arg7[%c0, %c0_1] : memref<256x128xf32, #tpu.memory_space<vmem>>, vector<256x128xf32>
    %c0_2 = arith.constant 0 : index
    %c0_3 = arith.constant 0 : index
    %4 = vector.load %arg3[%c0_2, %c0_3] : memref<256x72xbf16, #tpu.memory_space<vmem>>, vector<256x72xbf16>
    %c0_4 = arith.constant 0 : index
    %c0_5 = arith.constant 0 : index
    %5 = vector.load %arg4[%c0_4, %c0_5] : memref<72x128xbf16, #tpu.memory_space<vmem>>, vector<72x128xbf16>
    %cst = arith.constant dense<0.000000e+00> : vector<256x128xf32>
    %6 = tpu.matmul %4, %5, %cst {dimension_numbers = #tpu.dot_dimension_numbers<[1], [0], [0], [1], [0, 0, 1, 1], [], []>} : vector<256x72xbf16>, vector<72x128xbf16>, vector<256x128xf32> -> vector<256x128xf32>
    %7 = arith.addf %3, %6 : vector<256x128xf32>
    %c0_6 = arith.constant 0 : index
    %c0_7 = arith.constant 0 : index
    %8 = vector.load %arg7[%c0_6, %c0_7] : memref<256x128xf32, #tpu.memory_space<vmem>>, vector<256x128xf32>
    tpu.vector_store %arg7[%c0_6, %c0_7], %7 {strides = array<i32>} : memref<256x128xf32, #tpu.memory_space<vmem>>, vector<256x128xf32>,
    %c0_i32_8 = arith.constant 0 : i32
    %9 = arith.cmpi eq, %arg2, %c0_i32_8 : i32
    %10 = arith.extui %9 : i1 to i32
    %c0_i32_9 = arith.constant 0 : i32
    %11 = arith.cmpi ne, %10, %c0_i32_9 : i32
    scf.if %11 {
      %c0_10 = arith.constant 0 : index
      %c0_11 = arith.constant 0 : index
      %12 = vector.load %arg7[%c0_10, %c0_11] : memref<256x128xf32, #tpu.memory_space<vmem>>, vector<256x128xf32>
      %c0_12 = arith.constant 0 : index
      %c0_13 = arith.constant 0 : index
      %13 = vector.load %arg5[%c0_12, %c0_13] : memref<1x128xf32, #tpu.memory_space<vmem>>, vector<1x128xf32>
      %14 = vector.broadcast %13 : vector<1x128xf32> to vector<256x128xf32>
      %15 = arith.addf %12, %14 : vector<256x128xf32>
      %cst_14 = arith.constant 0.000000e+00 : f32
      %16 = vector.broadcast %cst_14 : f32 to vector<256x128xf32>
      %17 = arith.maximumf %15, %16 : vector<256x128xf32>
      %18 = arith.truncf %17 : vector<256x128xf32> to vector<256x128xbf16>
      %c0_15 = arith.constant 0 : index
      %c0_16 = arith.constant 0 : index
      %19 = vector.load %arg6[%c0_15, %c0_16] : memref<256x128xbf16, #tpu.memory_space<vmem>>, vector<256x128xbf16>
      tpu.vector_store %arg6[%c0_15, %c0_16], %18 {strides = array<i32>} : memref<256x128xbf16, #tpu.memory_space<vmem>>, vector<256x128xbf16>,
    } else {
    }
    return
  }
  func.func @transform_0(%arg0: i32, %arg1: i32, %arg2: i32) -> (i32, i32) {
    %c0_i32 = arith.constant 0 : i32
    return %arg0, %arg2 : i32, i32
  }
  func.func @transform_1(%arg0: i32, %arg1: i32, %arg2: i32) -> (i32, i32) {
    %c0_i32 = arith.constant 0 : i32
    return %arg2, %arg1 : i32, i32
  }
  func.func @transform_2(%arg0: i32, %arg1: i32, %arg2: i32) -> (i32, i32) {
    %c0_i32 = arith.constant 0 : i32
    %c0_i32_0 = arith.constant 0 : i32
    return %c0_i32, %arg1 : i32, i32
  }
  func.func @transform_3(%arg0: i32, %arg1: i32, %arg2: i32) -> (i32, i32) {
    %c0_i32 = arith.constant 0 : i32
    return %arg0, %arg1 : i32, i32
  }
}

module attributes {stable_mosaic.version = 11 : i64} {
  func.func @kernel(%arg0: i32, %arg1: i32, %arg2: i32, %arg3: memref<256x72xbf16, #tpu.memory_space<vmem>>, %arg4: memref<72x128xbf16, #tpu.memory_space<vmem>>, %arg5: memref<1x128xf32, #tpu.memory_space<vmem>>, %arg6: memref<256x128xf32, #tpu.memory_space<vmem>>, %arg7: memref<256x128xf32, #tpu.memory_space<vmem>>) attributes {dimension_semantics = [#tpu.dimension_semantics<parallel>, #tpu.dimension_semantics<parallel>, #tpu.dimension_semantics<arbitrary>], iteration_bounds = array<i64: 8, 1, 1>, scalar_prefetch = 0 : i64, scratch_operands = 1 : i64, tpu.core_type = #tpu.core_type<tc>, window_params = [{transform_indices = @transform_0, window_bounds = array<i64: 256, 72>}, {transform_indices = @transform_1, window_bounds = array<i64: 72, 128>}, {transform_indices = @transform_2, window_bounds = array<i64: 1, 128>}, {transform_indices = @transform_3, window_bounds = array<i64: 256, 128>}]} {
    %c0_i32 = arith.constant 0 : i32
    %0 = arith.cmpi eq, %arg2, %c0_i32 : i32
    %1 = arith.extui %0 : i1 to i32
    %c0_i32_0 = arith.constant 0 : i32
    %2 = arith.cmpi ne, %1, %c0_i32_0 : i32
    scf.if %2 {
      %cst_10 = arith.constant 0.000000e+00 : f32
      %12 = vector.broadcast %cst_10 : f32 to vector<256x128xf32>
      %c0_11 = arith.constant 0 : index
      %c0_12 = arith.constant 0 : index
      %13 = vector.load %arg7[%c0_11, %c0_12] : memref<256x128xf32, #tpu.memory_space<vmem>>, vector<256x128xf32>
      tpu.vector_store %arg7[%c0_11, %c0_12], %12 {strides = array<i32>} : memref<256x128xf32, #tpu.memory_space<vmem>>, vector<256x128xf32>,
    } else {
    }
    %c0 = arith.constant 0 : index
    %c0_1 = arith.constant 0 : index
    %3 = vector.load %arg7[%c0, %c0_1] : memref<256x128xf32, #tpu.memory_space<vmem>>, vector<256x128xf32>
    %c0_2 = arith.constant 0 : index
    %c0_3 = arith.constant 0 : index
    %4 = vector.load %arg3[%c0_2, %c0_3] : memref<256x72xbf16, #tpu.memory_space<vmem>>, vector<256x72xbf16>
    %c0_4 = arith.constant 0 : index
    %c0_5 = arith.constant 0 : index
    %5 = vector.load %arg4[%c0_4, %c0_5] : memref<72x128xbf16, #tpu.memory_space<vmem>>, vector<72x128xbf16>
    %cst = arith.constant dense<0.000000e+00> : vector<256x128xf32>
    %6 = tpu.matmul %4, %5, %cst {dimension_numbers = #tpu.dot_dimension_numbers<[1], [0], [0], [1], [0, 0, 1, 1], [], []>} : vector<256x72xbf16>, vector<72x128xbf16>, vector<256x128xf32> -> vector<256x128xf32>
    %7 = arith.addf %3, %6 : vector<256x128xf32>
    %c0_6 = arith.constant 0 : index
    %c0_7 = arith.constant 0 : index
    %8 = vector.load %arg7[%c0_6, %c0_7] : memref<256x128xf32, #tpu.memory_space<vmem>>, vector<256x128xf32>
    tpu.vector_store %arg7[%c0_6, %c0_7], %7 {strides = array<i32>} : memref<256x128xf32, #tpu.memory_space<vmem>>, vector<256x128xf32>,
    %c0_i32_8 = arith.constant 0 : i32
    %9 = arith.cmpi eq, %arg2, %c0_i32_8 : i32
    %10 = arith.extui %9 : i1 to i32
    %c0_i32_9 = arith.constant 0 : i32
    %11 = arith.cmpi ne, %10, %c0_i32_9 : i32
    scf.if %11 {
      %c0_10 = arith.constant 0 : index
      %c0_11 = arith.constant 0 : index
      %12 = vector.load %arg7[%c0_10, %c0_11] : memref<256x128xf32, #tpu.memory_space<vmem>>, vector<256x128xf32>
      %c0_12 = arith.constant 0 : index
      %c0_13 = arith.constant 0 : index
      %13 = vector.load %arg5[%c0_12, %c0_13] : memref<1x128xf32, #tpu.memory_space<vmem>>, vector<1x128xf32>
      %14 = vector.broadcast %13 : vector<1x128xf32> to vector<256x128xf32>
      %15 = arith.addf %12, %14 : vector<256x128xf32>
      %c0_14 = arith.constant 0 : index
      %c0_15 = arith.constant 0 : index
      %16 = vector.load %arg6[%c0_14, %c0_15] : memref<256x128xf32, #tpu.memory_space<vmem>>, vector<256x128xf32>
      tpu.vector_store %arg6[%c0_14, %c0_15], %15 {strides = array<i32>} : memref<256x128xf32, #tpu.memory_space<vmem>>, vector<256x128xf32>,
    } else {
    }
    return
  }
  func.func @transform_0(%arg0: i32, %arg1: i32, %arg2: i32) -> (i32, i32) {
    %c0_i32 = arith.constant 0 : i32
    return %arg0, %arg2 : i32, i32
  }
  func.func @transform_1(%arg0: i32, %arg1: i32, %arg2: i32) -> (i32, i32) {
    %c0_i32 = arith.constant 0 : i32
    return %arg2, %arg1 : i32, i32
  }
  func.func @transform_2(%arg0: i32, %arg1: i32, %arg2: i32) -> (i32, i32) {
    %c0_i32 = arith.constant 0 : i32
    %c0_i32_0 = arith.constant 0 : i32
    return %c0_i32, %arg1 : i32, i32
  }
  func.func @transform_3(%arg0: i32, %arg1: i32, %arg2: i32) -> (i32, i32) {
    %c0_i32 = arith.constant 0 : i32
    return %arg0, %arg1 : i32, i32
  }
}

</mosaic_0001>

<bundles_post_ra>
// kernel: reverse.1
= control target key start
LH: loop header
LB: loop body
LE: loop exit
PB: predicated region body
PF: predicated region fallthrough
CT: control target
= control target key end

     0   :  { %v2_v0 = vlaneseq  ;;  %s304_s0 = inlined_call_operand.vmem [shape: bf16[7,7,2,1], index: 0, kind: input, shape index: {}]   ;;  %s305_s1 = inlined_call_operand.vmem [shape: bf16[7,7,2,1], index: 1, kind: output, shape index: {}]  }
   0x2   :  { %v3_v1 = vsub.s32 6, %v2_v0 }
   0x4   :  { %4 = vset.pattern.permute.xlu0 %v3_v1 }
   0x5   :  { %286 = vset.pattern.permute.xlu1 %v3_v1  ;;  %v20_v2 = vld [vmem:[%s304_s0] sm:$0x7f]  ;;  %v287_v32 = vmov 0.0  }
   0x6   :  { %21 = vst [vmem:[#allocation1] sm:$0x7f] %v20_v2 }
   0xd   :  { %v82_v3 = vld [vmem:[#allocation1 + $0x4] sm:$0x1]  ;;  %v50_v4 = vld [vmem:[#allocation1 + $0x6] sm:$0x1]  ;;  %v98_v5 = vld [vmem:[#allocation1 + $0x3] sm:$0x1] }
   0xe   :  { %v83_v6 = vunpack.c.l.bf16 %v82_v3  ;;  %v51_v7 = vunpack.c.l.bf16 %v50_v4  ;;  %v99_v8 = vunpack.c.l.bf16 %v98_v5  ;;  %v66_v9 = vld [vmem:[#allocation1 + $0x5] sm:$0x1]  ;;  %v129_v10 = vld [vmem:[#allocation1 + $0x1] sm:$0x1]  ;;  %v114_v11 = vld [vmem:[#allocation1 + $0x2] sm:$0x1] }
   0xf   :  { %v67_v12 = vunpack.c.l.bf16 %v66_v9  ;;  %v130_v13 = vunpack.c.l.bf16 %v129_v10  ;;  %v115_v14 = vunpack.c.l.bf16 %v114_v11  ;;  %v143_v15 = vld [vmem:[#allocation1] sm:$0x1] }
  0x10   :  { %86 = vst [vmem:[#allocation0 + $0x20] sm:$0x3] %v83_v6  ;;  %54 = vst [vmem:[#allocation0 + $0x30] sm:$0x3] %v51_v7  ;;  %v144_v16 = vunpack.c.l.bf16 %v143_v15 }
  0x11   :  { %102 = vst [vmem:[#allocation0 + $0x18] sm:$0x3] %v99_v8  ;;  %70 = vst [vmem:[#allocation0 + $0x28] sm:$0x3] %v67_v12 }
  0x12   :  { %133 = vst [vmem:[#allocation0 + $0x8] sm:$0x3] %v130_v13  ;;  %118 = vst [vmem:[#allocation0 + $0x10] sm:$0x3] %v115_v14 }
  0x13   :  { %146 = vst [vmem:[#allocation0] sm:$0x3] %v144_v16 }
  0x17   :  { %v160_v17 = vld [vmem:[#allocation0 + $0x20] sm:$0xff]  ;;  %v148_v18 = vld [vmem:[#allocation0 + $0x30] sm:$0xff] }
  0x18   :  { %161 = vperm.xlu1 %286, %v160_v17   ;;  %149 = vperm.xlu0 %4, %v148_v18   ;;  %v166_v19 = vld [vmem:[#allocation0 + $0x18] sm:$0xff]  ;;  %v154_v20 = vld [vmem:[#allocation0 + $0x28] sm:$0xff] }
  0x19   :  { %v178_v21 = vld [vmem:[#allocation0 + $0x8] sm:$0xff]  ;;  %v172_v22 = vld [vmem:[#allocation0 + $0x10] sm:$0xff] }
  0x1a   :  { %v183_v23 = vld [vmem:[#allocation0] sm:$0xff] }
  0x1c   :  { %167 = vperm.xlu1 %286, %v166_v19   ;;  %155 = vperm.xlu0 %4, %v154_v20  }
  0x20   :  { %179 = vperm.xlu1 %286, %v178_v21   ;;  %173 = vperm.xlu0 %4, %v172_v22  }
  0x24   :  { %184 = vperm.xlu0 %4, %v183_v23  }
  0x97   :  { %v162_v24 = vpop.permute.xlu1 %161  ;;  %v150_v25 = vpop.permute.xlu0 %149 }
  0x98   :  { %163 = vst [vmem:[#allocation2 + $0x10] sm:$0xff] %v162_v24  ;;  %151 = vst [vmem:[#allocation2] sm:$0xff] %v150_v25 }
  0x9b   :  { %v168_v26 = vpop.permute.xlu1 %167  ;;  %v156_v27 = vpop.permute.xlu0 %155 }
  0x9c   :  { %169 = vst [vmem:[#allocation2 + $0x18] sm:$0xff] %v168_v26  ;;  %157 = vst [vmem:[#allocation2 + $0x8] sm:$0xff] %v156_v27 }
  0x9f   :  { %v202_v28 = vld [vmem:[#allocation2 + $0x10] sm:$0x3]  ;;  %v191_v29 = vld [vmem:[#allocation2] sm:$0x3]  ;;  %v180_v30 = vpop.permute.xlu1 %179  ;;  %v174_v31 = vpop.permute.xlu0 %173 }
  0xa0   :  { %v203_v33 = vpack.c.bf16 %v287_v32, %v202_v28  ;;  %v192_v34 = vpack.c.bf16 %v287_v32, %v191_v29  ;;  %181 = vst [vmem:[#allocation2 + $0x28] sm:$0xff] %v180_v30  ;;  %175 = vst [vmem:[#allocation2 + $0x20] sm:$0xff] %v174_v31 }
  0xa2   :  { %207 = vst [vmem:[#allocation3 + $0x2] sm:$0x1] %v203_v33  ;;  %194 = vst [vmem:[#allocation3] sm:$0x1] %v192_v34 }
  0xa3   :  { %v209_v35 = vld [vmem:[#allocation2 + $0x18] sm:$0x3]  ;;  %v196_v36 = vld [vmem:[#allocation2 + $0x8] sm:$0x3]  ;;  %v185_v37 = vpop.permute.xlu0 %184 }
  0xa4   :  { %v210_v38 = vpack.c.bf16 %v287_v32, %v209_v35  ;;  %v197_v39 = vpack.c.bf16 %v287_v32, %v196_v36  ;;  %186 = vst [vmem:[#allocation2 + $0x30] sm:$0xff] %v185_v37 }
  0xa6   :  { %214 = vst [vmem:[#allocation3 + $0x3] sm:$0x1] %v210_v38  ;;  %200 = vst [vmem:[#allocation3 + $0x1] sm:$0x1] %v197_v39 }
  0xa7   :  { %v223_v40 = vld [vmem:[#allocation2 + $0x28] sm:$0x3]  ;;  %v216_v41 = vld [vmem:[#allocation2 + $0x20] sm:$0x3] }
  0xa8   :  { %v224_v42 = vpack.c.bf16 %v287_v32, %v223_v40  ;;  %v217_v43 = vpack.c.bf16 %v287_v32, %v216_v41 }
  0xaa   :  { %228 = vst [vmem:[#allocation3 + $0x5] sm:$0x1] %v224_v42  ;;  %221 = vst [vmem:[#allocation3 + $0x4] sm:$0x1] %v217_v43 }
  0xab   :  { %v230_v44 = vld [vmem:[#allocation2 + $0x30] sm:$0x3] }
  0xac   :  { %v231_v45 = vpack.c.bf16 %v287_v32, %v230_v44 }
  0xae   :  { %235 = vst [vmem:[#allocation3 + $0x6] sm:$0x1] %v231_v45 }
  0xb5   :  { %v251_v46 = vld [vmem:[#allocation3] sm:$0x7f] }
  0xb6   :  { %252 = vst [vmem:[%s305_s1] sm:$0x7f] %v251_v46 }

</bundles_post_ra>
